<compile_context>
chip_gen: v6e
topology: v6e:2x2x1
jax: 0.10.0
libtpu: 0.0.40
codegen_flags: <defaults>
</compile_context>

<pallas_src>
import math
import numpy as np
import jax
import jax.numpy as jnp
from jax import lax
from jax.experimental import pallas as pl
from jax.experimental.pallas import tpu as pltpu


# ----------------------------------------------------------------------------------
# Parameter construction (verbatim numpy port of the PyTorch helper functions).
# These produce fixed, non-trainable filter banks (requires_grad=False in PyTorch).
# ----------------------------------------------------------------------------------
def get_ftype(ftype: str, ksize: int, sigma: float = 0.01):
    if ftype == 'constant':
        value = np.ones(ksize)
    elif ftype == 'cosine':
        t = np.linspace(-np.pi / 2, np.pi / 2, ksize)
        value = np.cos(t)
    elif ftype == 'gaussian':
        t = np.linspace(-sigma * 2, sigma * 2, ksize)
        x = -t ** 2 / (2 * sigma ** 2)
        value = np.exp(x)
    mask_row = value[None, :]
    mask_col = value[:, None]
    return (mask_row, mask_col)


def single_filter(ksize: int, angle: float, width: int = 1) -> np.ndarray:
    assert ksize > 0
    assert 0 <= angle < 180
    assert width % 2 == 1
    half = ksize // 2
    middle = half + 1 - 1
    filt = np.zeros(shape=(ksize,) * 2, dtype=np.float32)
    half_width = (width - 1) // 2
    angle -= 180 if angle > 90 else 0
    radius = angle * math.pi / 180

    def in_box(x: int) -> bool:
        return 0 <= x < ksize

    if -45 < angle < 45:
        ratio = math.tan(radius)
        for dx in range(-half, half + 1):
            dy = round(dx * ratio)
            px = middle + dx
            py = middle + dy
            filt[py, px] = 1.0
            if half_width > 0:
                for dw in range(1, half_width):
                    up, down = py + dw, py - dw
                    if in_box(up):
                        filt[up, px] = 1.0
                    if in_box(down):
                        filt[down, px] = 1.0
    elif angle < -45 or angle > 45:
        ratio = math.cos(radius) / math.sin(radius)
        for dy in range(-half, half + 1):
            dx = round(dy * ratio)
            px = middle + dx
            py = middle + dy
            filt[py, px] = 1.0
            if half_width > 0:
                for dw in range(1, half_width + 1):
                    right, left = px + dw, px - dw
                    if in_box(right):
                        filt[py, right] = 1.0
                    if in_box(left):
                        filt[py, left] = 1.0
    elif angle == 45:
        for dx in range(-half, half + 1):
            px = middle + dx
            py = middle + dx
            filt[py, px] = 1.0
            if half_width > 0:
                for dw in range(1, half_width):
                    up, down = py + dw, py - dw
                    if in_box(up):
                        filt[up, px] = 1.0
                    if in_box(down):
                        filt[down, px] = 1.0
    else:
        for dx in range(-half, half + 1):
            px = middle + dx
            py = middle - dx
            filt[py, px] = 1.0
            if half_width > 0:
                for dw in range(1, half_width):
                    up, down = py + dw, py - dw
                    if in_box(up):
                        filt[up, px] = 1.0
                    if in_box(down):
                        filt[down, px] = 1.0
    return filt


def get_filter(ksize: int, mode: int = 0, ftype: str = 'gaussian', norm: bool = False,
               angle0: int = 15, width: int = 1) -> np.ndarray:
    # TODO(synk): the original get_mfrat passes dilation= to get_filter which doesn't accept
    # it (would raise TypeError); only dilation=1 (the default) is reproduced here.
    assert ksize > 0
    assert ftype in ['constant', 'gaussian', 'cosine']
    mask_row, mask_col = get_ftype(ftype=ftype, ksize=ksize)
    anglelist = [i * angle0 for i in range(180 // angle0)]
    result = None
    for angle in anglelist:
        f = single_filter(ksize, angle, width)
        if angle <= 45 or angle >= 135:
            f = f * mask_row
        else:
            f = f * mask_col
        if result is None:
            result = f[None, :, :]
        else:
            result = np.concatenate((result, f[None, :, :]), axis=0)
    if mode == 1:
        filt = result
        num, height, w = filt.shape
        filter_result = np.zeros((num * 2, height, w), dtype=filt.dtype)
        mask_up = np.zeros((height, w), dtype=filt.dtype)
        mask_down = np.zeros((height, w), dtype=filt.dtype)
        mask_left = np.zeros((height, w), dtype=filt.dtype)
        mask_right = np.zeros((height, w), dtype=filt.dtype)
        mask_up[(height + 1) // 2:, :] = 1.0
        mask_down[:(height + 1) // 2 + 1, :] = 1.0
        mask_left[:, (w + 1) // 2:] = 1.0
        mask_right[:, :(w + 1) // 2 + 1] = 1.0
        for i in range(filt.shape[0]):
            img = filt[i]
            if anglelist[i] == 90:
                filter_result[i] = img * mask_down
                filter_result[i + num] = img * mask_up
            else:
                filter_result[i] = img * mask_right
                filter_result[i + num] = img * mask_left
        result = filter_result
    if norm:
        result = result / np.sum(result.reshape(-1, ksize * ksize), axis=1)[:, None, None]
    return result.astype(np.float32)


# ----------------------------------------------------------------------------------
# Problem configuration (small deterministic shapes).
# ----------------------------------------------------------------------------------
B, C, H, W = 2, 4, 16, 16          # batch, inchannel, spatial
MKSIZE = 7                          # mfrat kernel size (mksize)
BKSIZE = 9                          # mean-blur kernel size (bksize)
ANGLE0 = 15
NUM_FILT = 180 // ANGLE0            # 12 directional filters (mode=0)
DIRECTIONS = NUM_FILT * 2           # norm=True doubles `self.directions` in the PyTorch code
PB = BKSIZE // 2                    # replicate-pad for blur conv (4)
PM = MKSIZE // 2                    # replicate-pad for mfrat conv (3)

SEG = 32                            # lanes per channel segment (>= W + 2*PB = 24)
LANES = C * SEG                     # 128 = exactly one lane tile
XROWS = H + 2 * PB                  # 24 rows (multiple of 8) -- also reused for dpad scratch

# Fixed directional filters baked as compile-time constants; keep only nonzero taps
# (each filter is a 1-px-wide line -> exactly MKSIZE of MKSIZE^2 taps are nonzero).
_FILT_NP = get_filter(MKSIZE, mode=0, ftype='gaussian', norm=True, angle0=ANGLE0, width=1)
assert _FILT_NP.shape == (NUM_FILT, MKSIZE, MKSIZE)
FILTER_TAPS = tuple(
    tuple((i, j, float(_FILT_NP[d, i, j]))
          for i in range(MKSIZE) for j in range(MKSIZE)
          if _FILT_NP[d, i, j] != 0.0)
    for d in range(NUM_FILT)
)
# De-duplicated window offsets shared by all 12 filters (review item).
UNIQUE_OFFS = tuple(sorted({(i, j) for taps in FILTER_TAPS for (i, j, _) in taps}))
ROW_OFFS = tuple(sorted({i for (i, _) in UNIQUE_OFFS}))


# ----------------------------------------------------------------------------------
# Kernel helpers (all shifts are static -> compile-time rolls / ref address offsets).
# ----------------------------------------------------------------------------------
def _shl_lanes(v, k):
    """result[..., l] = v[..., (l + k) % nlanes]   (lane 'left shift' by k)."""
    n = v.shape[-1]
    k = k % n
    if k == 0:
        return v
    return pltpu.roll(v, shift=n - k, axis=v.ndim - 1)


def _shl_rows(v, k):
    """result[r, :] = v[(r + k) % nrows, :]   (sublane 'up shift' by k)."""
    n = v.shape[0]
    k = k % n
    if k == 0:
        return v
    return pltpu.roll(v, shift=n - k, axis=0)


def _fill_padded_channel(pad_ref, b, lo, xc, p):
    """Write the replicate-padded (h+2p, w+2p) slab of the per-channel tile `xc` (h, w)
    into pad_ref[b, 0:h+2p, lo:lo+w+2p].  Built purely from values (no pad_ref read-back):
    interior rows, then top/bottom rows broadcast from the already-padded edge row values."""
    h, w = xc.shape
    wp = w + 2 * p
    rowpad = jnp.concatenate(
        [jnp.broadcast_to(xc[:, 0:1], (h, p)), xc,
         jnp.broadcast_to(xc[:, w - 1:w], (h, p))], axis=1)              # (h, wp)
    pad_ref[b, p:p + h, lo:lo + wp] = rowpad
    pad_ref[b, 0:p, lo:lo + wp] = jnp.broadcast_to(rowpad[0:1, :], (p, wp))
    pad_ref[b, p + h:p + h + p, lo:lo + wp] = jnp.broadcast_to(rowpad[h - 1:h, :], (p, wp))


# ----------------------------------------------------------------------------------
# Fused kernel: ONE grid step for the whole batch, channel-packed lanes.
# Layout convention: lane l = c*SEG + x ; valid data at x in [0, W) (plus pad columns in
# the padded scratches); garbage in the segment tails is never read for valid outputs.
# ----------------------------------------------------------------------------------
def lfeb_kernel(x_ref, out_ref, xpad_ref, dpad_ref):
    inv_bk2 = 1.0 / (BKSIZE * BKSIZE)
    # Hoisted lane mask (review anti-pattern: don't re-broadcast inside loops).
    lane = lax.broadcasted_iota(jnp.int32, (H, LANES), 1)
    is_val_half = (lane % SEG) < W          # lanes [0, W) of each 32-lane segment

    for b in range(B):
        # ---- 1. replicate-pad x into the channel-packed xpad scratch (24 x 128) ----
        for c in range(C):
            _fill_padded_channel(xpad_ref, b, c * SEG, x_ref[b, c], PB)

        # ---- 2. separable 9x9 mean blur via shift-add trees (4 shifts + 4 adds / axis) ----
        xp = xpad_ref[b]                    # (24, 128); per segment lanes [0, 24) live
        s1 = xp + _shl_lanes(xp, 1)
        s2 = s1 + _shl_lanes(s1, 2)
        s4 = s2 + _shl_lanes(s2, 4)         # 8-wide horizontal sums
        rs = s4 + _shl_lanes(xp, 8)         # 9-wide horizontal sums
        t1 = rs + _shl_rows(rs, 1)
        t2 = t1 + _shl_rows(t1, 2)
        t4 = t2 + _shl_rows(t2, 4)          # 8-tall vertical sums
        box = t4 + _shl_rows(rs, 8)         # 9x9 box sums; valid rows [0,H), seg lanes [0,W)

        # x aligned at segment offset 0 (row offset absorbed by the ref slice -> vld).
        x0 = _shl_lanes(xpad_ref[b, PB:PB + H, :], PB)
        diff = box[0:H, :] * inv_bk2 - x0   # blur(x) - x   (mid=False)

        # ---- 3. replicate-pad diff into the channel-packed dpad scratch (22 live rows) ----
        for c in range(C):
            _fill_padded_channel(dpad_ref, b, c * SEG, diff[:, c * SEG:c * SEG + W], PM)

        # ---- 4. MFRAT bank: de-duplicated shifted windows + sparse constant taps ----
        # Row offsets via ref slices (vld addressing), lane offsets via one roll per unique
        # (i, j); every window is reused by all filters touching that offset.
        rows = {i: dpad_ref[b, i:i + H, :] for i in ROW_OFFS}     # 7 loads of (H, 128)
        win = {(i, j): _shl_lanes(rows[i], j) for (i, j) in UNIQUE_OFFS}

        vmax = None
        amax = None
        for d, taps in enumerate(FILTER_TAPS):
            resp = None
            for (i, j, wt) in taps:                               # ~7 nonzero taps / filter
                term = win[(i, j)] * wt
                resp = term if resp is None else resp + term
            if d == 0:
                vmax = resp
                amax = jnp.zeros_like(resp)
            else:
                upd = resp > vmax                  # strict '>' keeps first max (torch argmax)
                vmax = jnp.where(upd, resp, vmax)
                amax = jnp.where(upd, jnp.float32(d), amax)
        amax = amax * (1.0 / DIRECTIONS)

        # ---- 5. lane-dense output: [vmax_c | amax_c] interleaved per 32-lane segment ----
        packed = jnp.where(is_val_half, vmax, pltpu.roll(amax, shift=W, axis=1))
        out_ref[b, :, :] = packed               # full 128-lane store, no masked vst


def lfeb_forward(x):
    raw = pl.pallas_call(
        lfeb_kernel,
        out_shape=jax.ShapeDtypeStruct((B, H, LANES), jnp.float32),
        grid=(1,),                              # single step: whole batch (review item)
        in_specs=[pl.BlockSpec((B, C, H, W), lambda i: (0, 0, 0, 0))],
        out_specs=pl.BlockSpec((B, H, LANES), lambda i: (0, 0, 0)),
        scratch_shapes=[
            pltpu.VMEM((B, XROWS, LANES), jnp.float32),   # replicate-padded x   (packed)
            pltpu.VMEM((B, XROWS, LANES), jnp.float32),   # replicate-padded diff (packed)
        ],
        compiler_params=pltpu.CompilerParams(
            dimension_semantics=("arbitrary",)),
    )(x)
    # Tiny wrapper-side relayout back to the module's (B, 2C, H, W) layout.
    y = raw.reshape(B, H, C, 2, W)                       # lane l = c*32 + t*16 + w
    vmax = jnp.transpose(y[:, :, :, 0, :], (0, 2, 1, 3))  # (B, C, H, W)
    amax = jnp.transpose(y[:, :, :, 1, :], (0, 2, 1, 3))  # (B, C, H, W)
    return jnp.concatenate([vmax, amax], axis=1)          # (B, 2C, H, W)


# ----------------------------------------------------------------------------------
# Pure-JAX reference (lax grouped convs) for validation.
# ----------------------------------------------------------------------------------
def lfeb_reference(x, filters):
    xp = jnp.pad(x, ((0, 0), (0, 0), (PB, PB), (PB, PB)), mode='edge')
    blur_w = jnp.ones((C, 1, BKSIZE, BKSIZE), jnp.float32) / (BKSIZE * BKSIZE)
    blur = lax.conv_general_dilated(xp, blur_w, (1, 1), 'VALID',
                                    dimension_numbers=('NCHW', 'OIHW', 'NCHW'),
                                    feature_group_count=C)
    diff = blur - x
    dp = jnp.pad(diff, ((0, 0), (0, 0), (PM, PM), (PM, PM)), mode='edge')
    mw = jnp.asarray(np.tile(np.asarray(filters)[:, None, :, :], (C, 1, 1, 1)),
                     dtype=jnp.float32)                 # (C*D, 1, K, K)
    resp = lax.conv_general_dilated(dp, mw, (1, 1), 'VALID',
                                    dimension_numbers=('NCHW', 'OIHW', 'NCHW'),
                                    feature_group_count=C)
    resp = resp.reshape(B, C, NUM_FILT, H, W)
    vmax = resp.max(axis=2)
    amax = jnp.argmax(resp, axis=2).astype(jnp.float32) / DIRECTIONS
    return jnp.concatenate([vmax, amax], axis=1), resp


if __name__ == "__main__":
    key = jax.random.PRNGKey(0)
    x = jax.random.normal(key, (B, C, H, W), dtype=jnp.float32)

    out = jax.jit(lfeb_forward)(x)
    out = jax.block_until_ready(out)
    assert out.shape == (B, 2 * C, H, W)

    ref, resp = lfeb_reference(x, jnp.asarray(_FILT_NP))
    out_np = np.asarray(out)
    ref_np = np.asarray(ref)
    resp_np = np.asarray(resp)

    # value_max channels: straight numerical comparison
    np.testing.assert_allclose(out_np[:, :C], ref_np[:, :C], rtol=2e-5, atol=2e-5)
    # argmax channels: must match exactly except at numerical near-ties between directions
    arg_match = np.abs(out_np[:, C:] - ref_np[:, C:]) <= 1e-6
    if not arg_match.all():
        srt = np.sort(resp_np, axis=2)
        gap = srt[:, :, -1] - srt[:, :, -2]             # top-2 response gap per pixel
        assert np.all(gap[~arg_match] < 1e-5), "argmax mismatch at a non-tied pixel"

    print("KERNEL_OK")
</pallas_src>

<mosaic_0001>
module attributes {stable_mosaic.version = 11 : i64} {
  func.func @lfeb_kernel(%arg0: i32, %arg1: memref<2x4x16x16xf32, #tpu.memory_space<vmem>>, %arg2: memref<2x16x128xf32, #tpu.memory_space<vmem>>, %arg3: memref<2x24x128xf32, #tpu.memory_space<vmem>>, %arg4: memref<2x24x128xf32, #tpu.memory_space<vmem>>) attributes {dimension_semantics = [#tpu.dimension_semantics<arbitrary>], iteration_bounds = array<i64: 1>, scalar_prefetch = 0 : i64, scratch_operands = 2 : i64, tpu.core_type = #tpu.core_type<tc>, window_params = [{pipeline_mode = #tpu.pipeline_mode<synchronous>, transform_indices = @transform_0, window_bounds = array<i64: 2, 4, 16, 16>}, {pipeline_mode = #tpu.pipeline_mode<synchronous>, transform_indices = @transform_1, window_bounds = array<i64: 2, 16, 128>}]} {
    %0 = tpu.iota {dimensions = array<i32: 1>} : vector<16x128xi32>
    %c32_i32 = arith.constant 32 : i32
    %c0_i32 = arith.constant 0 : i32
    %1 = arith.cmpi eq, %c32_i32, %c0_i32 : i32
    %c1_i32 = arith.constant 1 : i32
    %2 = arith.select %1, %c1_i32, %c32_i32 : i32
    %3 = vector.broadcast %2 : i32 to vector<16x128xi32>
    %4 = arith.remsi %0, %3 : vector<16x128xi32>
    %c0_i32_0 = arith.constant 0 : i32
    %5 = vector.broadcast %c0_i32_0 : i32 to vector<16x128xi32>
    %6 = arith.cmpi ne, %4, %5 : vector<16x128xi32>
    %c0_i32_1 = arith.constant 0 : i32
    %7 = vector.broadcast %c0_i32_1 : i32 to vector<16x128xi32>
    %8 = arith.cmpi slt, %4, %7 : vector<16x128xi32>
    %c0_i32_2 = arith.constant 0 : i32
    %9 = arith.cmpi slt, %2, %c0_i32_2 : i32
    %10 = vector.broadcast %9 : i1 to vector<16x128xi1>
    %11 = vector.broadcast %10 : vector<16x128xi1> to vector<16x128xi1>
    %12 = arith.xori %8, %11 : vector<16x128xi1>
    %13 = arith.andi %12, %6 : vector<16x128xi1>
    %14 = vector.broadcast %2 : i32 to vector<16x128xi32>
    %15 = arith.addi %4, %14 : vector<16x128xi32>
    %16 = arith.select %13, %15, %4 : vector<16x128xi1>, vector<16x128xi32>
    %c16_i32 = arith.constant 16 : i32
    %17 = vector.broadcast %c16_i32 : i32 to vector<16x128xi32>
    %18 = arith.cmpi slt, %16, %17 : vector<16x128xi32>
    %c0 = arith.constant 0 : index
    %c0_3 = arith.constant 0 : index
    %c0_4 = arith.constant 0 : index
    %c0_5 = arith.constant 0 : index
    %19 = vector.load %arg1[%c0, %c0_3, %c0_4, %c0_5] : memref<2x4x16x16xf32, #tpu.memory_space<vmem>>, vector<1x1x16x16xf32>
    %20 = vector.shape_cast %19 : vector<1x1x16x16xf32> to vector<16x16xf32>
    %21 = vector.extract_strided_slice %20 {offsets = [0, 0], sizes = [16, 1], strides = [1, 1]} : vector<16x16xf32> to vector<16x1xf32>
    %22 = vector.shape_cast %21 : vector<16x1xf32> to vector<16x1xf32>
    %23 = vector.broadcast %22 : vector<16x1xf32> to vector<16x4xf32>
    %24 = vector.extract_strided_slice %20 {offsets = [0, 15], sizes = [16, 1], strides = [1, 1]} : vector<16x16xf32> to vector<16x1xf32>
    %25 = vector.shape_cast %24 : vector<16x1xf32> to vector<16x1xf32>
    %26 = vector.broadcast %25 : vector<16x1xf32> to vector<16x4xf32>
    %27 = tpu.concatenate %23, %20, %26 in 1 : vector<16x4xf32>, vector<16x16xf32>, vector<16x4xf32> -> vector<16x24xf32>
    %c0_6 = arith.constant 0 : index
    %c4 = arith.constant 4 : index
    %c0_7 = arith.constant 0 : index
    %28 = vector.load %arg3[%c0_6, %c4, %c0_7] : memref<2x24x128xf32, #tpu.memory_space<vmem>>, vector<1x16x24xf32>
    %29 = vector.shape_cast %28 : vector<1x16x24xf32> to vector<16x24xf32>
    %30 = vector.shape_cast %27 : vector<16x24xf32> to vector<1x16x24xf32>
    tpu.vector_store %arg3[%c0_6, %c4, %c0_7], %30 {strides = array<i32>} : memref<2x24x128xf32, #tpu.memory_space<vmem>>, vector<1x16x24xf32>,
    %31 = vector.extract_strided_slice %27 {offsets = [0, 0], sizes = [1, 24], strides = [1, 1]} : vector<16x24xf32> to vector<1x24xf32>
    %32 = vector.shape_cast %31 : vector<1x24xf32> to vector<1x24xf32>
    %33 = vector.broadcast %32 : vector<1x24xf32> to vector<4x24xf32>
    %c0_8 = arith.constant 0 : index
    %c0_9 = arith.constant 0 : index
    %c0_10 = arith.constant 0 : index
    %34 = vector.load %arg3[%c0_8, %c0_9, %c0_10] : memref<2x24x128xf32, #tpu.memory_space<vmem>>, vector<1x4x24xf32>
    %35 = vector.shape_cast %34 : vector<1x4x24xf32> to vector<4x24xf32>
    %36 = vector.shape_cast %33 : vector<4x24xf32> to vector<1x4x24xf32>
    tpu.vector_store %arg3[%c0_8, %c0_9, %c0_10], %36 {strides = array<i32>} : memref<2x24x128xf32, #tpu.memory_space<vmem>>, vector<1x4x24xf32>,
    %37 = vector.extract_strided_slice %27 {offsets = [15, 0], sizes = [1, 24], strides = [1, 1]} : vector<16x24xf32> to vector<1x24xf32>
    %38 = vector.shape_cast %37 : vector<1x24xf32> to vector<1x24xf32>
    %39 = vector.broadcast %38 : vector<1x24xf32> to vector<4x24xf32>
    %c0_11 = arith.constant 0 : index
    %c20 = arith.constant 20 : index
    %c0_12 = arith.constant 0 : index
    %40 = vector.load %arg3[%c0_11, %c20, %c0_12] : memref<2x24x128xf32, #tpu.memory_space<vmem>>, vector<1x4x24xf32>
    %41 = vector.shape_cast %40 : vector<1x4x24xf32> to vector<4x24xf32>
    %42 = vector.shape_cast %39 : vector<4x24xf32> to vector<1x4x24xf32>
    tpu.vector_store %arg3[%c0_11, %c20, %c0_12], %42 {strides = array<i32>} : memref<2x24x128xf32, #tpu.memory_space<vmem>>, vector<1x4x24xf32>,
    %c0_13 = arith.constant 0 : index
    %c1 = arith.constant 1 : index
    %c0_14 = arith.constant 0 : index
    %c0_15 = arith.constant 0 : index
    %43 = vector.load %arg1[%c0_13, %c1, %c0_14, %c0_15] : memref<2x4x16x16xf32, #tpu.memory_space<vmem>>, vector<1x1x16x16xf32>
    %44 = vector.shape_cast %43 : vector<1x1x16x16xf32> to vector<16x16xf32>
    %45 = vector.extract_strided_slice %44 {offsets = [0, 0], sizes = [16, 1], strides = [1, 1]} : vector<16x16xf32> to vector<16x1xf32>
    %46 = vector.shape_cast %45 : vector<16x1xf32> to vector<16x1xf32>
    %47 = vector.broadcast %46 : vector<16x1xf32> to vector<16x4xf32>
    %48 = vector.extract_strided_slice %44 {offsets = [0, 15], sizes = [16, 1], strides = [1, 1]} : vector<16x16xf32> to vector<16x1xf32>
    %49 = vector.shape_cast %48 : vector<16x1xf32> to vector<16x1xf32>
    %50 = vector.broadcast %49 : vector<16x1xf32> to vector<16x4xf32>
    %51 = tpu.concatenate %47, %44, %50 in 1 : vector<16x4xf32>, vector<16x16xf32>, vector<16x4xf32> -> vector<16x24xf32>
    %c0_16 = arith.constant 0 : index
    %c4_17 = arith.constant 4 : index
    %c32 = arith.constant 32 : index
    %52 = vector.load %arg3[%c0_16, %c4_17, %c32] : memref<2x24x128xf32, #tpu.memory_space<vmem>>, vector<1x16x24xf32>
    %53 = vector.shape_cast %52 : vector<1x16x24xf32> to vector<16x24xf32>
    %54 = vector.shape_cast %51 : vector<16x24xf32> to vector<1x16x24xf32>
    tpu.vector_store %arg3[%c0_16, %c4_17, %c32], %54 {strides = array<i32>} : memref<2x24x128xf32, #tpu.memory_space<vmem>>, vector<1x16x24xf32>,
    %55 = vector.extract_strided_slice %51 {offsets = [0, 0], sizes = [1, 24], strides = [1, 1]} : vector<16x24xf32> to vector<1x24xf32>
    %56 = vector.shape_cast %55 : vector<1x24xf32> to vector<1x24xf32>
    %57 = vector.broadcast %56 : vector<1x24xf32> to vector<4x24xf32>
    %c0_18 = arith.constant 0 : index
    %c0_19 = arith.constant 0 : index
    %c32_20 = arith.constant 32 : index
    %58 = vector.load %arg3[%c0_18, %c0_19, %c32_20] : memref<2x24x128xf32, #tpu.memory_space<vmem>>, vector<1x4x24xf32>
    %59 = vector.shape_cast %58 : vector<1x4x24xf32> to vector<4x24xf32>
    %60 = vector.shape_cast %57 : vector<4x24xf32> to vector<1x4x24xf32>
    tpu.vector_store %arg3[%c0_18, %c0_19, %c32_20], %60 {strides = array<i32>} : memref<2x24x128xf32, #tpu.memory_space<vmem>>, vector<1x4x24xf32>,
    %61 = vector.extract_strided_slice %51 {offsets = [15, 0], sizes = [1, 24], strides = [1, 1]} : vector<16x24xf32> to vector<1x24xf32>
    %62 = vector.shape_cast %61 : vector<1x24xf32> to vector<1x24xf32>
    %63 = vector.broadcast %62 : vector<1x24xf32> to vector<4x24xf32>
    %c0_21 = arith.constant 0 : index
    %c20_22 = arith.constant 20 : index
    %c32_23 = arith.constant 32 : index
    %64 = vector.load %arg3[%c0_21, %c20_22, %c32_23] : memref<2x24x128xf32, #tpu.memory_space<vmem>>, vector<1x4x24xf32>
    %65 = vector.shape_cast %64 : vector<1x4x24xf32> to vector<4x24xf32>
    %66 = vector.shape_cast %63 : vector<4x24xf32> to vector<1x4x24xf32>
    tpu.vector_store %arg3[%c0_21, %c20_22, %c32_23], %66 {strides = array<i32>} : memref<2x24x128xf32, #tpu.memory_space<vmem>>, vector<1x4x24xf32>,
    %c0_24 = arith.constant 0 : index
    %c2 = arith.constant 2 : index
    %c0_25 = arith.constant 0 : index
    %c0_26 = arith.constant 0 : index
    %67 = vector.load %arg1[%c0_24, %c2, %c0_25, %c0_26] : memref<2x4x16x16xf32, #tpu.memory_space<vmem>>, vector<1x1x16x16xf32>
    %68 = vector.shape_cast %67 : vector<1x1x16x16xf32> to vector<16x16xf32>
    %69 = vector.extract_strided_slice %68 {offsets = [0, 0], sizes = [16, 1], strides = [1, 1]} : vector<16x16xf32> to vector<16x1xf32>
    %70 = vector.shape_cast %69 : vector<16x1xf32> to vector<16x1xf32>
    %71 = vector.broadcast %70 : vector<16x1xf32> to vector<16x4xf32>
    %72 = vector.extract_strided_slice %68 {offsets = [0, 15], sizes = [16, 1], strides = [1, 1]} : vector<16x16xf32> to vector<16x1xf32>
    %73 = vector.shape_cast %72 : vector<16x1xf32> to vector<16x1xf32>
    %74 = vector.broadcast %73 : vector<16x1xf32> to vector<16x4xf32>
    %75 = tpu.concatenate %71, %68, %74 in 1 : vector<16x4xf32>, vector<16x16xf32>, vector<16x4xf32> -> vector<16x24xf32>
    %c0_27 = arith.constant 0 : index
    %c4_28 = arith.constant 4 : index
    %c64 = arith.constant 64 : index
    %76 = vector.load %arg3[%c0_27, %c4_28, %c64] : memref<2x24x128xf32, #tpu.memory_space<vmem>>, vector<1x16x24xf32>
    %77 = vector.shape_cast %76 : vector<1x16x24xf32> to vector<16x24xf32>
    %78 = vector.shape_cast %75 : vector<16x24xf32> to vector<1x16x24xf32>
    tpu.vector_store %arg3[%c0_27, %c4_28, %c64], %78 {strides = array<i32>} : memref<2x24x128xf32, #tpu.memory_space<vmem>>, vector<1x16x24xf32>,
    %79 = vector.extract_strided_slice %75 {offsets = [0, 0], sizes = [1, 24], strides = [1, 1]} : vector<16x24xf32> to vector<1x24xf32>
    %80 = vector.shape_cast %79 : vector<1x24xf32> to vector<1x24xf32>
    %81 = vector.broadcast %80 : vector<1x24xf32> to vector<4x24xf32>
    %c0_29 = arith.constant 0 : index
    %c0_30 = arith.constant 0 : index
    %c64_31 = arith.constant 64 : index
    %82 = vector.load %arg3[%c0_29, %c0_30, %c64_31] : memref<2x24x128xf32, #tpu.memory_space<vmem>>, vector<1x4x24xf32>
    %83 = vector.shape_cast %82 : vector<1x4x24xf32> to vector<4x24xf32>
    %84 = vector.shape_cast %81 : vector<4x24xf32> to vector<1x4x24xf32>
    tpu.vector_store %arg3[%c0_29, %c0_30, %c64_31], %84 {strides = array<i32>} : memref<2x24x128xf32, #tpu.memory_space<vmem>>, vector<1x4x24xf32>,
    %85 = vector.extract_strided_slice %75 {offsets = [15, 0], sizes = [1, 24], strides = [1, 1]} : vector<16x24xf32> to vector<1x24xf32>
    %86 = vector.shape_cast %85 : vector<1x24xf32> to vector<1x24xf32>
    %87 = vector.broadcast %86 : vector<1x24xf32> to vector<4x24xf32>
    %c0_32 = arith.constant 0 : index
    %c20_33 = arith.constant 20 : index
    %c64_34 = arith.constant 64 : index
    %88 = vector.load %arg3[%c0_32, %c20_33, %c64_34] : memref<2x24x128xf32, #tpu.memory_space<vmem>>, vector<1x4x24xf32>
    %89 = vector.shape_cast %88 : vector<1x4x24xf32> to vector<4x24xf32>
    %90 = vector.shape_cast %87 : vector<4x24xf32> to vector<1x4x24xf32>
    tpu.vector_store %arg3[%c0_32, %c20_33, %c64_34], %90 {strides = array<i32>} : memref<2x24x128xf32, #tpu.memory_space<vmem>>, vector<1x4x24xf32>,
    %c0_35 = arith.constant 0 : index
    %c3 = arith.constant 3 : index
    %c0_36 = arith.constant 0 : index
    %c0_37 = arith.constant 0 : index
    %91 = vector.load %arg1[%c0_35, %c3, %c0_36, %c0_37] : memref<2x4x16x16xf32, #tpu.memory_space<vmem>>, vector<1x1x16x16xf32>
    %92 = vector.shape_cast %91 : vector<1x1x16x16xf32> to vector<16x16xf32>
    %93 = vector.extract_strided_slice %92 {offsets = [0, 0], sizes = [16, 1], strides = [1, 1]} : vector<16x16xf32> to vector<16x1xf32>
    %94 = vector.shape_cast %93 : vector<16x1xf32> to vector<16x1xf32>
    %95 = vector.broadcast %94 : vector<16x1xf32> to vector<16x4xf32>
    %96 = vector.extract_strided_slice %92 {offsets = [0, 15], sizes = [16, 1], strides = [1, 1]} : vector<16x16xf32> to vector<16x1xf32>
    %97 = vector.shape_cast %96 : vector<16x1xf32> to vector<16x1xf32>
    %98 = vector.broadcast %97 : vector<16x1xf32> to vector<16x4xf32>
    %99 = tpu.concatenate %95, %92, %98 in 1 : vector<16x4xf32>, vector<16x16xf32>, vector<16x4xf32> -> vector<16x24xf32>
    %c0_38 = arith.constant 0 : index
    %c4_39 = arith.constant 4 : index
    %c96 = arith.constant 96 : index
    %100 = vector.load %arg3[%c0_38, %c4_39, %c96] : memref<2x24x128xf32, #tpu.memory_space<vmem>>, vector<1x16x24xf32>
    %101 = vector.shape_cast %100 : vector<1x16x24xf32> to vector<16x24xf32>
    %102 = vector.shape_cast %99 : vector<16x24xf32> to vector<1x16x24xf32>
    tpu.vector_store %arg3[%c0_38, %c4_39, %c96], %102 {strides = array<i32>} : memref<2x24x128xf32, #tpu.memory_space<vmem>>, vector<1x16x24xf32>,
    %103 = vector.extract_strided_slice %99 {offsets = [0, 0], sizes = [1, 24], strides = [1, 1]} : vector<16x24xf32> to vector<1x24xf32>
    %104 = vector.shape_cast %103 : vector<1x24xf32> to vector<1x24xf32>
    %105 = vector.broadcast %104 : vector<1x24xf32> to vector<4x24xf32>
    %c0_40 = arith.constant 0 : index
    %c0_41 = arith.constant 0 : index
    %c96_42 = arith.constant 96 : index
    %106 = vector.load %arg3[%c0_40, %c0_41, %c96_42] : memref<2x24x128xf32, #tpu.memory_space<vmem>>, vector<1x4x24xf32>
    %107 = vector.shape_cast %106 : vector<1x4x24xf32> to vector<4x24xf32>
    %108 = vector.shape_cast %105 : vector<4x24xf32> to vector<1x4x24xf32>
    tpu.vector_store %arg3[%c0_40, %c0_41, %c96_42], %108 {strides = array<i32>} : memref<2x24x128xf32, #tpu.memory_space<vmem>>, vector<1x4x24xf32>,
    %109 = vector.extract_strided_slice %99 {offsets = [15, 0], sizes = [1, 24], strides = [1, 1]} : vector<16x24xf32> to vector<1x24xf32>
    %110 = vector.shape_cast %109 : vector<1x24xf32> to vector<1x24xf32>
    %111 = vector.broadcast %110 : vector<1x24xf32> to vector<4x24xf32>
    %c0_43 = arith.constant 0 : index
    %c20_44 = arith.constant 20 : index
    %c96_45 = arith.constant 96 : index
    %112 = vector.load %arg3[%c0_43, %c20_44, %c96_45] : memref<2x24x128xf32, #tpu.memory_space<vmem>>, vector<1x4x24xf32>
    %113 = vector.shape_cast %112 : vector<1x4x24xf32> to vector<4x24xf32>
    %114 = vector.shape_cast %111 : vector<4x24xf32> to vector<1x4x24xf32>
    tpu.vector_store %arg3[%c0_43, %c20_44, %c96_45], %114 {strides = array<i32>} : memref<2x24x128xf32, #tpu.memory_space<vmem>>, vector<1x4x24xf32>,
    %c0_46 = arith.constant 0 : index
    %c0_47 = arith.constant 0 : index
    %c0_48 = arith.constant 0 : index
    %115 = vector.load %arg3[%c0_46, %c0_47, %c0_48] : memref<2x24x128xf32, #tpu.memory_space<vmem>>, vector<1x24x128xf32>
    %116 = vector.shape_cast %115 : vector<1x24x128xf32> to vector<24x128xf32>
    %c127_i32 = arith.constant 127 : i32
    %117 = tpu.dynamic_rotate %116 by %c127_i32 dim 1 : vector<24x128xf32>, i32 -> vector<24x128xf32>
    %118 = arith.addf %116, %117 : vector<24x128xf32>
    %c126_i32 = arith.constant 126 : i32
    %119 = tpu.dynamic_rotate %118 by %c126_i32 dim 1 : vector<24x128xf32>, i32 -> vector<24x128xf32>
    %120 = arith.addf %118, %119 : vector<24x128xf32>
    %c124_i32 = arith.constant 124 : i32
    %121 = tpu.dynamic_rotate %120 by %c124_i32 dim 1 : vector<24x128xf32>, i32 -> vector<24x128xf32>
    %122 = arith.addf %120, %121 : vector<24x128xf32>
    %c120_i32 = arith.constant 120 : i32
    %123 = tpu.dynamic_rotate %116 by %c120_i32 dim 1 : vector<24x128xf32>, i32 -> vector<24x128xf32>
    %124 = arith.addf %122, %123 : vector<24x128xf32>
    %c23_i32 = arith.constant 23 : i32
    %125 = tpu.dynamic_rotate %124 by %c23_i32 dim 0 : vector<24x128xf32>, i32 -> vector<24x128xf32>
    %126 = arith.addf %124, %125 : vector<24x128xf32>
    %c22_i32 = arith.constant 22 : i32
    %127 = tpu.dynamic_rotate %126 by %c22_i32 dim 0 : vector<24x128xf32>, i32 -> vector<24x128xf32>
    %128 = arith.addf %126, %127 : vector<24x128xf32>
    %c20_i32 = arith.constant 20 : i32
    %129 = tpu.dynamic_rotate %128 by %c20_i32 dim 0 : vector<24x128xf32>, i32 -> vector<24x128xf32>
    %130 = arith.addf %128, %129 : vector<24x128xf32>
    %c16_i32_49 = arith.constant 16 : i32
    %131 = tpu.dynamic_rotate %124 by %c16_i32_49 dim 0 : vector<24x128xf32>, i32 -> vector<24x128xf32>
    %132 = arith.addf %130, %131 : vector<24x128xf32>
    %c0_50 = arith.constant 0 : index
    %c4_51 = arith.constant 4 : index
    %c0_52 = arith.constant 0 : index
    %133 = vector.load %arg3[%c0_50, %c4_51, %c0_52] : memref<2x24x128xf32, #tpu.memory_space<vmem>>, vector<1x16x128xf32>
    %134 = vector.shape_cast %133 : vector<1x16x128xf32> to vector<16x128xf32>
    %c124_i32_53 = arith.constant 124 : i32
    %135 = tpu.dynamic_rotate %134 by %c124_i32_53 dim 1 : vector<16x128xf32>, i32 -> vector<16x128xf32>
    %136 = vector.extract_strided_slice %132 {offsets = [0, 0], sizes = [16, 128], strides = [1, 1]} : vector<24x128xf32> to vector<16x128xf32>
    %cst = arith.constant 0.0123456791 : f32
    %137 = vector.broadcast %cst : f32 to vector<16x128xf32>
    %138 = arith.mulf %136, %137 : vector<16x128xf32>
    %139 = arith.subf %138, %135 : vector<16x128xf32>
    %140 = vector.extract_strided_slice %139 {offsets = [0, 0], sizes = [16, 16], strides = [1, 1]} : vector<16x128xf32> to vector<16x16xf32>
    %141 = vector.extract_strided_slice %140 {offsets = [0, 0], sizes = [16, 1], strides = [1, 1]} : vector<16x16xf32> to vector<16x1xf32>
    %142 = vector.shape_cast %141 : vector<16x1xf32> to vector<16x1xf32>
    %143 = vector.broadcast %142 : vector<16x1xf32> to vector<16x3xf32>
    %144 = vector.extract_strided_slice %140 {offsets = [0, 15], sizes = [16, 1], strides = [1, 1]} : vector<16x16xf32> to vector<16x1xf32>
    %145 = vector.shape_cast %144 : vector<16x1xf32> to vector<16x1xf32>
    %146 = vector.broadcast %145 : vector<16x1xf32> to vector<16x3xf32>
    %147 = tpu.concatenate %143, %140, %146 in 1 : vector<16x3xf32>, vector<16x16xf32>, vector<16x3xf32> -> vector<16x22xf32>
    %c0_54 = arith.constant 0 : index
    %c3_55 = arith.constant 3 : index
    %c0_56 = arith.constant 0 : index
    %148 = vector.load %arg4[%c0_54, %c3_55, %c0_56] : memref<2x24x128xf32, #tpu.memory_space<vmem>>, vector<1x16x22xf32>
    %149 = vector.shape_cast %148 : vector<1x16x22xf32> to vector<16x22xf32>
    %150 = vector.shape_cast %147 : vector<16x22xf32> to vector<1x16x22xf32>
    tpu.vector_store %arg4[%c0_54, %c3_55, %c0_56], %150 {strides = array<i32>} : memref<2x24x128xf32, #tpu.memory_space<vmem>>, vector<1x16x22xf32>,
    %151 = vector.extract_strided_slice %147 {offsets = [0, 0], sizes = [1, 22], strides = [1, 1]} : vector<16x22xf32> to vector<1x22xf32>
    %152 = vector.shape_cast %151 : vector<1x22xf32> to vector<1x22xf32>
    %153 = vector.broadcast %152 : vector<1x22xf32> to vector<3x22xf32>
    %c0_57 = arith.constant 0 : index
    %c0_58 = arith.constant 0 : index
    %c0_59 = arith.constant 0 : index
    %154 = vector.load %arg4[%c0_57, %c0_58, %c0_59] : memref<2x24x128xf32, #tpu.memory_space<vmem>>, vector<1x3x22xf32>
    %155 = vector.shape_cast %154 : vector<1x3x22xf32> to vector<3x22xf32>
    %156 = vector.shape_cast %153 : vector<3x22xf32> to vector<1x3x22xf32>
    tpu.vector_store %arg4[%c0_57, %c0_58, %c0_59], %156 {strides = array<i32>} : memref<2x24x128xf32, #tpu.memory_space<vmem>>, vector<1x3x22xf32>,
    %157 = vector.extract_strided_slice %147 {offsets = [15, 0], sizes = [1, 22], strides = [1, 1]} : vector<16x22xf32> to vector<1x22xf32>
    %158 = vector.shape_cast %157 : vector<1x22xf32> to vector<1x22xf32>
    %159 = vector.broadcast %158 : vector<1x22xf32> to vector<3x22xf32>
    %c0_60 = arith.constant 0 : index
    %c19 = arith.constant 19 : index
    %c0_61 = arith.constant 0 : index
    %160 = vector.load %arg4[%c0_60, %c19, %c0_61] : memref<2x24x128xf32, #tpu.memory_space<vmem>>, vector<1x3x22xf32>
    %161 = vector.shape_cast %160 : vector<1x3x22xf32> to vector<3x22xf32>
    %162 = vector.shape_cast %159 : vector<3x22xf32> to vector<1x3x22xf32>
    tpu.vector_store %arg4[%c0_60, %c19, %c0_61], %162 {strides = array<i32>} : memref<2x24x128xf32, #tpu.memory_space<vmem>>, vector<1x3x22xf32>,
    %163 = vector.extract_strided_slice %139 {offsets = [0, 32], sizes = [16, 16], strides = [1, 1]} : vector<16x128xf32> to vector<16x16xf32>
    %164 = vector.extract_strided_slice %163 {offsets = [0, 0], sizes = [16, 1], strides = [1, 1]} : vector<16x16xf32> to vector<16x1xf32>
    %165 = vector.shape_cast %164 : vector<16x1xf32> to vector<16x1xf32>
    %166 = vector.broadcast %165 : vector<16x1xf32> to vector<16x3xf32>
    %167 = vector.extract_strided_slice %163 {offsets = [0, 15], sizes = [16, 1], strides = [1, 1]} : vector<16x16xf32> to vector<16x1xf32>
    %168 = vector.shape_cast %167 : vector<16x1xf32> to vector<16x1xf32>
    %169 = vector.broadcast %168 : vector<16x1xf32> to vector<16x3xf32>
    %170 = tpu.concatenate %166, %163, %169 in 1 : vector<16x3xf32>, vector<16x16xf32>, vector<16x3xf32> -> vector<16x22xf32>
    %c0_62 = arith.constant 0 : index
    %c3_63 = arith.constant 3 : index
    %c32_64 = arith.constant 32 : index
    %171 = vector.load %arg4[%c0_62, %c3_63, %c32_64] : memref<2x24x128xf32, #tpu.memory_space<vmem>>, vector<1x16x22xf32>
    %172 = vector.shape_cast %171 : vector<1x16x22xf32> to vector<16x22xf32>
    %173 = vector.shape_cast %170 : vector<16x22xf32> to vector<1x16x22xf32>
    tpu.vector_store %arg4[%c0_62, %c3_63, %c32_64], %173 {strides = array<i32>} : memref<2x24x128xf32, #tpu.memory_space<vmem>>, vector<1x16x22xf32>,
    %174 = vector.extract_strided_slice %170 {offsets = [0, 0], sizes = [1, 22], strides = [1, 1]} : vector<16x22xf32> to vector<1x22xf32>
    %175 = vector.shape_cast %174 : vector<1x22xf32> to vector<1x22xf32>
    %176 = vector.broadcast %175 : vector<1x22xf32> to vector<3x22xf32>
    %c0_65 = arith.constant 0 : index
    %c0_66 = arith.constant 0 : index
    %c32_67 = arith.constant 32 : index
    %177 = vector.load %arg4[%c0_65, %c0_66, %c32_67] : memref<2x24x128xf32, #tpu.memory_space<vmem>>, vector<1x3x22xf32>
    %178 = vector.shape_cast %177 : vector<1x3x22xf32> to vector<3x22xf32>
    %179 = vector.shape_cast %176 : vector<3x22xf32> to vector<1x3x22xf32>
    tpu.vector_store %arg4[%c0_65, %c0_66, %c32_67], %179 {strides = array<i32>} : memref<2x24x128xf32, #tpu.memory_space<vmem>>, vector<1x3x22xf32>,
    %180 = vector.extract_strided_slice %170 {offsets = [15, 0], sizes = [1, 22], strides = [1, 1]} : vector<16x22xf32> to vector<1x22xf32>
    %181 = vector.shape_cast %180 : vector<1x22xf32> to vector<1x22xf32>
    %182 = vector.broadcast %181 : vector<1x22xf32> to vector<3x22xf32>
    %c0_68 = arith.constant 0 : index
    %c19_69 = arith.constant 19 : index
    %c32_70 = arith.constant 32 : index
    %183 = vector.load %arg4[%c0_68, %c19_69, %c32_70] : memref<2x24x128xf32, #tpu.memory_space<vmem>>, vector<1x3x22xf32>
    %184 = vector.shape_cast %183 : vector<1x3x22xf32> to vector<3x22xf32>
    %185 = vector.shape_cast %182 : vector<3x22xf32> to vector<1x3x22xf32>
    tpu.vector_store %arg4[%c0_68, %c19_69, %c32_70], %185 {strides = array<i32>} : memref<2x24x128xf32, #tpu.memory_space<vmem>>, vector<1x3x22xf32>,
    %186 = vector.extract_strided_slice %139 {offsets = [0, 64], sizes = [16, 16], strides = [1, 1]} : vector<16x128xf32> to vector<16x16xf32>
    %187 = vector.extract_strided_slice %186 {offsets = [0, 0], sizes = [16, 1], strides = [1, 1]} : vector<16x16xf32> to vector<16x1xf32>
    %188 = vector.shape_cast %187 : vector<16x1xf32> to vector<16x1xf32>
    %189 = vector.broadcast %188 : vector<16x1xf32> to vector<16x3xf32>
    %190 = vector.extract_strided_slice %186 {offsets = [0, 15], sizes = [16, 1], strides = [1, 1]} : vector<16x16xf32> to vector<16x1xf32>
    %191 = vector.shape_cast %190 : vector<16x1xf32> to vector<16x1xf32>
    %192 = vector.broadcast %191 : vector<16x1xf32> to vector<16x3xf32>
    %193 = tpu.concatenate %189, %186, %192 in 1 : vector<16x3xf32>, vector<16x16xf32>, vector<16x3xf32> -> vector<16x22xf32>
    %c0_71 = arith.constant 0 : index
    %c3_72 = arith.constant 3 : index
    %c64_73 = arith.constant 64 : index
    %194 = vector.load %arg4[%c0_71, %c3_72, %c64_73] : memref<2x24x128xf32, #tpu.memory_space<vmem>>, vector<1x16x22xf32>
    %195 = vector.shape_cast %194 : vector<1x16x22xf32> to vector<16x22xf32>
    %196 = vector.shape_cast %193 : vector<16x22xf32> to vector<1x16x22xf32>
    tpu.vector_store %arg4[%c0_71, %c3_72, %c64_73], %196 {strides = array<i32>} : memref<2x24x128xf32, #tpu.memory_space<vmem>>, vector<1x16x22xf32>,
    %197 = vector.extract_strided_slice %193 {offsets = [0, 0], sizes = [1, 22], strides = [1, 1]} : vector<16x22xf32> to vector<1x22xf32>
    %198 = vector.shape_cast %197 : vector<1x22xf32> to vector<1x22xf32>
    %199 = vector.broadcast %198 : vector<1x22xf32> to vector<3x22xf32>
    %c0_74 = arith.constant 0 : index
    %c0_75 = arith.constant 0 : index
    %c64_76 = arith.constant 64 : index
    %200 = vector.load %arg4[%c0_74, %c0_75, %c64_76] : memref<2x24x128xf32, #tpu.memory_space<vmem>>, vector<1x3x22xf32>
    %201 = vector.shape_cast %200 : vector<1x3x22xf32> to vector<3x22xf32>
    %202 = vector.shape_cast %199 : vector<3x22xf32> to vector<1x3x22xf32>
    tpu.vector_store %arg4[%c0_74, %c0_75, %c64_76], %202 {strides = array<i32>} : memref<2x24x128xf32, #tpu.memory_space<vmem>>, vector<1x3x22xf32>,
    %203 = vector.extract_strided_slice %193 {offsets = [15, 0], sizes = [1, 22], strides = [1, 1]} : vector<16x22xf32> to vector<1x22xf32>
    %204 = vector.shape_cast %203 : vector<1x22xf32> to vector<1x22xf32>
    %205 = vector.broadcast %204 : vector<1x22xf32> to vector<3x22xf32>
    %c0_77 = arith.constant 0 : index
    %c19_78 = arith.constant 19 : index
    %c64_79 = arith.constant 64 : index
    %206 = vector.load %arg4[%c0_77, %c19_78, %c64_79] : memref<2x24x128xf32, #tpu.memory_space<vmem>>, vector<1x3x22xf32>
    %207 = vector.shape_cast %206 : vector<1x3x22xf32> to vector<3x22xf32>
    %208 = vector.shape_cast %205 : vector<3x22xf32> to vector<1x3x22xf32>
    tpu.vector_store %arg4[%c0_77, %c19_78, %c64_79], %208 {strides = array<i32>} : memref<2x24x128xf32, #tpu.memory_space<vmem>>, vector<1x3x22xf32>,
    %209 = vector.extract_strided_slice %139 {offsets = [0, 96], sizes = [16, 16], strides = [1, 1]} : vector<16x128xf32> to vector<16x16xf32>
    %210 = vector.extract_strided_slice %209 {offsets = [0, 0], sizes = [16, 1], strides = [1, 1]} : vector<16x16xf32> to vector<16x1xf32>
    %211 = vector.shape_cast %210 : vector<16x1xf32> to vector<16x1xf32>
    %212 = vector.broadcast %211 : vector<16x1xf32> to vector<16x3xf32>
    %213 = vector.extract_strided_slice %209 {offsets = [0, 15], sizes = [16, 1], strides = [1, 1]} : vector<16x16xf32> to vector<16x1xf32>
    %214 = vector.shape_cast %213 : vector<16x1xf32> to vector<16x1xf32>
    %215 = vector.broadcast %214 : vector<16x1xf32> to vector<16x3xf32>
    %216 = tpu.concatenate %212, %209, %215 in 1 : vector<16x3xf32>, vector<16x16xf32>, vector<16x3xf32> -> vector<16x22xf32>
    %c0_80 = arith.constant 0 : index
    %c3_81 = arith.constant 3 : index
    %c96_82 = arith.constant 96 : index
    %217 = vector.load %arg4[%c0_80, %c3_81, %c96_82] : memref<2x24x128xf32, #tpu.memory_space<vmem>>, vector<1x16x22xf32>
    %218 = vector.shape_cast %217 : vector<1x16x22xf32> to vector<16x22xf32>
    %219 = vector.shape_cast %216 : vector<16x22xf32> to vector<1x16x22xf32>
    tpu.vector_store %arg4[%c0_80, %c3_81, %c96_82], %219 {strides = array<i32>} : memref<2x24x128xf32, #tpu.memory_space<vmem>>, vector<1x16x22xf32>,
    %220 = vector.extract_strided_slice %216 {offsets = [0, 0], sizes = [1, 22], strides = [1, 1]} : vector<16x22xf32> to vector<1x22xf32>
    %221 = vector.shape_cast %220 : vector<1x22xf32> to vector<1x22xf32>
    %222 = vector.broadcast %221 : vector<1x22xf32> to vector<3x22xf32>
    %c0_83 = arith.constant 0 : index
    %c0_84 = arith.constant 0 : index
    %c96_85 = arith.constant 96 : index
    %223 = vector.load %arg4[%c0_83, %c0_84, %c96_85] : memref<2x24x128xf32, #tpu.memory_space<vmem>>, vector<1x3x22xf32>
    %224 = vector.shape_cast %223 : vector<1x3x22xf32> to vector<3x22xf32>
    %225 = vector.shape_cast %222 : vector<3x22xf32> to vector<1x3x22xf32>
    tpu.vector_store %arg4[%c0_83, %c0_84, %c96_85], %225 {strides = array<i32>} : memref<2x24x128xf32, #tpu.memory_space<vmem>>, vector<1x3x22xf32>,
    %226 = vector.extract_strided_slice %216 {offsets = [15, 0], sizes = [1, 22], strides = [1, 1]} : vector<16x22xf32> to vector<1x22xf32>
    %227 = vector.shape_cast %226 : vector<1x22xf32> to vector<1x22xf32>
    %228 = vector.broadcast %227 : vector<1x22xf32> to vector<3x22xf32>
    %c0_86 = arith.constant 0 : index
    %c19_87 = arith.constant 19 : index
    %c96_88 = arith.constant 96 : index
    %229 = vector.load %arg4[%c0_86, %c19_87, %c96_88] : memref<2x24x128xf32, #tpu.memory_space<vmem>>, vector<1x3x22xf32>
    %230 = vector.shape_cast %229 : vector<1x3x22xf32> to vector<3x22xf32>
    %231 = vector.shape_cast %228 : vector<3x22xf32> to vector<1x3x22xf32>
    tpu.vector_store %arg4[%c0_86, %c19_87, %c96_88], %231 {strides = array<i32>} : memref<2x24x128xf32, #tpu.memory_space<vmem>>, vector<1x3x22xf32>,
    %c0_89 = arith.constant 0 : index
    %c0_90 = arith.constant 0 : index
    %c0_91 = arith.constant 0 : index
    %232 = vector.load %arg4[%c0_89, %c0_90, %c0_91] : memref<2x24x128xf32, #tpu.memory_space<vmem>>, vector<1x16x128xf32>
    %233 = vector.shape_cast %232 : vector<1x16x128xf32> to vector<16x128xf32>
    %c0_92 = arith.constant 0 : index
    %c1_93 = arith.constant 1 : index
    %c0_94 = arith.constant 0 : index
    %234 = vector.load %arg4[%c0_92, %c1_93, %c0_94] : memref<2x24x128xf32, #tpu.memory_space<vmem>>, vector<1x16x128xf32>
    %235 = vector.shape_cast %234 : vector<1x16x128xf32> to vector<16x128xf32>
    %c0_95 = arith.constant 0 : index
    %c2_96 = arith.constant 2 : index
    %c0_97 = arith.constant 0 : index
    %236 = vector.load %arg4[%c0_95, %c2_96, %c0_97] : memref<2x24x128xf32, #tpu.memory_space<vmem>>, vector<1x16x128xf32>
    %237 = vector.shape_cast %236 : vector<1x16x128xf32> to vector<16x128xf32>
    %c0_98 = arith.constant 0 : index
    %c3_99 = arith.constant 3 : index
    %c0_100 = arith.constant 0 : index
    %238 = vector.load %arg4[%c0_98, %c3_99, %c0_100] : memref<2x24x128xf32, #tpu.memory_space<vmem>>, vector<1x16x128xf32>
    %239 = vector.shape_cast %238 : vector<1x16x128xf32> to vector<16x128xf32>
    %c0_101 = arith.constant 0 : index
    %c4_102 = arith.constant 4 : index
    %c0_103 = arith.constant 0 : index
    %240 = vector.load %arg4[%c0_101, %c4_102, %c0_103] : memref<2x24x128xf32, #tpu.memory_space<vmem>>, vector<1x16x128xf32>
    %241 = vector.shape_cast %240 : vector<1x16x128xf32> to vector<16x128xf32>
    %c0_104 = arith.constant 0 : index
    %c5 = arith.constant 5 : index
    %c0_105 = arith.constant 0 : index
    %242 = vector.load %arg4[%c0_104, %c5, %c0_105] : memref<2x24x128xf32, #tpu.memory_space<vmem>>, vector<1x16x128xf32>
    %243 = vector.shape_cast %242 : vector<1x16x128xf32> to vector<16x128xf32>
    %c0_106 = arith.constant 0 : index
    %c6 = arith.constant 6 : index
    %c0_107 = arith.constant 0 : index
    %244 = vector.load %arg4[%c0_106, %c6, %c0_107] : memref<2x24x128xf32, #tpu.memory_space<vmem>>, vector<1x16x128xf32>
    %245 = vector.shape_cast %244 : vector<1x16x128xf32> to vector<16x128xf32>
    %c127_i32_108 = arith.constant 127 : i32
    %246 = tpu.dynamic_rotate %233 by %c127_i32_108 dim 1 : vector<16x128xf32>, i32 -> vector<16x128xf32>
    %c126_i32_109 = arith.constant 126 : i32
    %247 = tpu.dynamic_rotate %233 by %c126_i32_109 dim 1 : vector<16x128xf32>, i32 -> vector<16x128xf32>
    %c125_i32 = arith.constant 125 : i32
    %248 = tpu.dynamic_rotate %233 by %c125_i32 dim 1 : vector<16x128xf32>, i32 -> vector<16x128xf32>
    %c124_i32_110 = arith.constant 124 : i32
    %249 = tpu.dynamic_rotate %233 by %c124_i32_110 dim 1 : vector<16x128xf32>, i32 -> vector<16x128xf32>
    %c123_i32 = arith.constant 123 : i32
    %250 = tpu.dynamic_rotate %233 by %c123_i32 dim 1 : vector<16x128xf32>, i32 -> vector<16x128xf32>
    %c122_i32 = arith.constant 122 : i32
    %251 = tpu.dynamic_rotate %233 by %c122_i32 dim 1 : vector<16x128xf32>, i32 -> vector<16x128xf32>
    %c127_i32_111 = arith.constant 127 : i32
    %252 = tpu.dynamic_rotate %235 by %c127_i32_111 dim 1 : vector<16x128xf32>, i32 -> vector<16x128xf32>
    %c126_i32_112 = arith.constant 126 : i32
    %253 = tpu.dynamic_rotate %235 by %c126_i32_112 dim 1 : vector<16x128xf32>, i32 -> vector<16x128xf32>
    %c125_i32_113 = arith.constant 125 : i32
    %254 = tpu.dynamic_rotate %235 by %c125_i32_113 dim 1 : vector<16x128xf32>, i32 -> vector<16x128xf32>
    %c124_i32_114 = arith.constant 124 : i32
    %255 = tpu.dynamic_rotate %235 by %c124_i32_114 dim 1 : vector<16x128xf32>, i32 -> vector<16x128xf32>
    %c123_i32_115 = arith.constant 123 : i32
    %256 = tpu.dynamic_rotate %235 by %c123_i32_115 dim 1 : vector<16x128xf32>, i32 -> vector<16x128xf32>
    %c122_i32_116 = arith.constant 122 : i32
    %257 = tpu.dynamic_rotate %235 by %c122_i32_116 dim 1 : vector<16x128xf32>, i32 -> vector<16x128xf32>
    %c127_i32_117 = arith.constant 127 : i32
    %258 = tpu.dynamic_rotate %237 by %c127_i32_117 dim 1 : vector<16x128xf32>, i32 -> vector<16x128xf32>
    %c126_i32_118 = arith.constant 126 : i32
    %259 = tpu.dynamic_rotate %237 by %c126_i32_118 dim 1 : vector<16x128xf32>, i32 -> vector<16x128xf32>
    %c125_i32_119 = arith.constant 125 : i32
    %260 = tpu.dynamic_rotate %237 by %c125_i32_119 dim 1 : vector<16x128xf32>, i32 -> vector<16x128xf32>
    %c124_i32_120 = arith.constant 124 : i32
    %261 = tpu.dynamic_rotate %237 by %c124_i32_120 dim 1 : vector<16x128xf32>, i32 -> vector<16x128xf32>
    %c123_i32_121 = arith.constant 123 : i32
    %262 = tpu.dynamic_rotate %237 by %c123_i32_121 dim 1 : vector<16x128xf32>, i32 -> vector<16x128xf32>
    %c122_i32_122 = arith.constant 122 : i32
    %263 = tpu.dynamic_rotate %237 by %c122_i32_122 dim 1 : vector<16x128xf32>, i32 -> vector<16x128xf32>
    %c127_i32_123 = arith.constant 127 : i32
    %264 = tpu.dynamic_rotate %239 by %c127_i32_123 dim 1 : vector<16x128xf32>, i32 -> vector<16x128xf32>
    %c126_i32_124 = arith.constant 126 : i32
    %265 = tpu.dynamic_rotate %239 by %c126_i32_124 dim 1 : vector<16x128xf32>, i32 -> vector<16x128xf32>
    %c125_i32_125 = arith.constant 125 : i32
    %266 = tpu.dynamic_rotate %239 by %c125_i32_125 dim 1 : vector<16x128xf32>, i32 -> vector<16x128xf32>
    %c124_i32_126 = arith.constant 124 : i32
    %267 = tpu.dynamic_rotate %239 by %c124_i32_126 dim 1 : vector<16x128xf32>, i32 -> vector<16x128xf32>
    %c123_i32_127 = arith.constant 123 : i32
    %268 = tpu.dynamic_rotate %239 by %c123_i32_127 dim 1 : vector<16x128xf32>, i32 -> vector<16x128xf32>
    %c122_i32_128 = arith.constant 122 : i32
    %269 = tpu.dynamic_rotate %239 by %c122_i32_128 dim 1 : vector<16x128xf32>, i32 -> vector<16x128xf32>
    %c127_i32_129 = arith.constant 127 : i32
    %270 = tpu.dynamic_rotate %241 by %c127_i32_129 dim 1 : vector<16x128xf32>, i32 -> vector<16x128xf32>
    %c126_i32_130 = arith.constant 126 : i32
    %271 = tpu.dynamic_rotate %241 by %c126_i32_130 dim 1 : vector<16x128xf32>, i32 -> vector<16x128xf32>
    %c125_i32_131 = arith.constant 125 : i32
    %272 = tpu.dynamic_rotate %241 by %c125_i32_131 dim 1 : vector<16x128xf32>, i32 -> vector<16x128xf32>
    %c124_i32_132 = arith.constant 124 : i32
    %273 = tpu.dynamic_rotate %241 by %c124_i32_132 dim 1 : vector<16x128xf32>, i32 -> vector<16x128xf32>
    %c123_i32_133 = arith.constant 123 : i32
    %274 = tpu.dynamic_rotate %241 by %c123_i32_133 dim 1 : vector<16x128xf32>, i32 -> vector<16x128xf32>
    %c122_i32_134 = arith.constant 122 : i32
    %275 = tpu.dynamic_rotate %241 by %c122_i32_134 dim 1 : vector<16x128xf32>, i32 -> vector<16x128xf32>
    %c127_i32_135 = arith.constant 127 : i32
    %276 = tpu.dynamic_rotate %243 by %c127_i32_135 dim 1 : vector<16x128xf32>, i32 -> vector<16x128xf32>
    %c126_i32_136 = arith.constant 126 : i32
    %277 = tpu.dynamic_rotate %243 by %c126_i32_136 dim 1 : vector<16x128xf32>, i32 -> vector<16x128xf32>
    %c125_i32_137 = arith.constant 125 : i32
    %278 = tpu.dynamic_rotate %243 by %c125_i32_137 dim 1 : vector<16x128xf32>, i32 -> vector<16x128xf32>
    %c124_i32_138 = arith.constant 124 : i32
    %279 = tpu.dynamic_rotate %243 by %c124_i32_138 dim 1 : vector<16x128xf32>, i32 -> vector<16x128xf32>
    %c123_i32_139 = arith.constant 123 : i32
    %280 = tpu.dynamic_rotate %243 by %c123_i32_139 dim 1 : vector<16x128xf32>, i32 -> vector<16x128xf32>
    %c122_i32_140 = arith.constant 122 : i32
    %281 = tpu.dynamic_rotate %243 by %c122_i32_140 dim 1 : vector<16x128xf32>, i32 -> vector<16x128xf32>
    %c127_i32_141 = arith.constant 127 : i32
    %282 = tpu.dynamic_rotate %245 by %c127_i32_141 dim 1 : vector<16x128xf32>, i32 -> vector<16x128xf32>
    %c126_i32_142 = arith.constant 126 : i32
    %283 = tpu.dynamic_rotate %245 by %c126_i32_142 dim 1 : vector<16x128xf32>, i32 -> vector<16x128xf32>
    %c125_i32_143 = arith.constant 125 : i32
    %284 = tpu.dynamic_rotate %245 by %c125_i32_143 dim 1 : vector<16x128xf32>, i32 -> vector<16x128xf32>
    %c124_i32_144 = arith.constant 124 : i32
    %285 = tpu.dynamic_rotate %245 by %c124_i32_144 dim 1 : vector<16x128xf32>, i32 -> vector<16x128xf32>
    %c123_i32_145 = arith.constant 123 : i32
    %286 = tpu.dynamic_rotate %245 by %c123_i32_145 dim 1 : vector<16x128xf32>, i32 -> vector<16x128xf32>
    %c122_i32_146 = arith.constant 122 : i32
    %287 = tpu.dynamic_rotate %245 by %c122_i32_146 dim 1 : vector<16x128xf32>, i32 -> vector<16x128xf32>
    %cst_147 = arith.constant 0.036632847 : f32
    %288 = vector.broadcast %cst_147 : f32 to vector<16x128xf32>
    %289 = arith.mulf %239, %288 : vector<16x128xf32>
    %cst_148 = arith.constant 0.111280762 : f32
    %290 = vector.broadcast %cst_148 : f32 to vector<16x128xf32>
    %291 = arith.mulf %264, %290 : vector<16x128xf32>
    %292 = arith.addf %289, %291 : vector<16x128xf32>
    %cst_149 = arith.constant 0.216745317 : f32
    %293 = vector.broadcast %cst_149 : f32 to vector<16x128xf32>
    %294 = arith.mulf %265, %293 : vector<16x128xf32>
    %295 = arith.addf %292, %294 : vector<16x128xf32>
    %cst_150 = arith.constant 0.270682156 : f32
    %296 = vector.broadcast %cst_150 : f32 to vector<16x128xf32>
    %297 = arith.mulf %266, %296 : vector<16x128xf32>
    %298 = arith.addf %295, %297 : vector<16x128xf32>
    %cst_151 = arith.constant 0.216745317 : f32
    %299 = vector.broadcast %cst_151 : f32 to vector<16x128xf32>
    %300 = arith.mulf %267, %299 : vector<16x128xf32>
    %301 = arith.addf %298, %300 : vector<16x128xf32>
    %cst_152 = arith.constant 0.111280762 : f32
    %302 = vector.broadcast %cst_152 : f32 to vector<16x128xf32>
    %303 = arith.mulf %268, %302 : vector<16x128xf32>
    %304 = arith.addf %301, %303 : vector<16x128xf32>
    %cst_153 = arith.constant 0.036632847 : f32
    %305 = vector.broadcast %cst_153 : f32 to vector<16x128xf32>
    %306 = arith.mulf %269, %305 : vector<16x128xf32>
    %307 = arith.addf %304, %306 : vector<16x128xf32>
    %cst_154 = arith.constant 0.000000e+00 : f32
    %308 = vector.broadcast %cst_154 : f32 to vector<16x128xf32>
    %cst_155 = arith.constant 0.036632847 : f32
    %309 = vector.broadcast %cst_155 : f32 to vector<16x128xf32>
    %310 = arith.mulf %237, %309 : vector<16x128xf32>
    %cst_156 = arith.constant 0.111280762 : f32
    %311 = vector.broadcast %cst_156 : f32 to vector<16x128xf32>
    %312 = arith.mulf %258, %311 : vector<16x128xf32>
    %313 = arith.addf %310, %312 : vector<16x128xf32>
    %cst_157 = arith.constant 0.216745317 : f32
    %314 = vector.broadcast %cst_157 : f32 to vector<16x128xf32>
    %315 = arith.mulf %265, %314 : vector<16x128xf32>
    %316 = arith.addf %313, %315 : vector<16x128xf32>
    %cst_158 = arith.constant 0.270682156 : f32
    %317 = vector.broadcast %cst_158 : f32 to vector<16x128xf32>
    %318 = arith.mulf %266, %317 : vector<16x128xf32>
    %319 = arith.addf %316, %318 : vector<16x128xf32>
    %cst_159 = arith.constant 0.216745317 : f32
    %320 = vector.broadcast %cst_159 : f32 to vector<16x128xf32>
    %321 = arith.mulf %267, %320 : vector<16x128xf32>
    %322 = arith.addf %319, %321 : vector<16x128xf32>
    %cst_160 = arith.constant 0.111280762 : f32
    %323 = vector.broadcast %cst_160 : f32 to vector<16x128xf32>
    %324 = arith.mulf %274, %323 : vector<16x128xf32>
    %325 = arith.addf %322, %324 : vector<16x128xf32>
    %cst_161 = arith.constant 0.036632847 : f32
    %326 = vector.broadcast %cst_161 : f32 to vector<16x128xf32>
    %327 = arith.mulf %275, %326 : vector<16x128xf32>
    %328 = arith.addf %325, %327 : vector<16x128xf32>
    %329 = arith.cmpf ogt, %328, %307 : vector<16x128xf32>
    %330 = arith.select %329, %328, %307 : vector<16x128xi1>, vector<16x128xf32>
    %cst_162 = arith.constant 1.000000e+00 : f32
    %331 = vector.broadcast %cst_162 : f32 to vector<16x128xf32>
    %332 = arith.select %329, %331, %308 : vector<16x128xi1>, vector<16x128xf32>
    %cst_163 = arith.constant 0.036632847 : f32
    %333 = vector.broadcast %cst_163 : f32 to vector<16x128xf32>
    %334 = arith.mulf %235, %333 : vector<16x128xf32>
    %cst_164 = arith.constant 0.111280762 : f32
    %335 = vector.broadcast %cst_164 : f32 to vector<16x128xf32>
    %336 = arith.mulf %258, %335 : vector<16x128xf32>
    %337 = arith.addf %334, %336 : vector<16x128xf32>
    %cst_165 = arith.constant 0.216745317 : f32
    %338 = vector.broadcast %cst_165 : f32 to vector<16x128xf32>
    %339 = arith.mulf %259, %338 : vector<16x128xf32>
    %340 = arith.addf %337, %339 : vector<16x128xf32>
    %cst_166 = arith.constant 0.270682156 : f32
    %341 = vector.broadcast %cst_166 : f32 to vector<16x128xf32>
    %342 = arith.mulf %266, %341 : vector<16x128xf32>
    %343 = arith.addf %340, %342 : vector<16x128xf32>
    %cst_167 = arith.constant 0.216745317 : f32
    %344 = vector.broadcast %cst_167 : f32 to vector<16x128xf32>
    %345 = arith.mulf %273, %344 : vector<16x128xf32>
    %346 = arith.addf %343, %345 : vector<16x128xf32>
    %cst_168 = arith.constant 0.111280762 : f32
    %347 = vector.broadcast %cst_168 : f32 to vector<16x128xf32>
    %348 = arith.mulf %274, %347 : vector<16x128xf32>
    %349 = arith.addf %346, %348 : vector<16x128xf32>
    %cst_169 = arith.constant 0.036632847 : f32
    %350 = vector.broadcast %cst_169 : f32 to vector<16x128xf32>
    %351 = arith.mulf %281, %350 : vector<16x128xf32>
    %352 = arith.addf %349, %351 : vector<16x128xf32>
    %353 = arith.cmpf ogt, %352, %330 : vector<16x128xf32>
    %354 = arith.select %353, %352, %330 : vector<16x128xi1>, vector<16x128xf32>
    %cst_170 = arith.constant 2.000000e+00 : f32
    %355 = vector.broadcast %cst_170 : f32 to vector<16x128xf32>
    %356 = arith.select %353, %355, %332 : vector<16x128xi1>, vector<16x128xf32>
    %cst_171 = arith.constant 0.036632847 : f32
    %357 = vector.broadcast %cst_171 : f32 to vector<16x128xf32>
    %358 = arith.mulf %233, %357 : vector<16x128xf32>
    %cst_172 = arith.constant 0.111280762 : f32
    %359 = vector.broadcast %cst_172 : f32 to vector<16x128xf32>
    %360 = arith.mulf %252, %359 : vector<16x128xf32>
    %361 = arith.addf %358, %360 : vector<16x128xf32>
    %cst_173 = arith.constant 0.216745317 : f32
    %362 = vector.broadcast %cst_173 : f32 to vector<16x128xf32>
    %363 = arith.mulf %259, %362 : vector<16x128xf32>
    %364 = arith.addf %361, %363 : vector<16x128xf32>
    %cst_174 = arith.constant 0.270682156 : f32
    %365 = vector.broadcast %cst_174 : f32 to vector<16x128xf32>
    %366 = arith.mulf %266, %365 : vector<16x128xf32>
    %367 = arith.addf %364, %366 : vector<16x128xf32>
    %cst_175 = arith.constant 0.216745317 : f32
    %368 = vector.broadcast %cst_175 : f32 to vector<16x128xf32>
    %369 = arith.mulf %273, %368 : vector<16x128xf32>
    %370 = arith.addf %367, %369 : vector<16x128xf32>
    %cst_176 = arith.constant 0.111280762 : f32
    %371 = vector.broadcast %cst_176 : f32 to vector<16x128xf32>
    %372 = arith.mulf %280, %371 : vector<16x128xf32>
    %373 = arith.addf %370, %372 : vector<16x128xf32>
    %cst_177 = arith.constant 0.036632847 : f32
    %374 = vector.broadcast %cst_177 : f32 to vector<16x128xf32>
    %375 = arith.mulf %287, %374 : vector<16x128xf32>
    %376 = arith.addf %373, %375 : vector<16x128xf32>
    %377 = arith.cmpf ogt, %376, %354 : vector<16x128xf32>
    %378 = arith.select %377, %376, %354 : vector<16x128xi1>, vector<16x128xf32>
    %cst_178 = arith.constant 3.000000e+00 : f32
    %379 = vector.broadcast %cst_178 : f32 to vector<16x128xf32>
    %380 = arith.select %377, %379, %356 : vector<16x128xi1>, vector<16x128xf32>
    %cst_179 = arith.constant 0.036632847 : f32
    %381 = vector.broadcast %cst_179 : f32 to vector<16x128xf32>
    %382 = arith.mulf %246, %381 : vector<16x128xf32>
    %cst_180 = arith.constant 0.111280762 : f32
    %383 = vector.broadcast %cst_180 : f32 to vector<16x128xf32>
    %384 = arith.mulf %253, %383 : vector<16x128xf32>
    %385 = arith.addf %382, %384 : vector<16x128xf32>
    %cst_181 = arith.constant 0.216745317 : f32
    %386 = vector.broadcast %cst_181 : f32 to vector<16x128xf32>
    %387 = arith.mulf %259, %386 : vector<16x128xf32>
    %388 = arith.addf %385, %387 : vector<16x128xf32>
    %cst_182 = arith.constant 0.270682156 : f32
    %389 = vector.broadcast %cst_182 : f32 to vector<16x128xf32>
    %390 = arith.mulf %266, %389 : vector<16x128xf32>
    %391 = arith.addf %388, %390 : vector<16x128xf32>
    %cst_183 = arith.constant 0.216745317 : f32
    %392 = vector.broadcast %cst_183 : f32 to vector<16x128xf32>
    %393 = arith.mulf %273, %392 : vector<16x128xf32>
    %394 = arith.addf %391, %393 : vector<16x128xf32>
    %cst_184 = arith.constant 0.111280762 : f32
    %395 = vector.broadcast %cst_184 : f32 to vector<16x128xf32>
    %396 = arith.mulf %279, %395 : vector<16x128xf32>
    %397 = arith.addf %394, %396 : vector<16x128xf32>
    %cst_185 = arith.constant 0.036632847 : f32
    %398 = vector.broadcast %cst_185 : f32 to vector<16x128xf32>
    %399 = arith.mulf %286, %398 : vector<16x128xf32>
    %400 = arith.addf %397, %399 : vector<16x128xf32>
    %401 = arith.cmpf ogt, %400, %378 : vector<16x128xf32>
    %402 = arith.select %401, %400, %378 : vector<16x128xi1>, vector<16x128xf32>
    %cst_186 = arith.constant 4.000000e+00 : f32
    %403 = vector.broadcast %cst_186 : f32 to vector<16x128xf32>
    %404 = arith.select %401, %403, %380 : vector<16x128xi1>, vector<16x128xf32>
    %cst_187 = arith.constant 0.036632847 : f32
    %405 = vector.broadcast %cst_187 : f32 to vector<16x128xf32>
    %406 = arith.mulf %247, %405 : vector<16x128xf32>
    %cst_188 = arith.constant 0.111280762 : f32
    %407 = vector.broadcast %cst_188 : f32 to vector<16x128xf32>
    %408 = arith.mulf %253, %407 : vector<16x128xf32>
    %409 = arith.addf %406, %408 : vector<16x128xf32>
    %cst_189 = arith.constant 0.216745317 : f32
    %410 = vector.broadcast %cst_189 : f32 to vector<16x128xf32>
    %411 = arith.mulf %260, %410 : vector<16x128xf32>
    %412 = arith.addf %409, %411 : vector<16x128xf32>
    %cst_190 = arith.constant 0.270682156 : f32
    %413 = vector.broadcast %cst_190 : f32 to vector<16x128xf32>
    %414 = arith.mulf %266, %413 : vector<16x128xf32>
    %415 = arith.addf %412, %414 : vector<16x128xf32>
    %cst_191 = arith.constant 0.216745317 : f32
    %416 = vector.broadcast %cst_191 : f32 to vector<16x128xf32>
    %417 = arith.mulf %272, %416 : vector<16x128xf32>
    %418 = arith.addf %415, %417 : vector<16x128xf32>
    %cst_192 = arith.constant 0.111280762 : f32
    %419 = vector.broadcast %cst_192 : f32 to vector<16x128xf32>
    %420 = arith.mulf %279, %419 : vector<16x128xf32>
    %421 = arith.addf %418, %420 : vector<16x128xf32>
    %cst_193 = arith.constant 0.036632847 : f32
    %422 = vector.broadcast %cst_193 : f32 to vector<16x128xf32>
    %423 = arith.mulf %285, %422 : vector<16x128xf32>
    %424 = arith.addf %421, %423 : vector<16x128xf32>
    %425 = arith.cmpf ogt, %424, %402 : vector<16x128xf32>
    %426 = arith.select %425, %424, %402 : vector<16x128xi1>, vector<16x128xf32>
    %cst_194 = arith.constant 5.000000e+00 : f32
    %427 = vector.broadcast %cst_194 : f32 to vector<16x128xf32>
    %428 = arith.select %425, %427, %404 : vector<16x128xi1>, vector<16x128xf32>
    %cst_195 = arith.constant 0.036632847 : f32
    %429 = vector.broadcast %cst_195 : f32 to vector<16x128xf32>
    %430 = arith.mulf %248, %429 : vector<16x128xf32>
    %cst_196 = arith.constant 0.111280762 : f32
    %431 = vector.broadcast %cst_196 : f32 to vector<16x128xf32>
    %432 = arith.mulf %254, %431 : vector<16x128xf32>
    %433 = arith.addf %430, %432 : vector<16x128xf32>
    %cst_197 = arith.constant 0.216745317 : f32
    %434 = vector.broadcast %cst_197 : f32 to vector<16x128xf32>
    %435 = arith.mulf %260, %434 : vector<16x128xf32>
    %436 = arith.addf %433, %435 : vector<16x128xf32>
    %cst_198 = arith.constant 0.270682156 : f32
    %437 = vector.broadcast %cst_198 : f32 to vector<16x128xf32>
    %438 = arith.mulf %266, %437 : vector<16x128xf32>
    %439 = arith.addf %436, %438 : vector<16x128xf32>
    %cst_199 = arith.constant 0.216745317 : f32
    %440 = vector.broadcast %cst_199 : f32 to vector<16x128xf32>
    %441 = arith.mulf %272, %440 : vector<16x128xf32>
    %442 = arith.addf %439, %441 : vector<16x128xf32>
    %cst_200 = arith.constant 0.111280762 : f32
    %443 = vector.broadcast %cst_200 : f32 to vector<16x128xf32>
    %444 = arith.mulf %278, %443 : vector<16x128xf32>
    %445 = arith.addf %442, %444 : vector<16x128xf32>
    %cst_201 = arith.constant 0.036632847 : f32
    %446 = vector.broadcast %cst_201 : f32 to vector<16x128xf32>
    %447 = arith.mulf %284, %446 : vector<16x128xf32>
    %448 = arith.addf %445, %447 : vector<16x128xf32>
    %449 = arith.cmpf ogt, %448, %426 : vector<16x128xf32>
    %450 = arith.select %449, %448, %426 : vector<16x128xi1>, vector<16x128xf32>
    %cst_202 = arith.constant 6.000000e+00 : f32
    %451 = vector.broadcast %cst_202 : f32 to vector<16x128xf32>
    %452 = arith.select %449, %451, %428 : vector<16x128xi1>, vector<16x128xf32>
    %cst_203 = arith.constant 0.036632847 : f32
    %453 = vector.broadcast %cst_203 : f32 to vector<16x128xf32>
    %454 = arith.mulf %249, %453 : vector<16x128xf32>
    %cst_204 = arith.constant 0.111280762 : f32
    %455 = vector.broadcast %cst_204 : f32 to vector<16x128xf32>
    %456 = arith.mulf %255, %455 : vector<16x128xf32>
    %457 = arith.addf %454, %456 : vector<16x128xf32>
    %cst_205 = arith.constant 0.216745317 : f32
    %458 = vector.broadcast %cst_205 : f32 to vector<16x128xf32>
    %459 = arith.mulf %260, %458 : vector<16x128xf32>
    %460 = arith.addf %457, %459 : vector<16x128xf32>
    %cst_206 = arith.constant 0.270682156 : f32
    %461 = vector.broadcast %cst_206 : f32 to vector<16x128xf32>
    %462 = arith.mulf %266, %461 : vector<16x128xf32>
    %463 = arith.addf %460, %462 : vector<16x128xf32>
    %cst_207 = arith.constant 0.216745317 : f32
    %464 = vector.broadcast %cst_207 : f32 to vector<16x128xf32>
    %465 = arith.mulf %272, %464 : vector<16x128xf32>
    %466 = arith.addf %463, %465 : vector<16x128xf32>
    %cst_208 = arith.constant 0.111280762 : f32
    %467 = vector.broadcast %cst_208 : f32 to vector<16x128xf32>
    %468 = arith.mulf %277, %467 : vector<16x128xf32>
    %469 = arith.addf %466, %468 : vector<16x128xf32>
    %cst_209 = arith.constant 0.036632847 : f32
    %470 = vector.broadcast %cst_209 : f32 to vector<16x128xf32>
    %471 = arith.mulf %283, %470 : vector<16x128xf32>
    %472 = arith.addf %469, %471 : vector<16x128xf32>
    %473 = arith.cmpf ogt, %472, %450 : vector<16x128xf32>
    %474 = arith.select %473, %472, %450 : vector<16x128xi1>, vector<16x128xf32>
    %cst_210 = arith.constant 7.000000e+00 : f32
    %475 = vector.broadcast %cst_210 : f32 to vector<16x128xf32>
    %476 = arith.select %473, %475, %452 : vector<16x128xi1>, vector<16x128xf32>
    %cst_211 = arith.constant 0.036632847 : f32
    %477 = vector.broadcast %cst_211 : f32 to vector<16x128xf32>
    %478 = arith.mulf %250, %477 : vector<16x128xf32>
    %cst_212 = arith.constant 0.111280762 : f32
    %479 = vector.broadcast %cst_212 : f32 to vector<16x128xf32>
    %480 = arith.mulf %255, %479 : vector<16x128xf32>
    %481 = arith.addf %478, %480 : vector<16x128xf32>
    %cst_213 = arith.constant 0.216745317 : f32
    %482 = vector.broadcast %cst_213 : f32 to vector<16x128xf32>
    %483 = arith.mulf %261, %482 : vector<16x128xf32>
    %484 = arith.addf %481, %483 : vector<16x128xf32>
    %cst_214 = arith.constant 0.270682156 : f32
    %485 = vector.broadcast %cst_214 : f32 to vector<16x128xf32>
    %486 = arith.mulf %266, %485 : vector<16x128xf32>
    %487 = arith.addf %484, %486 : vector<16x128xf32>
    %cst_215 = arith.constant 0.216745317 : f32
    %488 = vector.broadcast %cst_215 : f32 to vector<16x128xf32>
    %489 = arith.mulf %271, %488 : vector<16x128xf32>
    %490 = arith.addf %487, %489 : vector<16x128xf32>
    %cst_216 = arith.constant 0.111280762 : f32
    %491 = vector.broadcast %cst_216 : f32 to vector<16x128xf32>
    %492 = arith.mulf %277, %491 : vector<16x128xf32>
    %493 = arith.addf %490, %492 : vector<16x128xf32>
    %cst_217 = arith.constant 0.036632847 : f32
    %494 = vector.broadcast %cst_217 : f32 to vector<16x128xf32>
    %495 = arith.mulf %282, %494 : vector<16x128xf32>
    %496 = arith.addf %493, %495 : vector<16x128xf32>
    %497 = arith.cmpf ogt, %496, %474 : vector<16x128xf32>
    %498 = arith.select %497, %496, %474 : vector<16x128xi1>, vector<16x128xf32>
    %cst_218 = arith.constant 8.000000e+00 : f32
    %499 = vector.broadcast %cst_218 : f32 to vector<16x128xf32>
    %500 = arith.select %497, %499, %476 : vector<16x128xi1>, vector<16x128xf32>
    %cst_219 = arith.constant 0.036632847 : f32
    %501 = vector.broadcast %cst_219 : f32 to vector<16x128xf32>
    %502 = arith.mulf %251, %501 : vector<16x128xf32>
    %cst_220 = arith.constant 0.111280762 : f32
    %503 = vector.broadcast %cst_220 : f32 to vector<16x128xf32>
    %504 = arith.mulf %256, %503 : vector<16x128xf32>
    %505 = arith.addf %502, %504 : vector<16x128xf32>
    %cst_221 = arith.constant 0.216745317 : f32
    %506 = vector.broadcast %cst_221 : f32 to vector<16x128xf32>
    %507 = arith.mulf %261, %506 : vector<16x128xf32>
    %508 = arith.addf %505, %507 : vector<16x128xf32>
    %cst_222 = arith.constant 0.270682156 : f32
    %509 = vector.broadcast %cst_222 : f32 to vector<16x128xf32>
    %510 = arith.mulf %266, %509 : vector<16x128xf32>
    %511 = arith.addf %508, %510 : vector<16x128xf32>
    %cst_223 = arith.constant 0.216745317 : f32
    %512 = vector.broadcast %cst_223 : f32 to vector<16x128xf32>
    %513 = arith.mulf %271, %512 : vector<16x128xf32>
    %514 = arith.addf %511, %513 : vector<16x128xf32>
    %cst_224 = arith.constant 0.111280762 : f32
    %515 = vector.broadcast %cst_224 : f32 to vector<16x128xf32>
    %516 = arith.mulf %276, %515 : vector<16x128xf32>
    %517 = arith.addf %514, %516 : vector<16x128xf32>
    %cst_225 = arith.constant 0.036632847 : f32
    %518 = vector.broadcast %cst_225 : f32 to vector<16x128xf32>
    %519 = arith.mulf %245, %518 : vector<16x128xf32>
    %520 = arith.addf %517, %519 : vector<16x128xf32>
    %521 = arith.cmpf ogt, %520, %498 : vector<16x128xf32>
    %522 = arith.select %521, %520, %498 : vector<16x128xi1>, vector<16x128xf32>
    %cst_226 = arith.constant 9.000000e+00 : f32
    %523 = vector.broadcast %cst_226 : f32 to vector<16x128xf32>
    %524 = arith.select %521, %523, %500 : vector<16x128xi1>, vector<16x128xf32>
    %cst_227 = arith.constant 0.036632847 : f32
    %525 = vector.broadcast %cst_227 : f32 to vector<16x128xf32>
    %526 = arith.mulf %257, %525 : vector<16x128xf32>
    %cst_228 = arith.constant 0.216745317 : f32
    %527 = vector.broadcast %cst_228 : f32 to vector<16x128xf32>
    %528 = arith.mulf %261, %527 : vector<16x128xf32>
    %529 = arith.addf %526, %528 : vector<16x128xf32>
    %cst_229 = arith.constant 0.111280762 : f32
    %530 = vector.broadcast %cst_229 : f32 to vector<16x128xf32>
    %531 = arith.mulf %262, %530 : vector<16x128xf32>
    %532 = arith.addf %529, %531 : vector<16x128xf32>
    %cst_230 = arith.constant 0.270682156 : f32
    %533 = vector.broadcast %cst_230 : f32 to vector<16x128xf32>
    %534 = arith.mulf %266, %533 : vector<16x128xf32>
    %535 = arith.addf %532, %534 : vector<16x128xf32>
    %cst_231 = arith.constant 0.111280762 : f32
    %536 = vector.broadcast %cst_231 : f32 to vector<16x128xf32>
    %537 = arith.mulf %270, %536 : vector<16x128xf32>
    %538 = arith.addf %535, %537 : vector<16x128xf32>
    %cst_232 = arith.constant 0.216745317 : f32
    %539 = vector.broadcast %cst_232 : f32 to vector<16x128xf32>
    %540 = arith.mulf %271, %539 : vector<16x128xf32>
    %541 = arith.addf %538, %540 : vector<16x128xf32>
    %cst_233 = arith.constant 0.036632847 : f32
    %542 = vector.broadcast %cst_233 : f32 to vector<16x128xf32>
    %543 = arith.mulf %243, %542 : vector<16x128xf32>
    %544 = arith.addf %541, %543 : vector<16x128xf32>
    %545 = arith.cmpf ogt, %544, %522 : vector<16x128xf32>
    %546 = arith.select %545, %544, %522 : vector<16x128xi1>, vector<16x128xf32>
    %cst_234 = arith.constant 1.000000e+01 : f32
    %547 = vector.broadcast %cst_234 : f32 to vector<16x128xf32>
    %548 = arith.select %545, %547, %524 : vector<16x128xi1>, vector<16x128xf32>
    %cst_235 = arith.constant 0.111280762 : f32
    %549 = vector.broadcast %cst_235 : f32 to vector<16x128xf32>
    %550 = arith.mulf %262, %549 : vector<16x128xf32>
    %cst_236 = arith.constant 0.036632847 : f32
    %551 = vector.broadcast %cst_236 : f32 to vector<16x128xf32>
    %552 = arith.mulf %263, %551 : vector<16x128xf32>
    %553 = arith.addf %550, %552 : vector<16x128xf32>
    %cst_237 = arith.constant 0.216745317 : f32
    %554 = vector.broadcast %cst_237 : f32 to vector<16x128xf32>
    %555 = arith.mulf %265, %554 : vector<16x128xf32>
    %556 = arith.addf %553, %555 : vector<16x128xf32>
    %cst_238 = arith.constant 0.270682156 : f32
    %557 = vector.broadcast %cst_238 : f32 to vector<16x128xf32>
    %558 = arith.mulf %266, %557 : vector<16x128xf32>
    %559 = arith.addf %556, %558 : vector<16x128xf32>
    %cst_239 = arith.constant 0.216745317 : f32
    %560 = vector.broadcast %cst_239 : f32 to vector<16x128xf32>
    %561 = arith.mulf %267, %560 : vector<16x128xf32>
    %562 = arith.addf %559, %561 : vector<16x128xf32>
    %cst_240 = arith.constant 0.036632847 : f32
    %563 = vector.broadcast %cst_240 : f32 to vector<16x128xf32>
    %564 = arith.mulf %241, %563 : vector<16x128xf32>
    %565 = arith.addf %562, %564 : vector<16x128xf32>
    %cst_241 = arith.constant 0.111280762 : f32
    %566 = vector.broadcast %cst_241 : f32 to vector<16x128xf32>
    %567 = arith.mulf %270, %566 : vector<16x128xf32>
    %568 = arith.addf %565, %567 : vector<16x128xf32>
    %569 = arith.cmpf ogt, %568, %546 : vector<16x128xf32>
    %570 = arith.select %569, %568, %546 : vector<16x128xi1>, vector<16x128xf32>
    %cst_242 = arith.constant 1.100000e+01 : f32
    %571 = vector.broadcast %cst_242 : f32 to vector<16x128xf32>
    %572 = arith.select %569, %571, %548 : vector<16x128xi1>, vector<16x128xf32>
    %cst_243 = arith.constant 0.0416666679 : f32
    %573 = vector.broadcast %cst_243 : f32 to vector<16x128xf32>
    %574 = arith.mulf %572, %573 : vector<16x128xf32>
    %c16_i32_244 = arith.constant 16 : i32
    %575 = tpu.dynamic_rotate %574 by %c16_i32_244 dim 1 : vector<16x128xf32>, i32 -> vector<16x128xf32>
    %576 = arith.select %18, %570, %575 : vector<16x128xi1>, vector<16x128xf32>
    %c0_245 = arith.constant 0 : index
    %c0_246 = arith.constant 0 : index
    %c0_247 = arith.constant 0 : index
    %577 = vector.load %arg2[%c0_245, %c0_246, %c0_247] : memref<2x16x128xf32, #tpu.memory_space<vmem>>, vector<1x16x128xf32>
    %578 = vector.shape_cast %577 : vector<1x16x128xf32> to vector<16x128xf32>
    %579 = vector.shape_cast %576 : vector<16x128xf32> to vector<1x16x128xf32>
    tpu.vector_store %arg2[%c0_245, %c0_246, %c0_247], %579 {strides = array<i32>} : memref<2x16x128xf32, #tpu.memory_space<vmem>>, vector<1x16x128xf32>,
    %c1_248 = arith.constant 1 : index
    %c0_249 = arith.constant 0 : index
    %c0_250 = arith.constant 0 : index
    %c0_251 = arith.constant 0 : index
    %580 = vector.load %arg1[%c1_248, %c0_249, %c0_250, %c0_251] : memref<2x4x16x16xf32, #tpu.memory_space<vmem>>, vector<1x1x16x16xf32>
    %581 = vector.shape_cast %580 : vector<1x1x16x16xf32> to vector<16x16xf32>
    %582 = vector.extract_strided_slice %581 {offsets = [0, 0], sizes = [16, 1], strides = [1, 1]} : vector<16x16xf32> to vector<16x1xf32>
    %583 = vector.shape_cast %582 : vector<16x1xf32> to vector<16x1xf32>
    %584 = vector.broadcast %583 : vector<16x1xf32> to vector<16x4xf32>
    %585 = vector.extract_strided_slice %581 {offsets = [0, 15], sizes = [16, 1], strides = [1, 1]} : vector<16x16xf32> to vector<16x1xf32>
    %586 = vector.shape_cast %585 : vector<16x1xf32> to vector<16x1xf32>
    %587 = vector.broadcast %586 : vector<16x1xf32> to vector<16x4xf32>
    %588 = tpu.concatenate %584, %581, %587 in 1 : vector<16x4xf32>, vector<16x16xf32>, vector<16x4xf32> -> vector<16x24xf32>
    %c1_252 = arith.constant 1 : index
    %c4_253 = arith.constant 4 : index
    %c0_254 = arith.constant 0 : index
    %589 = vector.load %arg3[%c1_252, %c4_253, %c0_254] : memref<2x24x128xf32, #tpu.memory_space<vmem>>, vector<1x16x24xf32>
    %590 = vector.shape_cast %589 : vector<1x16x24xf32> to vector<16x24xf32>
    %591 = vector.shape_cast %588 : vector<16x24xf32> to vector<1x16x24xf32>
    tpu.vector_store %arg3[%c1_252, %c4_253, %c0_254], %591 {strides = array<i32>} : memref<2x24x128xf32, #tpu.memory_space<vmem>>, vector<1x16x24xf32>,
    %592 = vector.extract_strided_slice %588 {offsets = [0, 0], sizes = [1, 24], strides = [1, 1]} : vector<16x24xf32> to vector<1x24xf32>
    %593 = vector.shape_cast %592 : vector<1x24xf32> to vector<1x24xf32>
    %594 = vector.broadcast %593 : vector<1x24xf32> to vector<4x24xf32>
    %c1_255 = arith.constant 1 : index
    %c0_256 = arith.constant 0 : index
    %c0_257 = arith.constant 0 : index
    %595 = vector.load %arg3[%c1_255, %c0_256, %c0_257] : memref<2x24x128xf32, #tpu.memory_space<vmem>>, vector<1x4x24xf32>
    %596 = vector.shape_cast %595 : vector<1x4x24xf32> to vector<4x24xf32>
    %597 = vector.shape_cast %594 : vector<4x24xf32> to vector<1x4x24xf32>
    tpu.vector_store %arg3[%c1_255, %c0_256, %c0_257], %597 {strides = array<i32>} : memref<2x24x128xf32, #tpu.memory_space<vmem>>, vector<1x4x24xf32>,
    %598 = vector.extract_strided_slice %588 {offsets = [15, 0], sizes = [1, 24], strides = [1, 1]} : vector<16x24xf32> to vector<1x24xf32>
    %599 = vector.shape_cast %598 : vector<1x24xf32> to vector<1x24xf32>
    %600 = vector.broadcast %599 : vector<1x24xf32> to vector<4x24xf32>
    %c1_258 = arith.constant 1 : index
    %c20_259 = arith.constant 20 : index
    %c0_260 = arith.constant 0 : index
    %601 = vector.load %arg3[%c1_258, %c20_259, %c0_260] : memref<2x24x128xf32, #tpu.memory_space<vmem>>, vector<1x4x24xf32>
    %602 = vector.shape_cast %601 : vector<1x4x24xf32> to vector<4x24xf32>
    %603 = vector.shape_cast %600 : vector<4x24xf32> to vector<1x4x24xf32>
    tpu.vector_store %arg3[%c1_258, %c20_259, %c0_260], %603 {strides = array<i32>} : memref<2x24x128xf32, #tpu.memory_space<vmem>>, vector<1x4x24xf32>,
    %c1_261 = arith.constant 1 : index
    %c1_262 = arith.constant 1 : index
    %c0_263 = arith.constant 0 : index
    %c0_264 = arith.constant 0 : index
    %604 = vector.load %arg1[%c1_261, %c1_262, %c0_263, %c0_264] : memref<2x4x16x16xf32, #tpu.memory_space<vmem>>, vector<1x1x16x16xf32>
    %605 = vector.shape_cast %604 : vector<1x1x16x16xf32> to vector<16x16xf32>
    %606 = vector.extract_strided_slice %605 {offsets = [0, 0], sizes = [16, 1], strides = [1, 1]} : vector<16x16xf32> to vector<16x1xf32>
    %607 = vector.shape_cast %606 : vector<16x1xf32> to vector<16x1xf32>
    %608 = vector.broadcast %607 : vector<16x1xf32> to vector<16x4xf32>
    %609 = vector.extract_strided_slice %605 {offsets = [0, 15], sizes = [16, 1], strides = [1, 1]} : vector<16x16xf32> to vector<16x1xf32>
    %610 = vector.shape_cast %609 : vector<16x1xf32> to vector<16x1xf32>
    %611 = vector.broadcast %610 : vector<16x1xf32> to vector<16x4xf32>
    %612 = tpu.concatenate %608, %605, %611 in 1 : vector<16x4xf32>, vector<16x16xf32>, vector<16x4xf32> -> vector<16x24xf32>
    %c1_265 = arith.constant 1 : index
    %c4_266 = arith.constant 4 : index
    %c32_267 = arith.constant 32 : index
    %613 = vector.load %arg3[%c1_265, %c4_266, %c32_267] : memref<2x24x128xf32, #tpu.memory_space<vmem>>, vector<1x16x24xf32>
    %614 = vector.shape_cast %613 : vector<1x16x24xf32> to vector<16x24xf32>
    %615 = vector.shape_cast %612 : vector<16x24xf32> to vector<1x16x24xf32>
    tpu.vector_store %arg3[%c1_265, %c4_266, %c32_267], %615 {strides = array<i32>} : memref<2x24x128xf32, #tpu.memory_space<vmem>>, vector<1x16x24xf32>,
    %616 = vector.extract_strided_slice %612 {offsets = [0, 0], sizes = [1, 24], strides = [1, 1]} : vector<16x24xf32> to vector<1x24xf32>
    %617 = vector.shape_cast %616 : vector<1x24xf32> to vector<1x24xf32>
    %618 = vector.broadcast %617 : vector<1x24xf32> to vector<4x24xf32>
    %c1_268 = arith.constant 1 : index
    %c0_269 = arith.constant 0 : index
    %c32_270 = arith.constant 32 : index
    %619 = vector.load %arg3[%c1_268, %c0_269, %c32_270] : memref<2x24x128xf32, #tpu.memory_space<vmem>>, vector<1x4x24xf32>
    %620 = vector.shape_cast %619 : vector<1x4x24xf32> to vector<4x24xf32>
    %621 = vector.shape_cast %618 : vector<4x24xf32> to vector<1x4x24xf32>
    tpu.vector_store %arg3[%c1_268, %c0_269, %c32_270], %621 {strides = array<i32>} : memref<2x24x128xf32, #tpu.memory_space<vmem>>, vector<1x4x24xf32>,
    %622 = vector.extract_strided_slice %612 {offsets = [15, 0], sizes = [1, 24], strides = [1, 1]} : vector<16x24xf32> to vector<1x24xf32>
    %623 = vector.shape_cast %622 : vector<1x24xf32> to vector<1x24xf32>
    %624 = vector.broadcast %623 : vector<1x24xf32> to vector<4x24xf32>
    %c1_271 = arith.constant 1 : index
    %c20_272 = arith.constant 20 : index
    %c32_273 = arith.constant 32 : index
    %625 = vector.load %arg3[%c1_271, %c20_272, %c32_273] : memref<2x24x128xf32, #tpu.memory_space<vmem>>, vector<1x4x24xf32>
    %626 = vector.shape_cast %625 : vector<1x4x24xf32> to vector<4x24xf32>
    %627 = vector.shape_cast %624 : vector<4x24xf32> to vector<1x4x24xf32>
    tpu.vector_store %arg3[%c1_271, %c20_272, %c32_273], %627 {strides = array<i32>} : memref<2x24x128xf32, #tpu.memory_space<vmem>>, vector<1x4x24xf32>,
    %c1_274 = arith.constant 1 : index
    %c2_275 = arith.constant 2 : index
    %c0_276 = arith.constant 0 : index
    %c0_277 = arith.constant 0 : index
    %628 = vector.load %arg1[%c1_274, %c2_275, %c0_276, %c0_277] : memref<2x4x16x16xf32, #tpu.memory_space<vmem>>, vector<1x1x16x16xf32>
    %629 = vector.shape_cast %628 : vector<1x1x16x16xf32> to vector<16x16xf32>
    %630 = vector.extract_strided_slice %629 {offsets = [0, 0], sizes = [16, 1], strides = [1, 1]} : vector<16x16xf32> to vector<16x1xf32>
    %631 = vector.shape_cast %630 : vector<16x1xf32> to vector<16x1xf32>
    %632 = vector.broadcast %631 : vector<16x1xf32> to vector<16x4xf32>
    %633 = vector.extract_strided_slice %629 {offsets = [0, 15], sizes = [16, 1], strides = [1, 1]} : vector<16x16xf32> to vector<16x1xf32>
    %634 = vector.shape_cast %633 : vector<16x1xf32> to vector<16x1xf32>
    %635 = vector.broadcast %634 : vector<16x1xf32> to vector<16x4xf32>
    %636 = tpu.concatenate %632, %629, %635 in 1 : vector<16x4xf32>, vector<16x16xf32>, vector<16x4xf32> -> vector<16x24xf32>
    %c1_278 = arith.constant 1 : index
    %c4_279 = arith.constant 4 : index
    %c64_280 = arith.constant 64 : index
    %637 = vector.load %arg3[%c1_278, %c4_279, %c64_280] : memref<2x24x128xf32, #tpu.memory_space<vmem>>, vector<1x16x24xf32>
    %638 = vector.shape_cast %637 : vector<1x16x24xf32> to vector<16x24xf32>
    %639 = vector.shape_cast %636 : vector<16x24xf32> to vector<1x16x24xf32>
    tpu.vector_store %arg3[%c1_278, %c4_279, %c64_280], %639 {strides = array<i32>} : memref<2x24x128xf32, #tpu.memory_space<vmem>>, vector<1x16x24xf32>,
    %640 = vector.extract_strided_slice %636 {offsets = [0, 0], sizes = [1, 24], strides = [1, 1]} : vector<16x24xf32> to vector<1x24xf32>
    %641 = vector.shape_cast %640 : vector<1x24xf32> to vector<1x24xf32>
    %642 = vector.broadcast %641 : vector<1x24xf32> to vector<4x24xf32>
    %c1_281 = arith.constant 1 : index
    %c0_282 = arith.constant 0 : index
    %c64_283 = arith.constant 64 : index
    %643 = vector.load %arg3[%c1_281, %c0_282, %c64_283] : memref<2x24x128xf32, #tpu.memory_space<vmem>>, vector<1x4x24xf32>
    %644 = vector.shape_cast %643 : vector<1x4x24xf32> to vector<4x24xf32>
    %645 = vector.shape_cast %642 : vector<4x24xf32> to vector<1x4x24xf32>
    tpu.vector_store %arg3[%c1_281, %c0_282, %c64_283], %645 {strides = array<i32>} : memref<2x24x128xf32, #tpu.memory_space<vmem>>, vector<1x4x24xf32>,
    %646 = vector.extract_strided_slice %636 {offsets = [15, 0], sizes = [1, 24], strides = [1, 1]} : vector<16x24xf32> to vector<1x24xf32>
    %647 = vector.shape_cast %646 : vector<1x24xf32> to vector<1x24xf32>
    %648 = vector.broadcast %647 : vector<1x24xf32> to vector<4x24xf32>
    %c1_284 = arith.constant 1 : index
    %c20_285 = arith.constant 20 : index
    %c64_286 = arith.constant 64 : index
    %649 = vector.load %arg3[%c1_284, %c20_285, %c64_286] : memref<2x24x128xf32, #tpu.memory_space<vmem>>, vector<1x4x24xf32>
    %650 = vector.shape_cast %649 : vector<1x4x24xf32> to vector<4x24xf32>
    %651 = vector.shape_cast %648 : vector<4x24xf32> to vector<1x4x24xf32>
    tpu.vector_store %arg3[%c1_284, %c20_285, %c64_286], %651 {strides = array<i32>} : memref<2x24x128xf32, #tpu.memory_space<vmem>>, vector<1x4x24xf32>,
    %c1_287 = arith.constant 1 : index
    %c3_288 = arith.constant 3 : index
    %c0_289 = arith.constant 0 : index
    %c0_290 = arith.constant 0 : index
    %652 = vector.load %arg1[%c1_287, %c3_288, %c0_289, %c0_290] : memref<2x4x16x16xf32, #tpu.memory_space<vmem>>, vector<1x1x16x16xf32>
    %653 = vector.shape_cast %652 : vector<1x1x16x16xf32> to vector<16x16xf32>
    %654 = vector.extract_strided_slice %653 {offsets = [0, 0], sizes = [16, 1], strides = [1, 1]} : vector<16x16xf32> to vector<16x1xf32>
    %655 = vector.shape_cast %654 : vector<16x1xf32> to vector<16x1xf32>
    %656 = vector.broadcast %655 : vector<16x1xf32> to vector<16x4xf32>
    %657 = vector.extract_strided_slice %653 {offsets = [0, 15], sizes = [16, 1], strides = [1, 1]} : vector<16x16xf32> to vector<16x1xf32>
    %658 = vector.shape_cast %657 : vector<16x1xf32> to vector<16x1xf32>
    %659 = vector.broadcast %658 : vector<16x1xf32> to vector<16x4xf32>
    %660 = tpu.concatenate %656, %653, %659 in 1 : vector<16x4xf32>, vector<16x16xf32>, vector<16x4xf32> -> vector<16x24xf32>
    %c1_291 = arith.constant 1 : index
    %c4_292 = arith.constant 4 : index
    %c96_293 = arith.constant 96 : index
    %661 = vector.load %arg3[%c1_291, %c4_292, %c96_293] : memref<2x24x128xf32, #tpu.memory_space<vmem>>, vector<1x16x24xf32>
    %662 = vector.shape_cast %661 : vector<1x16x24xf32> to vector<16x24xf32>
    %663 = vector.shape_cast %660 : vector<16x24xf32> to vector<1x16x24xf32>
    tpu.vector_store %arg3[%c1_291, %c4_292, %c96_293], %663 {strides = array<i32>} : memref<2x24x128xf32, #tpu.memory_space<vmem>>, vector<1x16x24xf32>,
    %664 = vector.extract_strided_slice %660 {offsets = [0, 0], sizes = [1, 24], strides = [1, 1]} : vector<16x24xf32> to vector<1x24xf32>
    %665 = vector.shape_cast %664 : vector<1x24xf32> to vector<1x24xf32>
    %666 = vector.broadcast %665 : vector<1x24xf32> to vector<4x24xf32>
    %c1_294 = arith.constant 1 : index
    %c0_295 = arith.constant 0 : index
    %c96_296 = arith.constant 96 : index
    %667 = vector.load %arg3[%c1_294, %c0_295, %c96_296] : memref<2x24x128xf32, #tpu.memory_space<vmem>>, vector<1x4x24xf32>
    %668 = vector.shape_cast %667 : vector<1x4x24xf32> to vector<4x24xf32>
    %669 = vector.shape_cast %666 : vector<4x24xf32> to vector<1x4x24xf32>
    tpu.vector_store %arg3[%c1_294, %c0_295, %c96_296], %669 {strides = array<i32>} : memref<2x24x128xf32, #tpu.memory_space<vmem>>, vector<1x4x24xf32>,
    %670 = vector.extract_strided_slice %660 {offsets = [15, 0], sizes = [1, 24], strides = [1, 1]} : vector<16x24xf32> to vector<1x24xf32>
    %671 = vector.shape_cast %670 : vector<1x24xf32> to vector<1x24xf32>
    %672 = vector.broadcast %671 : vector<1x24xf32> to vector<4x24xf32>
    %c1_297 = arith.constant 1 : index
    %c20_298 = arith.constant 20 : index
    %c96_299 = arith.constant 96 : index
    %673 = vector.load %arg3[%c1_297, %c20_298, %c96_299] : memref<2x24x128xf32, #tpu.memory_space<vmem>>, vector<1x4x24xf32>
    %674 = vector.shape_cast %673 : vector<1x4x24xf32> to vector<4x24xf32>
    %675 = vector.shape_cast %672 : vector<4x24xf32> to vector<1x4x24xf32>
    tpu.vector_store %arg3[%c1_297, %c20_298, %c96_299], %675 {strides = array<i32>} : memref<2x24x128xf32, #tpu.memory_space<vmem>>, vector<1x4x24xf32>,
    %c1_300 = arith.constant 1 : index
    %c0_301 = arith.constant 0 : index
    %c0_302 = arith.constant 0 : index
    %676 = vector.load %arg3[%c1_300, %c0_301, %c0_302] : memref<2x24x128xf32, #tpu.memory_space<vmem>>, vector<1x24x128xf32>
    %677 = vector.shape_cast %676 : vector<1x24x128xf32> to vector<24x128xf32>
    %c127_i32_303 = arith.constant 127 : i32
    %678 = tpu.dynamic_rotate %677 by %c127_i32_303 dim 1 : vector<24x128xf32>, i32 -> vector<24x128xf32>
    %679 = arith.addf %677, %678 : vector<24x128xf32>
    %c126_i32_304 = arith.constant 126 : i32
    %680 = tpu.dynamic_rotate %679 by %c126_i32_304 dim 1 : vector<24x128xf32>, i32 -> vector<24x128xf32>
    %681 = arith.addf %679, %680 : vector<24x128xf32>
    %c124_i32_305 = arith.constant 124 : i32
    %682 = tpu.dynamic_rotate %681 by %c124_i32_305 dim 1 : vector<24x128xf32>, i32 -> vector<24x128xf32>
    %683 = arith.addf %681, %682 : vector<24x128xf32>
    %c120_i32_306 = arith.constant 120 : i32
    %684 = tpu.dynamic_rotate %677 by %c120_i32_306 dim 1 : vector<24x128xf32>, i32 -> vector<24x128xf32>
    %685 = arith.addf %683, %684 : vector<24x128xf32>
    %c23_i32_307 = arith.constant 23 : i32
    %686 = tpu.dynamic_rotate %685 by %c23_i32_307 dim 0 : vector<24x128xf32>, i32 -> vector<24x128xf32>
    %687 = arith.addf %685, %686 : vector<24x128xf32>
    %c22_i32_308 = arith.constant 22 : i32
    %688 = tpu.dynamic_rotate %687 by %c22_i32_308 dim 0 : vector<24x128xf32>, i32 -> vector<24x128xf32>
    %689 = arith.addf %687, %688 : vector<24x128xf32>
    %c20_i32_309 = arith.constant 20 : i32
    %690 = tpu.dynamic_rotate %689 by %c20_i32_309 dim 0 : vector<24x128xf32>, i32 -> vector<24x128xf32>
    %691 = arith.addf %689, %690 : vector<24x128xf32>
    %c16_i32_310 = arith.constant 16 : i32
    %692 = tpu.dynamic_rotate %685 by %c16_i32_310 dim 0 : vector<24x128xf32>, i32 -> vector<24x128xf32>
    %693 = arith.addf %691, %692 : vector<24x128xf32>
    %c1_311 = arith.constant 1 : index
    %c4_312 = arith.constant 4 : index
    %c0_313 = arith.constant 0 : index
    %694 = vector.load %arg3[%c1_311, %c4_312, %c0_313] : memref<2x24x128xf32, #tpu.memory_space<vmem>>, vector<1x16x128xf32>
    %695 = vector.shape_cast %694 : vector<1x16x128xf32> to vector<16x128xf32>
    %c124_i32_314 = arith.constant 124 : i32
    %696 = tpu.dynamic_rotate %695 by %c124_i32_314 dim 1 : vector<16x128xf32>, i32 -> vector<16x128xf32>
    %697 = vector.extract_strided_slice %693 {offsets = [0, 0], sizes = [16, 128], strides = [1, 1]} : vector<24x128xf32> to vector<16x128xf32>
    %cst_315 = arith.constant 0.0123456791 : f32
    %698 = vector.broadcast %cst_315 : f32 to vector<16x128xf32>
    %699 = arith.mulf %697, %698 : vector<16x128xf32>
    %700 = arith.subf %699, %696 : vector<16x128xf32>
    %701 = vector.extract_strided_slice %700 {offsets = [0, 0], sizes = [16, 16], strides = [1, 1]} : vector<16x128xf32> to vector<16x16xf32>
    %702 = vector.extract_strided_slice %701 {offsets = [0, 0], sizes = [16, 1], strides = [1, 1]} : vector<16x16xf32> to vector<16x1xf32>
    %703 = vector.shape_cast %702 : vector<16x1xf32> to vector<16x1xf32>
    %704 = vector.broadcast %703 : vector<16x1xf32> to vector<16x3xf32>
    %705 = vector.extract_strided_slice %701 {offsets = [0, 15], sizes = [16, 1], strides = [1, 1]} : vector<16x16xf32> to vector<16x1xf32>
    %706 = vector.shape_cast %705 : vector<16x1xf32> to vector<16x1xf32>
    %707 = vector.broadcast %706 : vector<16x1xf32> to vector<16x3xf32>
    %708 = tpu.concatenate %704, %701, %707 in 1 : vector<16x3xf32>, vector<16x16xf32>, vector<16x3xf32> -> vector<16x22xf32>
    %c1_316 = arith.constant 1 : index
    %c3_317 = arith.constant 3 : index
    %c0_318 = arith.constant 0 : index
    %709 = vector.load %arg4[%c1_316, %c3_317, %c0_318] : memref<2x24x128xf32, #tpu.memory_space<vmem>>, vector<1x16x22xf32>
    %710 = vector.shape_cast %709 : vector<1x16x22xf32> to vector<16x22xf32>
    %711 = vector.shape_cast %708 : vector<16x22xf32> to vector<1x16x22xf32>
    tpu.vector_store %arg4[%c1_316, %c3_317, %c0_318], %711 {strides = array<i32>} : memref<2x24x128xf32, #tpu.memory_space<vmem>>, vector<1x16x22xf32>,
    %712 = vector.extract_strided_slice %708 {offsets = [0, 0], sizes = [1, 22], strides = [1, 1]} : vector<16x22xf32> to vector<1x22xf32>
    %713 = vector.shape_cast %712 : vector<1x22xf32> to vector<1x22xf32>
    %714 = vector.broadcast %713 : vector<1x22xf32> to vector<3x22xf32>
    %c1_319 = arith.constant 1 : index
    %c0_320 = arith.constant 0 : index
    %c0_321 = arith.constant 0 : index
    %715 = vector.load %arg4[%c1_319, %c0_320, %c0_321] : memref<2x24x128xf32, #tpu.memory_space<vmem>>, vector<1x3x22xf32>
    %716 = vector.shape_cast %715 : vector<1x3x22xf32> to vector<3x22xf32>
    %717 = vector.shape_cast %714 : vector<3x22xf32> to vector<1x3x22xf32>
    tpu.vector_store %arg4[%c1_319, %c0_320, %c0_321], %717 {strides = array<i32>} : memref<2x24x128xf32, #tpu.memory_space<vmem>>, vector<1x3x22xf32>,
    %718 = vector.extract_strided_slice %708 {offsets = [15, 0], sizes = [1, 22], strides = [1, 1]} : vector<16x22xf32> to vector<1x22xf32>
    %719 = vector.shape_cast %718 : vector<1x22xf32> to vector<1x22xf32>
    %720 = vector.broadcast %719 : vector<1x22xf32> to vector<3x22xf32>
    %c1_322 = arith.constant 1 : index
    %c19_323 = arith.constant 19 : index
    %c0_324 = arith.constant 0 : index
    %721 = vector.load %arg4[%c1_322, %c19_323, %c0_324] : memref<2x24x128xf32, #tpu.memory_space<vmem>>, vector<1x3x22xf32>
    %722 = vector.shape_cast %721 : vector<1x3x22xf32> to vector<3x22xf32>
    %723 = vector.shape_cast %720 : vector<3x22xf32> to vector<1x3x22xf32>
    tpu.vector_store %arg4[%c1_322, %c19_323, %c0_324], %723 {strides = array<i32>} : memref<2x24x128xf32, #tpu.memory_space<vmem>>, vector<1x3x22xf32>,
    %724 = vector.extract_strided_slice %700 {offsets = [0, 32], sizes = [16, 16], strides = [1, 1]} : vector<16x128xf32> to vector<16x16xf32>
    %725 = vector.extract_strided_slice %724 {offsets = [0, 0], sizes = [16, 1], strides = [1, 1]} : vector<16x16xf32> to vector<16x1xf32>
    %726 = vector.shape_cast %725 : vector<16x1xf32> to vector<16x1xf32>
    %727 = vector.broadcast %726 : vector<16x1xf32> to vector<16x3xf32>
    %728 = vector.extract_strided_slice %724 {offsets = [0, 15], sizes = [16, 1], strides = [1, 1]} : vector<16x16xf32> to vector<16x1xf32>
    %729 = vector.shape_cast %728 : vector<16x1xf32> to vector<16x1xf32>
    %730 = vector.broadcast %729 : vector<16x1xf32> to vector<16x3xf32>
    %731 = tpu.concatenate %727, %724, %730 in 1 : vector<16x3xf32>, vector<16x16xf32>, vector<16x3xf32> -> vector<16x22xf32>
    %c1_325 = arith.constant 1 : index
    %c3_326 = arith.constant 3 : index
    %c32_327 = arith.constant 32 : index
    %732 = vector.load %arg4[%c1_325, %c3_326, %c32_327] : memref<2x24x128xf32, #tpu.memory_space<vmem>>, vector<1x16x22xf32>
    %733 = vector.shape_cast %732 : vector<1x16x22xf32> to vector<16x22xf32>
    %734 = vector.shape_cast %731 : vector<16x22xf32> to vector<1x16x22xf32>
    tpu.vector_store %arg4[%c1_325, %c3_326, %c32_327], %734 {strides = array<i32>} : memref<2x24x128xf32, #tpu.memory_space<vmem>>, vector<1x16x22xf32>,
    %735 = vector.extract_strided_slice %731 {offsets = [0, 0], sizes = [1, 22], strides = [1, 1]} : vector<16x22xf32> to vector<1x22xf32>
    %736 = vector.shape_cast %735 : vector<1x22xf32> to vector<1x22xf32>
    %737 = vector.broadcast %736 : vector<1x22xf32> to vector<3x22xf32>
    %c1_328 = arith.constant 1 : index
    %c0_329 = arith.constant 0 : index
    %c32_330 = arith.constant 32 : index
    %738 = vector.load %arg4[%c1_328, %c0_329, %c32_330] : memref<2x24x128xf32, #tpu.memory_space<vmem>>, vector<1x3x22xf32>
    %739 = vector.shape_cast %738 : vector<1x3x22xf32> to vector<3x22xf32>
    %740 = vector.shape_cast %737 : vector<3x22xf32> to vector<1x3x22xf32>
    tpu.vector_store %arg4[%c1_328, %c0_329, %c32_330], %740 {strides = array<i32>} : memref<2x24x128xf32, #tpu.memory_space<vmem>>, vector<1x3x22xf32>,
    %741 = vector.extract_strided_slice %731 {offsets = [15, 0], sizes = [1, 22], strides = [1, 1]} : vector<16x22xf32> to vector<1x22xf32>
    %742 = vector.shape_cast %741 : vector<1x22xf32> to vector<1x22xf32>
    %743 = vector.broadcast %742 : vector<1x22xf32> to vector<3x22xf32>
    %c1_331 = arith.constant 1 : index
    %c19_332 = arith.constant 19 : index
    %c32_333 = arith.constant 32 : index
    %744 = vector.load %arg4[%c1_331, %c19_332, %c32_333] : memref<2x24x128xf32, #tpu.memory_space<vmem>>, vector<1x3x22xf32>
    %745 = vector.shape_cast %744 : vector<1x3x22xf32> to vector<3x22xf32>
    %746 = vector.shape_cast %743 : vector<3x22xf32> to vector<1x3x22xf32>
    tpu.vector_store %arg4[%c1_331, %c19_332, %c32_333], %746 {strides = array<i32>} : memref<2x24x128xf32, #tpu.memory_space<vmem>>, vector<1x3x22xf32>,
    %747 = vector.extract_strided_slice %700 {offsets = [0, 64], sizes = [16, 16], strides = [1, 1]} : vector<16x128xf32> to vector<16x16xf32>
    %748 = vector.extract_strided_slice %747 {offsets = [0, 0], sizes = [16, 1], strides = [1, 1]} : vector<16x16xf32> to vector<16x1xf32>
    %749 = vector.shape_cast %748 : vector<16x1xf32> to vector<16x1xf32>
    %750 = vector.broadcast %749 : vector<16x1xf32> to vector<16x3xf32>
    %751 = vector.extract_strided_slice %747 {offsets = [0, 15], sizes = [16, 1], strides = [1, 1]} : vector<16x16xf32> to vector<16x1xf32>
    %752 = vector.shape_cast %751 : vector<16x1xf32> to vector<16x1xf32>
    %753 = vector.broadcast %752 : vector<16x1xf32> to vector<16x3xf32>
    %754 = tpu.concatenate %750, %747, %753 in 1 : vector<16x3xf32>, vector<16x16xf32>, vector<16x3xf32> -> vector<16x22xf32>
    %c1_334 = arith.constant 1 : index
    %c3_335 = arith.constant 3 : index
    %c64_336 = arith.constant 64 : index
    %755 = vector.load %arg4[%c1_334, %c3_335, %c64_336] : memref<2x24x128xf32, #tpu.memory_space<vmem>>, vector<1x16x22xf32>
    %756 = vector.shape_cast %755 : vector<1x16x22xf32> to vector<16x22xf32>
    %757 = vector.shape_cast %754 : vector<16x22xf32> to vector<1x16x22xf32>
    tpu.vector_store %arg4[%c1_334, %c3_335, %c64_336], %757 {strides = array<i32>} : memref<2x24x128xf32, #tpu.memory_space<vmem>>, vector<1x16x22xf32>,
    %758 = vector.extract_strided_slice %754 {offsets = [0, 0], sizes = [1, 22], strides = [1, 1]} : vector<16x22xf32> to vector<1x22xf32>
    %759 = vector.shape_cast %758 : vector<1x22xf32> to vector<1x22xf32>
    %760 = vector.broadcast %759 : vector<1x22xf32> to vector<3x22xf32>
    %c1_337 = arith.constant 1 : index
    %c0_338 = arith.constant 0 : index
    %c64_339 = arith.constant 64 : index
    %761 = vector.load %arg4[%c1_337, %c0_338, %c64_339] : memref<2x24x128xf32, #tpu.memory_space<vmem>>, vector<1x3x22xf32>
    %762 = vector.shape_cast %761 : vector<1x3x22xf32> to vector<3x22xf32>
    %763 = vector.shape_cast %760 : vector<3x22xf32> to vector<1x3x22xf32>
    tpu.vector_store %arg4[%c1_337, %c0_338, %c64_339], %763 {strides = array<i32>} : memref<2x24x128xf32, #tpu.memory_space<vmem>>, vector<1x3x22xf32>,
    %764 = vector.extract_strided_slice %754 {offsets = [15, 0], sizes = [1, 22], strides = [1, 1]} : vector<16x22xf32> to vector<1x22xf32>
    %765 = vector.shape_cast %764 : vector<1x22xf32> to vector<1x22xf32>
    %766 = vector.broadcast %765 : vector<1x22xf32> to vector<3x22xf32>
    %c1_340 = arith.constant 1 : index
    %c19_341 = arith.constant 19 : index
    %c64_342 = arith.constant 64 : index
    %767 = vector.load %arg4[%c1_340, %c19_341, %c64_342] : memref<2x24x128xf32, #tpu.memory_space<vmem>>, vector<1x3x22xf32>
    %768 = vector.shape_cast %767 : vector<1x3x22xf32> to vector<3x22xf32>
    %769 = vector.shape_cast %766 : vector<3x22xf32> to vector<1x3x22xf32>
    tpu.vector_store %arg4[%c1_340, %c19_341, %c64_342], %769 {strides = array<i32>} : memref<2x24x128xf32, #tpu.memory_space<vmem>>, vector<1x3x22xf32>,
    %770 = vector.extract_strided_slice %700 {offsets = [0, 96], sizes = [16, 16], strides = [1, 1]} : vector<16x128xf32> to vector<16x16xf32>
    %771 = vector.extract_strided_slice %770 {offsets = [0, 0], sizes = [16, 1], strides = [1, 1]} : vector<16x16xf32> to vector<16x1xf32>
    %772 = vector.shape_cast %771 : vector<16x1xf32> to vector<16x1xf32>
    %773 = vector.broadcast %772 : vector<16x1xf32> to vector<16x3xf32>
    %774 = vector.extract_strided_slice %770 {offsets = [0, 15], sizes = [16, 1], strides = [1, 1]} : vector<16x16xf32> to vector<16x1xf32>
    %775 = vector.shape_cast %774 : vector<16x1xf32> to vector<16x1xf32>
    %776 = vector.broadcast %775 : vector<16x1xf32> to vector<16x3xf32>
    %777 = tpu.concatenate %773, %770, %776 in 1 : vector<16x3xf32>, vector<16x16xf32>, vector<16x3xf32> -> vector<16x22xf32>
    %c1_343 = arith.constant 1 : index
    %c3_344 = arith.constant 3 : index
    %c96_345 = arith.constant 96 : index
    %778 = vector.load %arg4[%c1_343, %c3_344, %c96_345] : memref<2x24x128xf32, #tpu.memory_space<vmem>>, vector<1x16x22xf32>
    %779 = vector.shape_cast %778 : vector<1x16x22xf32> to vector<16x22xf32>
    %780 = vector.shape_cast %777 : vector<16x22xf32> to vector<1x16x22xf32>
    tpu.vector_store %arg4[%c1_343, %c3_344, %c96_345], %780 {strides = array<i32>} : memref<2x24x128xf32, #tpu.memory_space<vmem>>, vector<1x16x22xf32>,
    %781 = vector.extract_strided_slice %777 {offsets = [0, 0], sizes = [1, 22], strides = [1, 1]} : vector<16x22xf32> to vector<1x22xf32>
    %782 = vector.shape_cast %781 : vector<1x22xf32> to vector<1x22xf32>
    %783 = vector.broadcast %782 : vector<1x22xf32> to vector<3x22xf32>
    %c1_346 = arith.constant 1 : index
    %c0_347 = arith.constant 0 : index
    %c96_348 = arith.constant 96 : index
    %784 = vector.load %arg4[%c1_346, %c0_347, %c96_348] : memref<2x24x128xf32, #tpu.memory_space<vmem>>, vector<1x3x22xf32>
    %785 = vector.shape_cast %784 : vector<1x3x22xf32> to vector<3x22xf32>
    %786 = vector.shape_cast %783 : vector<3x22xf32> to vector<1x3x22xf32>
    tpu.vector_store %arg4[%c1_346, %c0_347, %c96_348], %786 {strides = array<i32>} : memref<2x24x128xf32, #tpu.memory_space<vmem>>, vector<1x3x22xf32>,
    %787 = vector.extract_strided_slice %777 {offsets = [15, 0], sizes = [1, 22], strides = [1, 1]} : vector<16x22xf32> to vector<1x22xf32>
    %788 = vector.shape_cast %787 : vector<1x22xf32> to vector<1x22xf32>
    %789 = vector.broadcast %788 : vector<1x22xf32> to vector<3x22xf32>
    %c1_349 = arith.constant 1 : index
    %c19_350 = arith.constant 19 : index
    %c96_351 = arith.constant 96 : index
    %790 = vector.load %arg4[%c1_349, %c19_350, %c96_351] : memref<2x24x128xf32, #tpu.memory_space<vmem>>, vector<1x3x22xf32>
    %791 = vector.shape_cast %790 : vector<1x3x22xf32> to vector<3x22xf32>
    %792 = vector.shape_cast %789 : vector<3x22xf32> to vector<1x3x22xf32>
    tpu.vector_store %arg4[%c1_349, %c19_350, %c96_351], %792 {strides = array<i32>} : memref<2x24x128xf32, #tpu.memory_space<vmem>>, vector<1x3x22xf32>,
    %c1_352 = arith.constant 1 : index
    %c0_353 = arith.constant 0 : index
    %c0_354 = arith.constant 0 : index
    %793 = vector.load %arg4[%c1_352, %c0_353, %c0_354] : memref<2x24x128xf32, #tpu.memory_space<vmem>>, vector<1x16x128xf32>
    %794 = vector.shape_cast %793 : vector<1x16x128xf32> to vector<16x128xf32>
    %c1_355 = arith.constant 1 : index
    %c1_356 = arith.constant 1 : index
    %c0_357 = arith.constant 0 : index
    %795 = vector.load %arg4[%c1_355, %c1_356, %c0_357] : memref<2x24x128xf32, #tpu.memory_space<vmem>>, vector<1x16x128xf32>
    %796 = vector.shape_cast %795 : vector<1x16x128xf32> to vector<16x128xf32>
    %c1_358 = arith.constant 1 : index
    %c2_359 = arith.constant 2 : index
    %c0_360 = arith.constant 0 : index
    %797 = vector.load %arg4[%c1_358, %c2_359, %c0_360] : memref<2x24x128xf32, #tpu.memory_space<vmem>>, vector<1x16x128xf32>
    %798 = vector.shape_cast %797 : vector<1x16x128xf32> to vector<16x128xf32>
    %c1_361 = arith.constant 1 : index
    %c3_362 = arith.constant 3 : index
    %c0_363 = arith.constant 0 : index
    %799 = vector.load %arg4[%c1_361, %c3_362, %c0_363] : memref<2x24x128xf32, #tpu.memory_space<vmem>>, vector<1x16x128xf32>
    %800 = vector.shape_cast %799 : vector<1x16x128xf32> to vector<16x128xf32>
    %c1_364 = arith.constant 1 : index
    %c4_365 = arith.constant 4 : index
    %c0_366 = arith.constant 0 : index
    %801 = vector.load %arg4[%c1_364, %c4_365, %c0_366] : memref<2x24x128xf32, #tpu.memory_space<vmem>>, vector<1x16x128xf32>
    %802 = vector.shape_cast %801 : vector<1x16x128xf32> to vector<16x128xf32>
    %c1_367 = arith.constant 1 : index
    %c5_368 = arith.constant 5 : index
    %c0_369 = arith.constant 0 : index
    %803 = vector.load %arg4[%c1_367, %c5_368, %c0_369] : memref<2x24x128xf32, #tpu.memory_space<vmem>>, vector<1x16x128xf32>
    %804 = vector.shape_cast %803 : vector<1x16x128xf32> to vector<16x128xf32>
    %c1_370 = arith.constant 1 : index
    %c6_371 = arith.constant 6 : index
    %c0_372 = arith.constant 0 : index
    %805 = vector.load %arg4[%c1_370, %c6_371, %c0_372] : memref<2x24x128xf32, #tpu.memory_space<vmem>>, vector<1x16x128xf32>
    %806 = vector.shape_cast %805 : vector<1x16x128xf32> to vector<16x128xf32>
    %c127_i32_373 = arith.constant 127 : i32
    %807 = tpu.dynamic_rotate %794 by %c127_i32_373 dim 1 : vector<16x128xf32>, i32 -> vector<16x128xf32>
    %c126_i32_374 = arith.constant 126 : i32
    %808 = tpu.dynamic_rotate %794 by %c126_i32_374 dim 1 : vector<16x128xf32>, i32 -> vector<16x128xf32>
    %c125_i32_375 = arith.constant 125 : i32
    %809 = tpu.dynamic_rotate %794 by %c125_i32_375 dim 1 : vector<16x128xf32>, i32 -> vector<16x128xf32>
    %c124_i32_376 = arith.constant 124 : i32
    %810 = tpu.dynamic_rotate %794 by %c124_i32_376 dim 1 : vector<16x128xf32>, i32 -> vector<16x128xf32>
    %c123_i32_377 = arith.constant 123 : i32
    %811 = tpu.dynamic_rotate %794 by %c123_i32_377 dim 1 : vector<16x128xf32>, i32 -> vector<16x128xf32>
    %c122_i32_378 = arith.constant 122 : i32
    %812 = tpu.dynamic_rotate %794 by %c122_i32_378 dim 1 : vector<16x128xf32>, i32 -> vector<16x128xf32>
    %c127_i32_379 = arith.constant 127 : i32
    %813 = tpu.dynamic_rotate %796 by %c127_i32_379 dim 1 : vector<16x128xf32>, i32 -> vector<16x128xf32>
    %c126_i32_380 = arith.constant 126 : i32
    %814 = tpu.dynamic_rotate %796 by %c126_i32_380 dim 1 : vector<16x128xf32>, i32 -> vector<16x128xf32>
    %c125_i32_381 = arith.constant 125 : i32
    %815 = tpu.dynamic_rotate %796 by %c125_i32_381 dim 1 : vector<16x128xf32>, i32 -> vector<16x128xf32>
    %c124_i32_382 = arith.constant 124 : i32
    %816 = tpu.dynamic_rotate %796 by %c124_i32_382 dim 1 : vector<16x128xf32>, i32 -> vector<16x128xf32>
    %c123_i32_383 = arith.constant 123 : i32
    %817 = tpu.dynamic_rotate %796 by %c123_i32_383 dim 1 : vector<16x128xf32>, i32 -> vector<16x128xf32>
    %c122_i32_384 = arith.constant 122 : i32
    %818 = tpu.dynamic_rotate %796 by %c122_i32_384 dim 1 : vector<16x128xf32>, i32 -> vector<16x128xf32>
    %c127_i32_385 = arith.constant 127 : i32
    %819 = tpu.dynamic_rotate %798 by %c127_i32_385 dim 1 : vector<16x128xf32>, i32 -> vector<16x128xf32>
    %c126_i32_386 = arith.constant 126 : i32
    %820 = tpu.dynamic_rotate %798 by %c126_i32_386 dim 1 : vector<16x128xf32>, i32 -> vector<16x128xf32>
    %c125_i32_387 = arith.constant 125 : i32
    %821 = tpu.dynamic_rotate %798 by %c125_i32_387 dim 1 : vector<16x128xf32>, i32 -> vector<16x128xf32>
    %c124_i32_388 = arith.constant 124 : i32
    %822 = tpu.dynamic_rotate %798 by %c124_i32_388 dim 1 : vector<16x128xf32>, i32 -> vector<16x128xf32>
    %c123_i32_389 = arith.constant 123 : i32
    %823 = tpu.dynamic_rotate %798 by %c123_i32_389 dim 1 : vector<16x128xf32>, i32 -> vector<16x128xf32>
    %c122_i32_390 = arith.constant 122 : i32
    %824 = tpu.dynamic_rotate %798 by %c122_i32_390 dim 1 : vector<16x128xf32>, i32 -> vector<16x128xf32>
    %c127_i32_391 = arith.constant 127 : i32
    %825 = tpu.dynamic_rotate %800 by %c127_i32_391 dim 1 : vector<16x128xf32>, i32 -> vector<16x128xf32>
    %c126_i32_392 = arith.constant 126 : i32
    %826 = tpu.dynamic_rotate %800 by %c126_i32_392 dim 1 : vector<16x128xf32>, i32 -> vector<16x128xf32>
    %c125_i32_393 = arith.constant 125 : i32
    %827 = tpu.dynamic_rotate %800 by %c125_i32_393 dim 1 : vector<16x128xf32>, i32 -> vector<16x128xf32>
    %c124_i32_394 = arith.constant 124 : i32
    %828 = tpu.dynamic_rotate %800 by %c124_i32_394 dim 1 : vector<16x128xf32>, i32 -> vector<16x128xf32>
    %c123_i32_395 = arith.constant 123 : i32
    %829 = tpu.dynamic_rotate %800 by %c123_i32_395 dim 1 : vector<16x128xf32>, i32 -> vector<16x128xf32>
    %c122_i32_396 = arith.constant 122 : i32
    %830 = tpu.dynamic_rotate %800 by %c122_i32_396 dim 1 : vector<16x128xf32>, i32 -> vector<16x128xf32>
    %c127_i32_397 = arith.constant 127 : i32
    %831 = tpu.dynamic_rotate %802 by %c127_i32_397 dim 1 : vector<16x128xf32>, i32 -> vector<16x128xf32>
    %c126_i32_398 = arith.constant 126 : i32
    %832 = tpu.dynamic_rotate %802 by %c126_i32_398 dim 1 : vector<16x128xf32>, i32 -> vector<16x128xf32>
    %c125_i32_399 = arith.constant 125 : i32
    %833 = tpu.dynamic_rotate %802 by %c125_i32_399 dim 1 : vector<16x128xf32>, i32 -> vector<16x128xf32>
    %c124_i32_400 = arith.constant 124 : i32
    %834 = tpu.dynamic_rotate %802 by %c124_i32_400 dim 1 : vector<16x128xf32>, i32 -> vector<16x128xf32>
    %c123_i32_401 = arith.constant 123 : i32
    %835 = tpu.dynamic_rotate %802 by %c123_i32_401 dim 1 : vector<16x128xf32>, i32 -> vector<16x128xf32>
    %c122_i32_402 = arith.constant 122 : i32
    %836 = tpu.dynamic_rotate %802 by %c122_i32_402 dim 1 : vector<16x128xf32>, i32 -> vector<16x128xf32>
    %c127_i32_403 = arith.constant 127 : i32
    %837 = tpu.dynamic_rotate %804 by %c127_i32_403 dim 1 : vector<16x128xf32>, i32 -> vector<16x128xf32>
    %c126_i32_404 = arith.constant 126 : i32
    %838 = tpu.dynamic_rotate %804 by %c126_i32_404 dim 1 : vector<16x128xf32>, i32 -> vector<16x128xf32>
    %c125_i32_405 = arith.constant 125 : i32
    %839 = tpu.dynamic_rotate %804 by %c125_i32_405 dim 1 : vector<16x128xf32>, i32 -> vector<16x128xf32>
    %c124_i32_406 = arith.constant 124 : i32
    %840 = tpu.dynamic_rotate %804 by %c124_i32_406 dim 1 : vector<16x128xf32>, i32 -> vector<16x128xf32>
    %c123_i32_407 = arith.constant 123 : i32
    %841 = tpu.dynamic_rotate %804 by %c123_i32_407 dim 1 : vector<16x128xf32>, i32 -> vector<16x128xf32>
    %c122_i32_408 = arith.constant 122 : i32
    %842 = tpu.dynamic_rotate %804 by %c122_i32_408 dim 1 : vector<16x128xf32>, i32 -> vector<16x128xf32>
    %c127_i32_409 = arith.constant 127 : i32
    %843 = tpu.dynamic_rotate %806 by %c127_i32_409 dim 1 : vector<16x128xf32>, i32 -> vector<16x128xf32>
    %c126_i32_410 = arith.constant 126 : i32
    %844 = tpu.dynamic_rotate %806 by %c126_i32_410 dim 1 : vector<16x128xf32>, i32 -> vector<16x128xf32>
    %c125_i32_411 = arith.constant 125 : i32
    %845 = tpu.dynamic_rotate %806 by %c125_i32_411 dim 1 : vector<16x128xf32>, i32 -> vector<16x128xf32>
    %c124_i32_412 = arith.constant 124 : i32
    %846 = tpu.dynamic_rotate %806 by %c124_i32_412 dim 1 : vector<16x128xf32>, i32 -> vector<16x128xf32>
    %c123_i32_413 = arith.constant 123 : i32
    %847 = tpu.dynamic_rotate %806 by %c123_i32_413 dim 1 : vector<16x128xf32>, i32 -> vector<16x128xf32>
    %c122_i32_414 = arith.constant 122 : i32
    %848 = tpu.dynamic_rotate %806 by %c122_i32_414 dim 1 : vector<16x128xf32>, i32 -> vector<16x128xf32>
    %cst_415 = arith.constant 0.036632847 : f32
    %849 = vector.broadcast %cst_415 : f32 to vector<16x128xf32>
    %850 = arith.mulf %800, %849 : vector<16x128xf32>
    %cst_416 = arith.constant 0.111280762 : f32
    %851 = vector.broadcast %cst_416 : f32 to vector<16x128xf32>
    %852 = arith.mulf %825, %851 : vector<16x128xf32>
    %853 = arith.addf %850, %852 : vector<16x128xf32>
    %cst_417 = arith.constant 0.216745317 : f32
    %854 = vector.broadcast %cst_417 : f32 to vector<16x128xf32>
    %855 = arith.mulf %826, %854 : vector<16x128xf32>
    %856 = arith.addf %853, %855 : vector<16x128xf32>
    %cst_418 = arith.constant 0.270682156 : f32
    %857 = vector.broadcast %cst_418 : f32 to vector<16x128xf32>
    %858 = arith.mulf %827, %857 : vector<16x128xf32>
    %859 = arith.addf %856, %858 : vector<16x128xf32>
    %cst_419 = arith.constant 0.216745317 : f32
    %860 = vector.broadcast %cst_419 : f32 to vector<16x128xf32>
    %861 = arith.mulf %828, %860 : vector<16x128xf32>
    %862 = arith.addf %859, %861 : vector<16x128xf32>
    %cst_420 = arith.constant 0.111280762 : f32
    %863 = vector.broadcast %cst_420 : f32 to vector<16x128xf32>
    %864 = arith.mulf %829, %863 : vector<16x128xf32>
    %865 = arith.addf %862, %864 : vector<16x128xf32>
    %cst_421 = arith.constant 0.036632847 : f32
    %866 = vector.broadcast %cst_421 : f32 to vector<16x128xf32>
    %867 = arith.mulf %830, %866 : vector<16x128xf32>
    %868 = arith.addf %865, %867 : vector<16x128xf32>
    %cst_422 = arith.constant 0.000000e+00 : f32
    %869 = vector.broadcast %cst_422 : f32 to vector<16x128xf32>
    %cst_423 = arith.constant 0.036632847 : f32
    %870 = vector.broadcast %cst_423 : f32 to vector<16x128xf32>
    %871 = arith.mulf %798, %870 : vector<16x128xf32>
    %cst_424 = arith.constant 0.111280762 : f32
    %872 = vector.broadcast %cst_424 : f32 to vector<16x128xf32>
    %873 = arith.mulf %819, %872 : vector<16x128xf32>
    %874 = arith.addf %871, %873 : vector<16x128xf32>
    %cst_425 = arith.constant 0.216745317 : f32
    %875 = vector.broadcast %cst_425 : f32 to vector<16x128xf32>
    %876 = arith.mulf %826, %875 : vector<16x128xf32>
    %877 = arith.addf %874, %876 : vector<16x128xf32>
    %cst_426 = arith.constant 0.270682156 : f32
    %878 = vector.broadcast %cst_426 : f32 to vector<16x128xf32>
    %879 = arith.mulf %827, %878 : vector<16x128xf32>
    %880 = arith.addf %877, %879 : vector<16x128xf32>
    %cst_427 = arith.constant 0.216745317 : f32
    %881 = vector.broadcast %cst_427 : f32 to vector<16x128xf32>
    %882 = arith.mulf %828, %881 : vector<16x128xf32>
    %883 = arith.addf %880, %882 : vector<16x128xf32>
    %cst_428 = arith.constant 0.111280762 : f32
    %884 = vector.broadcast %cst_428 : f32 to vector<16x128xf32>
    %885 = arith.mulf %835, %884 : vector<16x128xf32>
    %886 = arith.addf %883, %885 : vector<16x128xf32>
    %cst_429 = arith.constant 0.036632847 : f32
    %887 = vector.broadcast %cst_429 : f32 to vector<16x128xf32>
    %888 = arith.mulf %836, %887 : vector<16x128xf32>
    %889 = arith.addf %886, %888 : vector<16x128xf32>
    %890 = arith.cmpf ogt, %889, %868 : vector<16x128xf32>
    %891 = arith.select %890, %889, %868 : vector<16x128xi1>, vector<16x128xf32>
    %cst_430 = arith.constant 1.000000e+00 : f32
    %892 = vector.broadcast %cst_430 : f32 to vector<16x128xf32>
    %893 = arith.select %890, %892, %869 : vector<16x128xi1>, vector<16x128xf32>
    %cst_431 = arith.constant 0.036632847 : f32
    %894 = vector.broadcast %cst_431 : f32 to vector<16x128xf32>
    %895 = arith.mulf %796, %894 : vector<16x128xf32>
    %cst_432 = arith.constant 0.111280762 : f32
    %896 = vector.broadcast %cst_432 : f32 to vector<16x128xf32>
    %897 = arith.mulf %819, %896 : vector<16x128xf32>
    %898 = arith.addf %895, %897 : vector<16x128xf32>
    %cst_433 = arith.constant 0.216745317 : f32
    %899 = vector.broadcast %cst_433 : f32 to vector<16x128xf32>
    %900 = arith.mulf %820, %899 : vector<16x128xf32>
    %901 = arith.addf %898, %900 : vector<16x128xf32>
    %cst_434 = arith.constant 0.270682156 : f32
    %902 = vector.broadcast %cst_434 : f32 to vector<16x128xf32>
    %903 = arith.mulf %827, %902 : vector<16x128xf32>
    %904 = arith.addf %901, %903 : vector<16x128xf32>
    %cst_435 = arith.constant 0.216745317 : f32
    %905 = vector.broadcast %cst_435 : f32 to vector<16x128xf32>
    %906 = arith.mulf %834, %905 : vector<16x128xf32>
    %907 = arith.addf %904, %906 : vector<16x128xf32>
    %cst_436 = arith.constant 0.111280762 : f32
    %908 = vector.broadcast %cst_436 : f32 to vector<16x128xf32>
    %909 = arith.mulf %835, %908 : vector<16x128xf32>
    %910 = arith.addf %907, %909 : vector<16x128xf32>
    %cst_437 = arith.constant 0.036632847 : f32
    %911 = vector.broadcast %cst_437 : f32 to vector<16x128xf32>
    %912 = arith.mulf %842, %911 : vector<16x128xf32>
    %913 = arith.addf %910, %912 : vector<16x128xf32>
    %914 = arith.cmpf ogt, %913, %891 : vector<16x128xf32>
    %915 = arith.select %914, %913, %891 : vector<16x128xi1>, vector<16x128xf32>
    %cst_438 = arith.constant 2.000000e+00 : f32
    %916 = vector.broadcast %cst_438 : f32 to vector<16x128xf32>
    %917 = arith.select %914, %916, %893 : vector<16x128xi1>, vector<16x128xf32>
    %cst_439 = arith.constant 0.036632847 : f32
    %918 = vector.broadcast %cst_439 : f32 to vector<16x128xf32>
    %919 = arith.mulf %794, %918 : vector<16x128xf32>
    %cst_440 = arith.constant 0.111280762 : f32
    %920 = vector.broadcast %cst_440 : f32 to vector<16x128xf32>
    %921 = arith.mulf %813, %920 : vector<16x128xf32>
    %922 = arith.addf %919, %921 : vector<16x128xf32>
    %cst_441 = arith.constant 0.216745317 : f32
    %923 = vector.broadcast %cst_441 : f32 to vector<16x128xf32>
    %924 = arith.mulf %820, %923 : vector<16x128xf32>
    %925 = arith.addf %922, %924 : vector<16x128xf32>
    %cst_442 = arith.constant 0.270682156 : f32
    %926 = vector.broadcast %cst_442 : f32 to vector<16x128xf32>
    %927 = arith.mulf %827, %926 : vector<16x128xf32>
    %928 = arith.addf %925, %927 : vector<16x128xf32>
    %cst_443 = arith.constant 0.216745317 : f32
    %929 = vector.broadcast %cst_443 : f32 to vector<16x128xf32>
    %930 = arith.mulf %834, %929 : vector<16x128xf32>
    %931 = arith.addf %928, %930 : vector<16x128xf32>
    %cst_444 = arith.constant 0.111280762 : f32
    %932 = vector.broadcast %cst_444 : f32 to vector<16x128xf32>
    %933 = arith.mulf %841, %932 : vector<16x128xf32>
    %934 = arith.addf %931, %933 : vector<16x128xf32>
    %cst_445 = arith.constant 0.036632847 : f32
    %935 = vector.broadcast %cst_445 : f32 to vector<16x128xf32>
    %936 = arith.mulf %848, %935 : vector<16x128xf32>
    %937 = arith.addf %934, %936 : vector<16x128xf32>
    %938 = arith.cmpf ogt, %937, %915 : vector<16x128xf32>
    %939 = arith.select %938, %937, %915 : vector<16x128xi1>, vector<16x128xf32>
    %cst_446 = arith.constant 3.000000e+00 : f32
    %940 = vector.broadcast %cst_446 : f32 to vector<16x128xf32>
    %941 = arith.select %938, %940, %917 : vector<16x128xi1>, vector<16x128xf32>
    %cst_447 = arith.constant 0.036632847 : f32
    %942 = vector.broadcast %cst_447 : f32 to vector<16x128xf32>
    %943 = arith.mulf %807, %942 : vector<16x128xf32>
    %cst_448 = arith.constant 0.111280762 : f32
    %944 = vector.broadcast %cst_448 : f32 to vector<16x128xf32>
    %945 = arith.mulf %814, %944 : vector<16x128xf32>
    %946 = arith.addf %943, %945 : vector<16x128xf32>
    %cst_449 = arith.constant 0.216745317 : f32
    %947 = vector.broadcast %cst_449 : f32 to vector<16x128xf32>
    %948 = arith.mulf %820, %947 : vector<16x128xf32>
    %949 = arith.addf %946, %948 : vector<16x128xf32>
    %cst_450 = arith.constant 0.270682156 : f32
    %950 = vector.broadcast %cst_450 : f32 to vector<16x128xf32>
    %951 = arith.mulf %827, %950 : vector<16x128xf32>
    %952 = arith.addf %949, %951 : vector<16x128xf32>
    %cst_451 = arith.constant 0.216745317 : f32
    %953 = vector.broadcast %cst_451 : f32 to vector<16x128xf32>
    %954 = arith.mulf %834, %953 : vector<16x128xf32>
    %955 = arith.addf %952, %954 : vector<16x128xf32>
    %cst_452 = arith.constant 0.111280762 : f32
    %956 = vector.broadcast %cst_452 : f32 to vector<16x128xf32>
    %957 = arith.mulf %840, %956 : vector<16x128xf32>
    %958 = arith.addf %955, %957 : vector<16x128xf32>
    %cst_453 = arith.constant 0.036632847 : f32
    %959 = vector.broadcast %cst_453 : f32 to vector<16x128xf32>
    %960 = arith.mulf %847, %959 : vector<16x128xf32>
    %961 = arith.addf %958, %960 : vector<16x128xf32>
    %962 = arith.cmpf ogt, %961, %939 : vector<16x128xf32>
    %963 = arith.select %962, %961, %939 : vector<16x128xi1>, vector<16x128xf32>
    %cst_454 = arith.constant 4.000000e+00 : f32
    %964 = vector.broadcast %cst_454 : f32 to vector<16x128xf32>
    %965 = arith.select %962, %964, %941 : vector<16x128xi1>, vector<16x128xf32>
    %cst_455 = arith.constant 0.036632847 : f32
    %966 = vector.broadcast %cst_455 : f32 to vector<16x128xf32>
    %967 = arith.mulf %808, %966 : vector<16x128xf32>
    %cst_456 = arith.constant 0.111280762 : f32
    %968 = vector.broadcast %cst_456 : f32 to vector<16x128xf32>
    %969 = arith.mulf %814, %968 : vector<16x128xf32>
    %970 = arith.addf %967, %969 : vector<16x128xf32>
    %cst_457 = arith.constant 0.216745317 : f32
    %971 = vector.broadcast %cst_457 : f32 to vector<16x128xf32>
    %972 = arith.mulf %821, %971 : vector<16x128xf32>
    %973 = arith.addf %970, %972 : vector<16x128xf32>
    %cst_458 = arith.constant 0.270682156 : f32
    %974 = vector.broadcast %cst_458 : f32 to vector<16x128xf32>
    %975 = arith.mulf %827, %974 : vector<16x128xf32>
    %976 = arith.addf %973, %975 : vector<16x128xf32>
    %cst_459 = arith.constant 0.216745317 : f32
    %977 = vector.broadcast %cst_459 : f32 to vector<16x128xf32>
    %978 = arith.mulf %833, %977 : vector<16x128xf32>
    %979 = arith.addf %976, %978 : vector<16x128xf32>
    %cst_460 = arith.constant 0.111280762 : f32
    %980 = vector.broadcast %cst_460 : f32 to vector<16x128xf32>
    %981 = arith.mulf %840, %980 : vector<16x128xf32>
    %982 = arith.addf %979, %981 : vector<16x128xf32>
    %cst_461 = arith.constant 0.036632847 : f32
    %983 = vector.broadcast %cst_461 : f32 to vector<16x128xf32>
    %984 = arith.mulf %846, %983 : vector<16x128xf32>
    %985 = arith.addf %982, %984 : vector<16x128xf32>
    %986 = arith.cmpf ogt, %985, %963 : vector<16x128xf32>
    %987 = arith.select %986, %985, %963 : vector<16x128xi1>, vector<16x128xf32>
    %cst_462 = arith.constant 5.000000e+00 : f32
    %988 = vector.broadcast %cst_462 : f32 to vector<16x128xf32>
    %989 = arith.select %986, %988, %965 : vector<16x128xi1>, vector<16x128xf32>
    %cst_463 = arith.constant 0.036632847 : f32
    %990 = vector.broadcast %cst_463 : f32 to vector<16x128xf32>
    %991 = arith.mulf %809, %990 : vector<16x128xf32>
    %cst_464 = arith.constant 0.111280762 : f32
    %992 = vector.broadcast %cst_464 : f32 to vector<16x128xf32>
    %993 = arith.mulf %815, %992 : vector<16x128xf32>
    %994 = arith.addf %991, %993 : vector<16x128xf32>
    %cst_465 = arith.constant 0.216745317 : f32
    %995 = vector.broadcast %cst_465 : f32 to vector<16x128xf32>
    %996 = arith.mulf %821, %995 : vector<16x128xf32>
    %997 = arith.addf %994, %996 : vector<16x128xf32>
    %cst_466 = arith.constant 0.270682156 : f32
    %998 = vector.broadcast %cst_466 : f32 to vector<16x128xf32>
    %999 = arith.mulf %827, %998 : vector<16x128xf32>
    %1000 = arith.addf %997, %999 : vector<16x128xf32>
    %cst_467 = arith.constant 0.216745317 : f32
    %1001 = vector.broadcast %cst_467 : f32 to vector<16x128xf32>
    %1002 = arith.mulf %833, %1001 : vector<16x128xf32>
    %1003 = arith.addf %1000, %1002 : vector<16x128xf32>
    %cst_468 = arith.constant 0.111280762 : f32
    %1004 = vector.broadcast %cst_468 : f32 to vector<16x128xf32>
    %1005 = arith.mulf %839, %1004 : vector<16x128xf32>
    %1006 = arith.addf %1003, %1005 : vector<16x128xf32>
    %cst_469 = arith.constant 0.036632847 : f32
    %1007 = vector.broadcast %cst_469 : f32 to vector<16x128xf32>
    %1008 = arith.mulf %845, %1007 : vector<16x128xf32>
    %1009 = arith.addf %1006, %1008 : vector<16x128xf32>
    %1010 = arith.cmpf ogt, %1009, %987 : vector<16x128xf32>
    %1011 = arith.select %1010, %1009, %987 : vector<16x128xi1>, vector<16x128xf32>
    %cst_470 = arith.constant 6.000000e+00 : f32
    %1012 = vector.broadcast %cst_470 : f32 to vector<16x128xf32>
    %1013 = arith.select %1010, %1012, %989 : vector<16x128xi1>, vector<16x128xf32>
    %cst_471 = arith.constant 0.036632847 : f32
    %1014 = vector.broadcast %cst_471 : f32 to vector<16x128xf32>
    %1015 = arith.mulf %810, %1014 : vector<16x128xf32>
    %cst_472 = arith.constant 0.111280762 : f32
    %1016 = vector.broadcast %cst_472 : f32 to vector<16x128xf32>
    %1017 = arith.mulf %816, %1016 : vector<16x128xf32>
    %1018 = arith.addf %1015, %1017 : vector<16x128xf32>
    %cst_473 = arith.constant 0.216745317 : f32
    %1019 = vector.broadcast %cst_473 : f32 to vector<16x128xf32>
    %1020 = arith.mulf %821, %1019 : vector<16x128xf32>
    %1021 = arith.addf %1018, %1020 : vector<16x128xf32>
    %cst_474 = arith.constant 0.270682156 : f32
    %1022 = vector.broadcast %cst_474 : f32 to vector<16x128xf32>
    %1023 = arith.mulf %827, %1022 : vector<16x128xf32>
    %1024 = arith.addf %1021, %1023 : vector<16x128xf32>
    %cst_475 = arith.constant 0.216745317 : f32
    %1025 = vector.broadcast %cst_475 : f32 to vector<16x128xf32>
    %1026 = arith.mulf %833, %1025 : vector<16x128xf32>
    %1027 = arith.addf %1024, %1026 : vector<16x128xf32>
    %cst_476 = arith.constant 0.111280762 : f32
    %1028 = vector.broadcast %cst_476 : f32 to vector<16x128xf32>
    %1029 = arith.mulf %838, %1028 : vector<16x128xf32>
    %1030 = arith.addf %1027, %1029 : vector<16x128xf32>
    %cst_477 = arith.constant 0.036632847 : f32
    %1031 = vector.broadcast %cst_477 : f32 to vector<16x128xf32>
    %1032 = arith.mulf %844, %1031 : vector<16x128xf32>
    %1033 = arith.addf %1030, %1032 : vector<16x128xf32>
    %1034 = arith.cmpf ogt, %1033, %1011 : vector<16x128xf32>
    %1035 = arith.select %1034, %1033, %1011 : vector<16x128xi1>, vector<16x128xf32>
    %cst_478 = arith.constant 7.000000e+00 : f32
    %1036 = vector.broadcast %cst_478 : f32 to vector<16x128xf32>
    %1037 = arith.select %1034, %1036, %1013 : vector<16x128xi1>, vector<16x128xf32>
    %cst_479 = arith.constant 0.036632847 : f32
    %1038 = vector.broadcast %cst_479 : f32 to vector<16x128xf32>
    %1039 = arith.mulf %811, %1038 : vector<16x128xf32>
    %cst_480 = arith.constant 0.111280762 : f32
    %1040 = vector.broadcast %cst_480 : f32 to vector<16x128xf32>
    %1041 = arith.mulf %816, %1040 : vector<16x128xf32>
    %1042 = arith.addf %1039, %1041 : vector<16x128xf32>
    %cst_481 = arith.constant 0.216745317 : f32
    %1043 = vector.broadcast %cst_481 : f32 to vector<16x128xf32>
    %1044 = arith.mulf %822, %1043 : vector<16x128xf32>
    %1045 = arith.addf %1042, %1044 : vector<16x128xf32>
    %cst_482 = arith.constant 0.270682156 : f32
    %1046 = vector.broadcast %cst_482 : f32 to vector<16x128xf32>
    %1047 = arith.mulf %827, %1046 : vector<16x128xf32>
    %1048 = arith.addf %1045, %1047 : vector<16x128xf32>
    %cst_483 = arith.constant 0.216745317 : f32
    %1049 = vector.broadcast %cst_483 : f32 to vector<16x128xf32>
    %1050 = arith.mulf %832, %1049 : vector<16x128xf32>
    %1051 = arith.addf %1048, %1050 : vector<16x128xf32>
    %cst_484 = arith.constant 0.111280762 : f32
    %1052 = vector.broadcast %cst_484 : f32 to vector<16x128xf32>
    %1053 = arith.mulf %838, %1052 : vector<16x128xf32>
    %1054 = arith.addf %1051, %1053 : vector<16x128xf32>
    %cst_485 = arith.constant 0.036632847 : f32
    %1055 = vector.broadcast %cst_485 : f32 to vector<16x128xf32>
    %1056 = arith.mulf %843, %1055 : vector<16x128xf32>
    %1057 = arith.addf %1054, %1056 : vector<16x128xf32>
    %1058 = arith.cmpf ogt, %1057, %1035 : vector<16x128xf32>
    %1059 = arith.select %1058, %1057, %1035 : vector<16x128xi1>, vector<16x128xf32>
    %cst_486 = arith.constant 8.000000e+00 : f32
    %1060 = vector.broadcast %cst_486 : f32 to vector<16x128xf32>
    %1061 = arith.select %1058, %1060, %1037 : vector<16x128xi1>, vector<16x128xf32>
    %cst_487 = arith.constant 0.036632847 : f32
    %1062 = vector.broadcast %cst_487 : f32 to vector<16x128xf32>
    %1063 = arith.mulf %812, %1062 : vector<16x128xf32>
    %cst_488 = arith.constant 0.111280762 : f32
    %1064 = vector.broadcast %cst_488 : f32 to vector<16x128xf32>
    %1065 = arith.mulf %817, %1064 : vector<16x128xf32>
    %1066 = arith.addf %1063, %1065 : vector<16x128xf32>
    %cst_489 = arith.constant 0.216745317 : f32
    %1067 = vector.broadcast %cst_489 : f32 to vector<16x128xf32>
    %1068 = arith.mulf %822, %1067 : vector<16x128xf32>
    %1069 = arith.addf %1066, %1068 : vector<16x128xf32>
    %cst_490 = arith.constant 0.270682156 : f32
    %1070 = vector.broadcast %cst_490 : f32 to vector<16x128xf32>
    %1071 = arith.mulf %827, %1070 : vector<16x128xf32>
    %1072 = arith.addf %1069, %1071 : vector<16x128xf32>
    %cst_491 = arith.constant 0.216745317 : f32
    %1073 = vector.broadcast %cst_491 : f32 to vector<16x128xf32>
    %1074 = arith.mulf %832, %1073 : vector<16x128xf32>
    %1075 = arith.addf %1072, %1074 : vector<16x128xf32>
    %cst_492 = arith.constant 0.111280762 : f32
    %1076 = vector.broadcast %cst_492 : f32 to vector<16x128xf32>
    %1077 = arith.mulf %837, %1076 : vector<16x128xf32>
    %1078 = arith.addf %1075, %1077 : vector<16x128xf32>
    %cst_493 = arith.constant 0.036632847 : f32
    %1079 = vector.broadcast %cst_493 : f32 to vector<16x128xf32>
    %1080 = arith.mulf %806, %1079 : vector<16x128xf32>
    %1081 = arith.addf %1078, %1080 : vector<16x128xf32>
    %1082 = arith.cmpf ogt, %1081, %1059 : vector<16x128xf32>
    %1083 = arith.select %1082, %1081, %1059 : vector<16x128xi1>, vector<16x128xf32>
    %cst_494 = arith.constant 9.000000e+00 : f32
    %1084 = vector.broadcast %cst_494 : f32 to vector<16x128xf32>
    %1085 = arith.select %1082, %1084, %1061 : vector<16x128xi1>, vector<16x128xf32>
    %cst_495 = arith.constant 0.036632847 : f32
    %1086 = vector.broadcast %cst_495 : f32 to vector<16x128xf32>
    %1087 = arith.mulf %818, %1086 : vector<16x128xf32>
    %cst_496 = arith.constant 0.216745317 : f32
    %1088 = vector.broadcast %cst_496 : f32 to vector<16x128xf32>
    %1089 = arith.mulf %822, %1088 : vector<16x128xf32>
    %1090 = arith.addf %1087, %1089 : vector<16x128xf32>
    %cst_497 = arith.constant 0.111280762 : f32
    %1091 = vector.broadcast %cst_497 : f32 to vector<16x128xf32>
    %1092 = arith.mulf %823, %1091 : vector<16x128xf32>
    %1093 = arith.addf %1090, %1092 : vector<16x128xf32>
    %cst_498 = arith.constant 0.270682156 : f32
    %1094 = vector.broadcast %cst_498 : f32 to vector<16x128xf32>
    %1095 = arith.mulf %827, %1094 : vector<16x128xf32>
    %1096 = arith.addf %1093, %1095 : vector<16x128xf32>
    %cst_499 = arith.constant 0.111280762 : f32
    %1097 = vector.broadcast %cst_499 : f32 to vector<16x128xf32>
    %1098 = arith.mulf %831, %1097 : vector<16x128xf32>
    %1099 = arith.addf %1096, %1098 : vector<16x128xf32>
    %cst_500 = arith.constant 0.216745317 : f32
    %1100 = vector.broadcast %cst_500 : f32 to vector<16x128xf32>
    %1101 = arith.mulf %832, %1100 : vector<16x128xf32>
    %1102 = arith.addf %1099, %1101 : vector<16x128xf32>
    %cst_501 = arith.constant 0.036632847 : f32
    %1103 = vector.broadcast %cst_501 : f32 to vector<16x128xf32>
    %1104 = arith.mulf %804, %1103 : vector<16x128xf32>
    %1105 = arith.addf %1102, %1104 : vector<16x128xf32>
    %1106 = arith.cmpf ogt, %1105, %1083 : vector<16x128xf32>
    %1107 = arith.select %1106, %1105, %1083 : vector<16x128xi1>, vector<16x128xf32>
    %cst_502 = arith.constant 1.000000e+01 : f32
    %1108 = vector.broadcast %cst_502 : f32 to vector<16x128xf32>
    %1109 = arith.select %1106, %1108, %1085 : vector<16x128xi1>, vector<16x128xf32>
    %cst_503 = arith.constant 0.111280762 : f32
    %1110 = vector.broadcast %cst_503 : f32 to vector<16x128xf32>
    %1111 = arith.mulf %823, %1110 : vector<16x128xf32>
    %cst_504 = arith.constant 0.036632847 : f32
    %1112 = vector.broadcast %cst_504 : f32 to vector<16x128xf32>
    %1113 = arith.mulf %824, %1112 : vector<16x128xf32>
    %1114 = arith.addf %1111, %1113 : vector<16x128xf32>
    %cst_505 = arith.constant 0.216745317 : f32
    %1115 = vector.broadcast %cst_505 : f32 to vector<16x128xf32>
    %1116 = arith.mulf %826, %1115 : vector<16x128xf32>
    %1117 = arith.addf %1114, %1116 : vector<16x128xf32>
    %cst_506 = arith.constant 0.270682156 : f32
    %1118 = vector.broadcast %cst_506 : f32 to vector<16x128xf32>
    %1119 = arith.mulf %827, %1118 : vector<16x128xf32>
    %1120 = arith.addf %1117, %1119 : vector<16x128xf32>
    %cst_507 = arith.constant 0.216745317 : f32
    %1121 = vector.broadcast %cst_507 : f32 to vector<16x128xf32>
    %1122 = arith.mulf %828, %1121 : vector<16x128xf32>
    %1123 = arith.addf %1120, %1122 : vector<16x128xf32>
    %cst_508 = arith.constant 0.036632847 : f32
    %1124 = vector.broadcast %cst_508 : f32 to vector<16x128xf32>
    %1125 = arith.mulf %802, %1124 : vector<16x128xf32>
    %1126 = arith.addf %1123, %1125 : vector<16x128xf32>
    %cst_509 = arith.constant 0.111280762 : f32
    %1127 = vector.broadcast %cst_509 : f32 to vector<16x128xf32>
    %1128 = arith.mulf %831, %1127 : vector<16x128xf32>
    %1129 = arith.addf %1126, %1128 : vector<16x128xf32>
    %1130 = arith.cmpf ogt, %1129, %1107 : vector<16x128xf32>
    %1131 = arith.select %1130, %1129, %1107 : vector<16x128xi1>, vector<16x128xf32>
    %cst_510 = arith.constant 1.100000e+01 : f32
    %1132 = vector.broadcast %cst_510 : f32 to vector<16x128xf32>
    %1133 = arith.select %1130, %1132, %1109 : vector<16x128xi1>, vector<16x128xf32>
    %cst_511 = arith.constant 0.0416666679 : f32
    %1134 = vector.broadcast %cst_511 : f32 to vector<16x128xf32>
    %1135 = arith.mulf %1133, %1134 : vector<16x128xf32>
    %c16_i32_512 = arith.constant 16 : i32
    %1136 = tpu.dynamic_rotate %1135 by %c16_i32_512 dim 1 : vector<16x128xf32>, i32 -> vector<16x128xf32>
    %1137 = arith.select %18, %1131, %1136 : vector<16x128xi1>, vector<16x128xf32>
    %c1_513 = arith.constant 1 : index
    %c0_514 = arith.constant 0 : index
    %c0_515 = arith.constant 0 : index
    %1138 = vector.load %arg2[%c1_513, %c0_514, %c0_515] : memref<2x16x128xf32, #tpu.memory_space<vmem>>, vector<1x16x128xf32>
    %1139 = vector.shape_cast %1138 : vector<1x16x128xf32> to vector<16x128xf32>
    %1140 = vector.shape_cast %1137 : vector<16x128xf32> to vector<1x16x128xf32>
    tpu.vector_store %arg2[%c1_513, %c0_514, %c0_515], %1140 {strides = array<i32>} : memref<2x16x128xf32, #tpu.memory_space<vmem>>, vector<1x16x128xf32>,
    return
  }
  func.func @transform_0(%arg0: i32) -> (i32, i32, i32, i32) {
    %c0_i32 = arith.constant 0 : i32
    %c0_i32_0 = arith.constant 0 : i32
    %c0_i32_1 = arith.constant 0 : i32
    %c0_i32_2 = arith.constant 0 : i32
    %c0_i32_3 = arith.constant 0 : i32
    return %c0_i32, %c0_i32_0, %c0_i32_1, %c0_i32_2 : i32, i32, i32, i32
  }
  func.func @transform_1(%arg0: i32) -> (i32, i32, i32) {
    %c0_i32 = arith.constant 0 : i32
    %c0_i32_0 = arith.constant 0 : i32
    %c0_i32_1 = arith.constant 0 : i32
    %c0_i32_2 = arith.constant 0 : i32
    return %c0_i32, %c0_i32_0, %c0_i32_1 : i32, i32, i32
  }
}

</mosaic_0001>

<bundles_post_ra>
// kernel: lfeb_forward.1
= control target key start
LH: loop header
LB: loop body
LE: loop exit
PB: predicated region body
PF: predicated region fallthrough
CT: control target
= control target key end

     0   :  { %6 = vsyncpa [#allocation5], 0  ;;  %s2168_s6 = smov [#allocation4]   ;;  %s3851_s0 = inlined_call_operand.hbm [shape: f32[2,4,16,16], index: 0, kind: input, shape index: {}]   ;;  %s3852_s1 = inlined_call_operand.vmem [shape: f32[2,16,128], index: 1, kind: output, shape index: {}]  }
   0x1   :  { %s12_s7 = sshll.u32 %s2168_s6, 4  ;;  %s13_s7 = int_to_ptr.vmem [resolvable:$true] %s12_s7 }
   0x2   :  { %s2154_s8 = scalar_lea.vmem %s13_s7, 2048  ;;  %p2159_p1 = scmp.lt.s32.totalorder %s13_s7, %s13_s7 }
   0x3   :  { %p2155_p0 = scmp.ne.s32.totalorder %s13_s7, %s2154_s8  ;;  %p2160_p2 = scmp.lt.s32.totalorder %s2154_s8, %s2154_s8 }
   0x5   :  { %p2161_p3 = por %p2160_p2, %p2159_p1 }
   0x7   :  { %p2162_p4 = pnand %p2161_p3, %p2155_p0 }
   0x9   :  { %2165 = shalt.err (!%p2162_p4)
}
   0xa   :  { %s2169_s9 = smov 128   ;;  %s2170_s10 = smov 8  }
   0xb   :  { %18 = dma.hbm_to_vmem [thread:$0]  %s3851_s0, 2048, %s13_s7, [#allocation5], %s2169_s9, %s2169_s9, %s2170_s10  }
   0xc   :  { %2166 = dma.done.wait [#allocation5], 2048  }
   0xd   :  { %2167 = vsyncadd [#allocation5], 4294965248  ;;  %v2171_v0 = vmov 15   ;;  %v37_v1 = vld [vmem:[#allocation4] sm:$0xff]  ;;  %s2172_s13 = smov 4   ;;  %v84_v2 = vld [vmem:[#allocation4 + $0x10] sm:$0xff]  ;;  %v3853_v42 = vlaneseq }
   0xe   :  { %2095 = vset.pattern.permute.xlu1 %v2171_v0  ;;  %2097 = vset.pattern.permute.xlu0 %v2171_v0  ;;  %v38_v3 = vld [vmem:[#allocation4 + $0x8] sm:$0xff]  ;;  %v85_v4 = vld [vmem:[#allocation4 + $0x18] sm:$0xff]  ;;  %v2173_v5 = vmov 0   ;;  %v145_v6 = vld [vmem:[#allocation4 + $0x20] sm:$0xff]  ;;  %vm63_vm0 = vcmask 31744   ;;  %vm66_vm1 = vcmask 162816  }
   0xf   :  { %57 = vrot.lane.b32.xlu0 %v37_v1, %s2172_s13  ;;  %50 = vperm.xlu1 %2095, %v37_v1   ;;  %v206_v7 = vld [vmem:[#allocation4 + $0x30] sm:$0xff]  ;;  %v207_v8 = vld [vmem:[#allocation4 + $0x38] sm:$0xff]  ;;  %v1163_v9 = vld [vmem:[#allocation4 + $0x60] sm:$0xff]  ;;  %s2174_s0 = smov 32   ;;  %s2175_s14 = smov 64   ;;  %v2264_v45 = vshrl.u32 %v3853_v42, 7 }
  0x10   :  { %v1104_v10 = vld [vmem:[#allocation4 + $0x50] sm:$0xff]  ;;  %v146_v11 = vld [vmem:[#allocation4 + $0x28] sm:$0xff]  ;;  %v1060_v13 = vld [vmem:[#allocation4 + $0x40] sm:$0xff]  ;;  %vm69_vm2 = vcmask 195584   ;;  %vm76_vm3 = vcmask 191488   ;;  %s2176_s15 = smov 96  }
  0x11   :  { %v1222_v12 = vld [vmem:[#allocation4 + $0x70] sm:$0xff]  ;;  %v1105_v14 = vld [vmem:[#allocation4 + $0x58] sm:$0xff]  ;;  %v1164_v15 = vld [vmem:[#allocation4 + $0x68] sm:$0xff]  ;;  %v2267_v47 = vsub.s32 0, %v2264_v45  ;;  %v2280_v55 = vsub.s32 7, %v2264_v45  ;;  %vm122_vm4 = vcmask 457984  }
  0x12   :  { %v1223_v16 = vld [vmem:[#allocation4 + $0x78] sm:$0xff]  ;;  %v1061_v17 = vld [vmem:[#allocation4 + $0x48] sm:$0xff]  ;;  %vm183_vm5 = vcmask 720384   ;;  %vm244_vm6 = vcmask 982784   ;;  %vm133_vm7 = vcmask 453888   ;;  %s2177_s16 = smov 120  }
  0x13   :  { %97 = vperm.xlu0 %2097, %v84_v2   ;;  %54 = vperm.xlu1 %2095, %v38_v3   ;;  %s2178_s17 = smov 127   ;;  %s2179_s18 = smov 124   ;;  %vm194_vm8 = vcmask 716288   ;;  %vm255_vm9 = vcmask 978688   ;;  %vm310_vm10 = vcmp.lt.s32.totalorder %v2264_v45, 7  ;;  %vm320_vm11 = vcmp.lt.s32.totalorder %v2264_v45, 6 }
  0x14   :  { %s2180_s19 = smov 126   ;;  %vm330_vm12 = vcmp.lt.s32.totalorder %v2264_v45, 4  ;;  %s2181_s20 = smov 3   ;;  %vm371_vm13 = vcmask 23552   ;;  %vm374_vm14 = vcmask 154624   ;;  %vm377_vm15 = vcmask 179200  }
  0x15   :  { %s2186_s21 = smov 99   ;;  %s2188_s22 = smov 35  }
  0x16   :  { %s2189_s23 = smov 67   ;;  %s2191_s24 = smov 123  }
  0x17   :  { %106 = vrot.lane.b32.xlu0 %v85_v4, %s2172_s13  ;;  %59 = vrot.lane.b32.xlu1 %v38_v3, %s2172_s13  ;;  %s2192_s25 = smov 122   ;;  %s2193_s26 = smov 125  }
  0x18   :  { %2096 = vset.pattern.permute.xlu1 %v2173_v5  ;;  %s2195_s27 = smov 16  }
  0x1b   :  { %165 = vrot.lane.b32.xlu0 %v145_v6, %s2172_s13  ;;  %93 = vperm.xlu1 %2096, %v85_v4  }
  0x1f   :  { %219 = vperm.xlu0 %2097, %v206_v7   ;;  %2098 = vset.pattern.permute.xlu1 %v2171_v0 }
  0x20   :  { %101 = vperm.xlu1 %2098, %v85_v4  }
  0x23   :  { %228 = vrot.lane.b32.xlu0 %v207_v8, %s2172_s13 }
  0x24   :  { %104 = vrot.lane.b32.xlu1 %v84_v2, %s2172_s13 }
  0x25   :  { %2099 = vset.pattern.permute.xlu1 %v2173_v5 }
  0x27   :  { %1176 = vperm.xlu0 %2097, %v1163_v9  }
  0x28   :  { %149 = vperm.xlu1 %2099, %v145_v6  }
  0x2b   :  { %1124 = vrot.lane.b32.xlu0 %v1104_v10, %s2172_s13 }
  0x2c   :  { %2100 = vset.pattern.permute.xlu1 %v2171_v0 }
  0x2d   :  { %158 = vperm.xlu1 %2100, %v145_v6  }
  0x2f   :  { %1183 = vrot.lane.b32.xlu0 %v1163_v9, %s2172_s13 }
  0x31   :  { %162 = vperm.xlu1 %2100, %v146_v11  }
  0x33   :  { %1242 = vrot.lane.b32.xlu0 %v1222_v12, %s2172_s13 }
  0x35   :  { %167 = vrot.lane.b32.xlu1 %v146_v11, %s2172_s13 }
  0x36   :  { %2101 = vset.pattern.permute.xlu1 %v2173_v5 }
  0x37   :  { %1073 = vperm.xlu0 %2097, %v1060_v13  }
  0x39   :  { %215 = vperm.xlu1 %2101, %v207_v8  }
  0x3b   :  { %2110 = vset.pattern.permute.xlu0 %v2173_v5 }
  0x3c   :  { %41 = vperm.xlu0 %2110, %v37_v1  }
  0x3d   :  { %2102 = vset.pattern.permute.xlu1 %v2171_v0 }
  0x3e   :  { %223 = vperm.xlu1 %2102, %v207_v8  }
  0x40   :  { %46 = vperm.xlu0 %2110, %v38_v3  }
  0x42   :  { %226 = vrot.lane.b32.xlu1 %v206_v7, %s2172_s13 }
  0x43   :  { %2103 = vset.pattern.permute.xlu1 %v2173_v5 }
  0x44   :  { %88 = vperm.xlu0 %2110, %v84_v2  }
  0x46   :  { %1108 = vperm.xlu1 %2103, %v1104_v10  }
  0x48   :  { %154 = vperm.xlu0 %2110, %v146_v11  }
  0x4a   :  { %2104 = vset.pattern.permute.xlu1 %v2171_v0 }
  0x4b   :  { %1117 = vperm.xlu1 %2104, %v1104_v10  }
  0x4c   :  { %210 = vperm.xlu0 %2110, %v206_v7  }
  0x4f   :  { %1121 = vperm.xlu1 %2104, %v1105_v14  }
  0x50   :  { %1113 = vperm.xlu0 %2110, %v1105_v14  }
  0x53   :  { %2105 = vset.pattern.permute.xlu1 %v2173_v5 }
  0x54   :  { %1167 = vperm.xlu0 %2110, %v1163_v9   ;;  %1172 = vperm.xlu1 %2105, %v1164_v15  }
  0x58   :  { %1231 = vperm.xlu0 %2110, %v1223_v16   ;;  %2106 = vset.pattern.permute.xlu1 %v2171_v0 }
  0x59   :  { %1180 = vperm.xlu1 %2106, %v1164_v15  }
  0x5c   :  { %1064 = vperm.xlu0 %2110, %v1060_v13  }
  0x5d   :  { %2107 = vset.pattern.permute.xlu1 %v2173_v5 }
  0x5e   :  { %1226 = vperm.xlu1 %2107, %v1222_v12  }
  0x60   :  { %1082 = vrot.lane.b32.xlu0 %v1061_v17, %s2172_s13 }
  0x62   :  { %2108 = vset.pattern.permute.xlu1 %v2171_v0 }
  0x63   :  { %1235 = vperm.xlu1 %2108, %v1222_v12  }
  0x67   :  { %1239 = vperm.xlu1 %2108, %v1223_v16  }
  0x6b   :  { %1126 = vrot.lane.b32.xlu1 %v1105_v14, %s2172_s13 }
  0x6c   :  { %2109 = vset.pattern.permute.xlu1 %v2173_v5 }
  0x6f   :  { %1185 = vrot.lane.b32.xlu1 %v1164_v15, %s2172_s13 }
  0x73   :  { %1244 = vrot.lane.b32.xlu1 %v1223_v16, %s2172_s13 }
  0x77   :  { %1069 = vperm.xlu1 %2109, %v1061_v17  }
  0x7b   :  { %2111 = vset.pattern.permute.xlu1 %v2171_v0 }
  0x7c   :  { %1077 = vperm.xlu1 %2111, %v1061_v17  }
  0x80   :  { %1080 = vrot.lane.b32.xlu1 %v1060_v13, %s2172_s13 }
  0x81   :  { %2112 = vset.pattern.permute.xlu1 %v2173_v5  ;;  %v58_v18 = vpop.permute.xlu0 %57 }
  0x8a   :  { %v51_v19 = vpop.permute.xlu1 %50 }
  0x8e   :  { %v98_v20 = vpop.permute.xlu0 %97  ;;  %v55_v21 = vpop.permute.xlu1 %54 }
  0x92   :  { %v107_v22 = vpop.permute.xlu0 %106  ;;  %v60_v23 = vpop.permute.xlu1 %59 }
  0x96   :  { %v166_v24 = vpop.permute.xlu0 %165  ;;  %v94_v25 = vpop.permute.xlu1 %93 }
  0x97   :  { %v111_v27 = vsel %vm63_vm0, %v94_v25, %v107_v22 }
  0x9a   :  { %v220_v26 = vpop.permute.xlu0 %219 }
  0x9b   :  { %v102_v28 = vpop.permute.xlu1 %101 }
  0x9c   :  { %v2245_v29 = vsel %vm66_vm1, %v111_v27, %v102_v28 }
  0x9d   :  { %118 = vrot.lane.b32.xlu0 %v2245_v29, %s2174_s0 }
  0x9e   :  { %v229_v30 = vpop.permute.xlu0 %228 }
  0x9f   :  { %v105_v31 = vpop.permute.xlu1 %104 }
  0xa2   :  { %v2249_v32 = vpop.permute.xlu0 %1176 }
  0xa3   :  { %v150_v33 = vpop.permute.xlu1 %149 }
  0xa4   :  { %v171_v35 = vsel %vm63_vm0, %v150_v33, %v166_v24 }
  0xa6   :  { %v1125_v34 = vpop.permute.xlu0 %1124 }
  0xa8   :  { %v159_v36 = vpop.permute.xlu1 %158 }
  0xa9   :  { %v2253_v37 = vsel %vm66_vm1, %v171_v35, %v159_v36 }
  0xaa   :  { %v2255_v38 = vpop.permute.xlu0 %1183  ;;  %177 = vrot.lane.b32.xlu0 %v2253_v37, %s2175_s14 }
  0xac   :  { %v163_v39 = vpop.permute.xlu1 %162 }
  0xae   :  { %v2259_v40 = vpop.permute.xlu0 %1242 }
  0xb0   :  { %v168_v41 = vpop.permute.xlu1 %167 }
  0xb2   :  { %v2261_v43 = vpop.permute.xlu0 %1073 }
  0xb4   :  { %v216_v44 = vpop.permute.xlu1 %215 }
  0xb5   :  { %v233_v49 = vsel %vm63_vm0, %v216_v44, %v229_v30 }
  0xb7   :  { %v42_v46 = vpop.permute.xlu0 %41 }
  0xb8   :  { %v64_v48 = vsel %vm63_vm0, %v42_v46, %v58_v18 }
  0xb9   :  { %v67_v50 = vsel %vm66_vm1, %v64_v48, %v51_v19  ;;  %v224_v51 = vpop.permute.xlu1 %223 }
  0xba   :  { %70 = vst.msk [vmem:[#allocation2 + $0x4] sm:$0xff] %vm69_vm2, %v67_v50  ;;  %v75_v52 = vrot.slane %v67_v50, %v2267_v47  ;;  %v2275_v53 = vsel %vm66_vm1, %v233_v49, %v224_v51 }
  0xbb   :  { %v47_v54 = vpop.permute.xlu0 %46  ;;  %240 = vrot.lane.b32.xlu0 %v2275_v53, %s2176_s15 }
  0xbc   :  { %v65_v56 = vsel %vm63_vm0, %v47_v54, %v60_v23  ;;  %77 = vst.msk [vmem:[#allocation2] sm:$0xf] %vm76_vm3, %v75_v52 }
  0xbd   :  { %v68_v57 = vsel %vm66_vm1, %v65_v56, %v55_v21  ;;  %v227_v58 = vpop.permute.xlu1 %226 }
  0xbe   :  { %71 = vst.msk [vmem:[#allocation2 + $0xc] sm:$0xff] %vm69_vm2, %v68_v57  ;;  %v81_v59 = vrot.slane %v68_v57, %v2280_v55 }
  0xbf   :  { %v89_v60 = vpop.permute.xlu0 %88 }
  0xc0   :  { %v110_v61 = vsel %vm63_vm0, %v89_v60, %v105_v31  ;;  %82 = vst.msk [vmem:[#allocation2 + $0x14] sm:$0xf] %vm76_vm3, %v81_v59 }
  0xc1   :  { %v1109_v62 = vpop.permute.xlu1 %1108  ;;  %v112_v63 = vsel %vm66_vm1, %v110_v61, %v98_v20 }
  0xc2   :  { %116 = vrot.lane.b32.xlu1 %v112_v63, %s2174_s0  ;;  %v1130_v10 = vsel %vm63_vm0, %v1109_v62, %v1125_v34  ;;  %v128_v13 = vrot.slane %v112_v63, %v2267_v47  ;;  %v138_v34 = vrot.slane %v2245_v29, %v2280_v55 }
  0xc3   :  { %v155_v1 = vpop.permute.xlu0 %154 }
  0xc4   :  { %v172_v2 = vsel %vm63_vm0, %v155_v1, %v168_v41  ;;  %v260_v41 = vrot.slane %v2275_v53, %v2280_v55 }
  0xc5   :  { %v174_v3 = vsel %vm66_vm1, %v172_v2, %v163_v39 }
  0xc6   :  { %179 = vrot.lane.b32.xlu1 %v174_v3, %s2175_s14  ;;  %v1118_v4 = vpop.permute.xlu1 %1117  ;;  %v199_v14 = vrot.slane %v174_v3, %v2280_v55 }
  0xc7   :  { %v211_v6 = vpop.permute.xlu0 %210  ;;  %v1132_v11 = vsel %vm66_vm1, %v1130_v10, %v1118_v4 }
  0xc8   :  { %v232_v7 = vsel %vm63_vm0, %v211_v6, %v227_v58  ;;  %v1147_v20 = vrot.slane %v1132_v11, %v2267_v47 }
  0xc9   :  { %v234_v8 = vsel %vm66_vm1, %v232_v7, %v220_v26 }
  0xca   :  { %238 = vrot.lane.b32.xlu1 %v234_v8, %s2176_s15  ;;  %v1122_v9 = vpop.permute.xlu1 %1121  ;;  %v250_v17 = vrot.slane %v234_v8, %v2267_v47 }
  0xcb   :  { %v1114_v16 = vpop.permute.xlu0 %1113 }
  0xce   :  { %1136 = vrot.lane.b32.xlu1 %v1132_v11, %s2174_s0 }
  0xcf   :  { %v1173_v12 = vpop.permute.xlu1 %1172  ;;  %v1168_v19 = vpop.permute.xlu0 %1167 }
  0xd0   :  { %v1189_v21 = vsel %vm63_vm0, %v1168_v19, %v2255_v38  ;;  %v189_v38 = vrot.slane %v2253_v37, %v2267_v47 }
  0xd1   :  { %v1191_v23 = vsel %vm66_vm1, %v1189_v21, %v2249_v32 }
  0xd2   :  { %130 = vrot.lane.b32.xlu1 %v128_v13, %s2174_s0  ;;  %v1206_v25 = vrot.slane %v1191_v23, %v2267_v47 }
  0xd3   :  { %v1232_v32 = vpop.permute.xlu0 %1231 }
  0xd4   :  { %v1181_v15 = vpop.permute.xlu1 %1180 }
  0xd6   :  { %201 = vrot.lane.b32.xlu1 %v199_v14, %s2175_s14 }
  0xd7   :  { %v1065_v39 = vpop.permute.xlu0 %1064 }
  0xd9   :  { %v1227_v18 = vpop.permute.xlu1 %1226 }
  0xda   :  { %252 = vrot.lane.b32.xlu1 %v250_v17, %s2176_s15  ;;  %v1248_v28 = vsel %vm63_vm0, %v1227_v18, %v2259_v40 }
  0xdb   :  { %v1083_v44 = vpop.permute.xlu0 %1082 }
  0xde   :  { %1149 = vrot.lane.b32.xlu1 %v1147_v20, %s2174_s0  ;;  %v1236_v22 = vpop.permute.xlu1 %1235 }
  0xdf   :  { %v1250_v31 = vsel %vm66_vm1, %v1248_v28, %v1236_v22 }
  0xe0   :  { %v1265_v35 = vrot.slane %v1250_v31, %v2267_v47 }
  0xe2   :  { %1195 = vrot.lane.b32.xlu1 %v1191_v23, %s2175_s14  ;;  %v1240_v24 = vpop.permute.xlu1 %1239 }
  0xe6   :  { %1208 = vrot.lane.b32.xlu1 %v1206_v25, %s2175_s14  ;;  %v1127_v26 = vpop.permute.xlu1 %1126 }
  0xe7   :  { %v1131_v27 = vsel %vm63_vm0, %v1114_v16, %v1127_v26 }
  0xe8   :  { %v1133_v30 = vsel %vm66_vm1, %v1131_v27, %v1122_v9 }
  0xe9   :  { %1138 = vrot.lane.b32.xlu0 %v1133_v30, %s2174_s0  ;;  %v1156_v46 = vrot.slane %v1133_v30, %v2280_v55 }
  0xea   :  { %1254 = vrot.lane.b32.xlu1 %v1250_v31, %s2176_s15  ;;  %v1186_v33 = vpop.permute.xlu1 %1185 }
  0xeb   :  { %v1190_v50 = vsel %vm63_vm0, %v1173_v12, %v1186_v33 }
  0xec   :  { %v1192_v53 = vsel %vm66_vm1, %v1190_v50, %v1181_v15 }
  0xed   :  { %140 = vrot.lane.b32.xlu0 %v138_v34, %s2174_s0  ;;  %v1215_v57 = vrot.slane %v1192_v53, %v2280_v55 }
  0xee   :  { %1267 = vrot.lane.b32.xlu1 %v1265_v35, %s2176_s15  ;;  %v1245_v36 = vpop.permute.xlu1 %1244 }
  0xef   :  { %v1249_v58 = vsel %vm63_vm0, %v1232_v32, %v1245_v36 }
  0xf0   :  { %v1251_v59 = vsel %vm66_vm1, %v1249_v58, %v1240_v24 }
  0xf1   :  { %191 = vrot.lane.b32.xlu0 %v189_v38, %s2175_s14 }
  0xf2   :  { %v1070_v40 = vpop.permute.xlu1 %1069 }
  0xf3   :  { %v1087_v29 = vsel %vm63_vm0, %v1070_v40, %v1083_v44 }
  0xf5   :  { %262 = vrot.lane.b32.xlu0 %v260_v41, %s2176_s15 }
  0xf7   :  { %v1078_v48 = vpop.permute.xlu1 %1077 }
  0xf8   :  { %v1089_v49 = vsel %vm66_vm1, %v1087_v29, %v1078_v48 }
  0xf9   :  { %1158 = vrot.lane.b32.xlu0 %v1156_v46, %s2174_s0  ;;  %1092 = vst.msk [vmem:[#allocation2 + $0x24] sm:$0xff] %vm69_vm2, %v1089_v49  ;;  %v1101_v37 = vrot.slane %v1089_v49, %v2280_v55 }
  0xfb   :  { %v1081_v51 = vpop.permute.xlu1 %1080  ;;  %1102 = vst.msk [vmem:[#allocation2 + $0x2c] sm:$0xf] %vm76_vm3, %v1101_v37 }
  0xfc   :  { %v1086_v52 = vsel %vm63_vm0, %v1065_v39, %v1081_v51  ;;  %vm384_vm0 = vcmask 174080  }
  0xfd   :  { %v1088_v54 = vsel %vm66_vm1, %v1086_v52, %v2261_v43  ;;  %1197 = vrot.lane.b32.xlu0 %v1192_v53, %s2175_s14  ;;  %v1274_v43 = vrot.slane %v1251_v59, %v2280_v55  ;;  %vm425_vm1 = vcmask 441600  }
  0xfe   :  { %1091 = vst.msk [vmem:[#allocation2 + $0x1c] sm:$0xff] %vm69_vm2, %v1088_v54  ;;  %v1096_v56 = vrot.slane %v1088_v54, %v2267_v47  ;;  %vm481_vm2 = vcmask 704000  }
 0x100   :  { %1097 = vst.msk [vmem:[#allocation2 + $0x18] sm:$0xf] %vm76_vm3, %v1096_v56  ;;  %vm537_vm3 = vcmask 966400  }
 0x101   :  { %1217 = vrot.lane.b32.xlu0 %v1215_v57, %s2175_s14 }
 0x105   :  { %1256 = vrot.lane.b32.xlu0 %v1251_v59, %s2176_s15 }
 0x109   :  { %1276 = vrot.lane.b32.xlu0 %v1274_v43, %s2176_s15 }
 0x10f   :  { %v119_v60 = vpop.permute.xlu0 %118 }
 0x110   :  { %124 = vst.msk [vmem:[#allocation2 + $0xc] sm:$0xff] %vm122_vm4, %v119_v60 }
 0x11c   :  { %v178_v62 = vpop.permute.xlu0 %177 }
 0x12d   :  { %v241_v1 = vpop.permute.xlu0 %240 }
 0x134   :  { %v117_v61 = vpop.permute.xlu1 %116 }
 0x135   :  { %123 = vst.msk [vmem:[#allocation2 + $0x4] sm:$0xff] %vm122_vm4, %v117_v61 }
 0x136   :  { %184 = vst.msk [vmem:[#allocation2 + $0x4] sm:$0xff] %vm183_vm5, %v178_v62 }
 0x138   :  { %v180_v63 = vpop.permute.xlu1 %179 }
 0x139   :  { %185 = vst.msk [vmem:[#allocation2 + $0xc] sm:$0xff] %vm183_vm5, %v180_v63 }
 0x13a   :  { %246 = vst.msk [vmem:[#allocation2 + $0xc] sm:$0xff] %vm244_vm6, %v241_v1 }
 0x13c   :  { %v239_v2 = vpop.permute.xlu1 %238 }
 0x13d   :  { %245 = vst.msk [vmem:[#allocation2 + $0x4] sm:$0xff] %vm244_vm6, %v239_v2 }
 0x140   :  { %v1137_v3 = vpop.permute.xlu1 %1136 }
 0x141   :  { %1142 = vst.msk [vmem:[#allocation2 + $0x1c] sm:$0xff] %vm122_vm4, %v1137_v3  ;;  %v338_v9 = vld [vmem:[#allocation2 + $0xc] sm:$0xff] }
 0x144   :  { %v131_v4 = vpop.permute.xlu1 %130  ;;  %v2363_v6 = vld [vmem:[#allocation2 + $0x8] sm:$0xff] }
 0x145   :  { %134 = vst.msk [vmem:[#allocation2] sm:$0xf] %vm133_vm7, %v131_v4  ;;  %298 = vrot.lane.b32.xlu1 %v2363_v6, %s2177_s16  ;;  %271 = vrot.lane.b32.xlu0 %v2363_v6, %s2178_s17  ;;  %v337_v8 = vld [vmem:[#allocation2 + $0x4] sm:$0xff] }
 0x148   :  { %v202_v7 = vpop.permute.xlu1 %201 }
 0x149   :  { %339 = vrot.lane.b32.xlu1 %v337_v8, %s2179_s18  ;;  %341 = vrot.lane.b32.xlu0 %v338_v9, %s2179_s18 }
 0x14c   :  { %v253_v10 = vpop.permute.xlu1 %252 }
 0x150   :  { %v1150_v11 = vpop.permute.xlu1 %1149 }
 0x151   :  { %1152 = vst.msk [vmem:[#allocation2 + $0x18] sm:$0xf] %vm133_vm7, %v1150_v11 }
 0x154   :  { %v1196_v12 = vpop.permute.xlu1 %1195 }
 0x155   :  { %1201 = vst.msk [vmem:[#allocation2 + $0x1c] sm:$0xff] %vm183_vm5, %v1196_v12 }
 0x158   :  { %v1209_v13 = vpop.permute.xlu1 %1208 }
 0x159   :  { %1211 = vst.msk [vmem:[#allocation2 + $0x18] sm:$0xf] %vm194_vm8, %v1209_v13 }
 0x15b   :  { %v1139_v14 = vpop.permute.xlu0 %1138 }
 0x15c   :  { %1143 = vst.msk [vmem:[#allocation2 + $0x24] sm:$0xff] %vm122_vm4, %v1139_v14  ;;  %v1255_v15 = vpop.permute.xlu1 %1254  ;;  %vm436_vm4 = vcmask 436480  }
 0x15d   :  { %1260 = vst.msk [vmem:[#allocation2 + $0x1c] sm:$0xff] %vm244_vm6, %v1255_v15 }
 0x15f   :  { %v141_v16 = vpop.permute.xlu0 %140 }
 0x160   :  { %143 = vst.msk [vmem:[#allocation2 + $0x14] sm:$0xf] %vm133_vm7, %v141_v16  ;;  %v1268_v17 = vpop.permute.xlu1 %1267 }
 0x161   :  { %204 = vst.msk [vmem:[#allocation2 + $0x14] sm:$0xf] %vm194_vm8, %v202_v7 }
 0x162   :  { %1270 = vst.msk [vmem:[#allocation2 + $0x18] sm:$0xf] %vm255_vm9, %v1268_v17 }
 0x163   :  { %v192_v18 = vpop.permute.xlu0 %191 }
 0x164   :  { %195 = vst.msk [vmem:[#allocation2] sm:$0xf] %vm194_vm8, %v192_v18  ;;  %v1346_v19 = vld [vmem:[#allocation2 + $0x1c] sm:$0xff] }
 0x165   :  { %256 = vst.msk [vmem:[#allocation2] sm:$0xf] %vm255_vm9, %v253_v10  ;;  %1348 = vrot.lane.b32.xlu0 %v1346_v19, %s2179_s18 }
 0x167   :  { %v263_v20 = vpop.permute.xlu0 %262 }
 0x168   :  { %265 = vst.msk [vmem:[#allocation2 + $0x14] sm:$0xf] %vm255_vm9, %v263_v20 }
 0x169   :  { %v1280_v26 = vld [vmem:[#allocation2 + $0x18] sm:$0xff] }
 0x16b   :  { %v1159_v21 = vpop.permute.xlu0 %1158 }
 0x16c   :  { %1161 = vst.msk [vmem:[#allocation2 + $0x2c] sm:$0xf] %vm133_vm7, %v1159_v21  ;;  %v266_v22 = vld [vmem:[#allocation2] sm:$0xff] }
 0x16d   :  { %296 = vrot.lane.b32.xlu0 %v266_v22, %s2177_s16 }
 0x16f   :  { %v1198_v23 = vpop.permute.xlu0 %1197  ;;  %v268_v24 = vld [vmem:[#allocation2 + $0x10] sm:$0xff] }
 0x170   :  { %1202 = vst.msk [vmem:[#allocation2 + $0x24] sm:$0xff] %vm183_vm5, %v1198_v23  ;;  %vm492_vm5 = vcmask 698880  }
 0x171   :  { %300 = vrot.lane.b32.xlu0 %v268_v24, %s2177_s16 }
 0x173   :  { %v1218_v25 = vpop.permute.xlu0 %1217 }
 0x174   :  { %1220 = vst.msk [vmem:[#allocation2 + $0x2c] sm:$0xf] %vm194_vm8, %v1218_v25 }
 0x175   :  { %1283 = vrot.lane.b32.xlu0 %v1280_v26, %s2178_s17 }
 0x177   :  { %v1257_v27 = vpop.permute.xlu0 %1256 }
 0x178   :  { %1261 = vst.msk [vmem:[#allocation2 + $0x24] sm:$0xff] %vm244_vm6, %v1257_v27  ;;  %vm548_vm6 = vcmask 961280  }
 0x17b   :  { %v1277_v28 = vpop.permute.xlu0 %1276 }
 0x17c   :  { %1279 = vst.msk [vmem:[#allocation2 + $0x2c] sm:$0xf] %vm255_vm9, %v1277_v28 }
 0x17f   :  { %v1281_v30 = vld [vmem:[#allocation2 + $0x20] sm:$0xff] }
 0x180   :  { %1285 = vrot.lane.b32.xlu1 %v1281_v30, %s2178_s17  ;;  %v1347_v32 = vld [vmem:[#allocation2 + $0x24] sm:$0xff] }
 0x183   :  { %v1282_v31 = vld [vmem:[#allocation2 + $0x28] sm:$0xff] }
 0x184   :  { %1312 = vrot.lane.b32.xlu1 %v1281_v30, %s2177_s16  ;;  %1287 = vrot.lane.b32.xlu0 %v1282_v31, %s2178_s17 }
 0x188   :  { %1350 = vrot.lane.b32.xlu1 %v1347_v32, %s2179_s18  ;;  %1310 = vrot.lane.b32.xlu0 %v1280_v26, %s2177_s16 }
 0x18c   :  { %269 = vrot.lane.b32.xlu1 %v266_v22, %s2178_s17  ;;  %1314 = vrot.lane.b32.xlu0 %v1282_v31, %s2177_s16 }
 0x190   :  { %273 = vrot.lane.b32.xlu1 %v268_v24, %s2178_s17 }
 0x1b7   :  { %v272_v33 = vpop.permute.xlu0 %271  ;;  %v299_v41 = vpop.permute.xlu1 %298 }
 0x1b8   :  { %v276_v34 = vadd.f32 %v272_v33, %v2363_v6 }
 0x1ba   :  { %280 = vrot.lane.b32.xlu1 %v276_v34, %s2180_s19 }
 0x1bb   :  { %v2402_v35 = vpop.permute.xlu0 %341  ;;  %v2407_v29 = vpop.permute.xlu1 %339 }
 0x1d7   :  { %v2404_v36 = vpop.permute.xlu0 %1348 }
 0x1df   :  { %v297_v38 = vpop.permute.xlu0 %296 }
 0x1e3   :  { %v301_v39 = vpop.permute.xlu0 %300 }
 0x1e7   :  { %v1284_v40 = vpop.permute.xlu0 %1283 }
 0x1e8   :  { %v1289_v44 = vadd.f32 %v1284_v40, %v1280_v26 }
 0x1ea   :  { %1292 = vrot.lane.b32.xlu1 %v1289_v44, %s2180_s19 }
 0x1f2   :  { %v1286_v46 = vpop.permute.xlu1 %1285 }
 0x1f3   :  { %v1290_v48 = vadd.f32 %v1286_v46, %v1281_v30 }
 0x1f5   :  { %1294 = vrot.lane.b32.xlu0 %v1290_v48, %s2180_s19 }
 0x1f6   :  { %v1288_v49 = vpop.permute.xlu0 %1287  ;;  %v2410_v50 = vpop.permute.xlu1 %1312 }
 0x1f7   :  { %v1291_v37 = vadd.f32 %v1288_v49, %v1282_v31 }
 0x1f9   :  { %1296 = vrot.lane.b32.xlu1 %v1291_v37, %s2180_s19 }
 0x1fa   :  { %v2413_v51 = vpop.permute.xlu1 %1350  ;;  %v1311_v59 = vpop.permute.xlu0 %1310 }
 0x1fe   :  { %v270_v52 = vpop.permute.xlu1 %269  ;;  %v1315_v43 = vpop.permute.xlu0 %1314 }
 0x1ff   :  { %v275_v53 = vadd.f32 %v270_v52, %v266_v22 }
 0x201   :  { %278 = vrot.lane.b32.xlu0 %v275_v53, %s2180_s19 }
 0x202   :  { %v274_v54 = vpop.permute.xlu1 %273 }
 0x203   :  { %v277_v56 = vadd.f32 %v274_v54, %v268_v24 }
 0x205   :  { %282 = vrot.lane.b32.xlu0 %v277_v56, %s2180_s19 }
 0x22c   :  { %v281_v57 = vpop.permute.xlu1 %280 }
 0x22d   :  { %v285_v58 = vadd.f32 %v281_v57, %v276_v34 }
 0x22f   :  { %289 = vrot.lane.b32.xlu0 %v285_v58, %s2179_s18 }
 0x25c   :  { %v1293_v3 = vpop.permute.xlu1 %1292 }
 0x25d   :  { %v1298_v4 = vadd.f32 %v1293_v3, %v1289_v44 }
 0x267   :  { %v1295_v60 = vpop.permute.xlu0 %1294 }
 0x268   :  { %v1299_v61 = vadd.f32 %v1295_v60, %v1290_v48 }
 0x26a   :  { %1303 = vrot.lane.b32.xlu0 %v1299_v61, %s2179_s18 }
 0x26b   :  { %v1297_v6 = vpop.permute.xlu1 %1296 }
 0x26c   :  { %v1300_v7 = vadd.f32 %v1297_v6, %v1291_v37 }
 0x273   :  { %v279_v62 = vpop.permute.xlu0 %278 }
 0x274   :  { %v284_v63 = vadd.f32 %v279_v62, %v275_v53 }
 0x276   :  { %287 = vrot.lane.b32.xlu1 %v284_v63, %s2179_s18 }
 0x277   :  { %v283_v1 = vpop.permute.xlu0 %282 }
 0x278   :  { %v286_v2 = vadd.f32 %v283_v1, %v277_v56 }
 0x27a   :  { %291 = vrot.lane.b32.xlu1 %v286_v2, %s2179_s18 }
 0x27e   :  { %1301 = vrot.lane.b32.xlu1 %v1298_v4, %s2179_s18 }
 0x282   :  { %1305 = vrot.lane.b32.xlu1 %v1300_v7, %s2179_s18 }
 0x2a1   :  { %v290_v8 = vpop.permute.xlu0 %289 }
 0x2a2   :  { %v294_v9 = vadd.f32 %v290_v8, %v285_v58 }
 0x2a4   :  { %v303_v11 = vadd.f32 %v299_v41, %v294_v9 }
 0x2a6   :  { %v306_v15 = vrot.slane %v303_v11, 1 }
 0x2dc   :  { %v1304_v28 = vpop.permute.xlu0 %1303 }
 0x2dd   :  { %v1308_v34 = vadd.f32 %v1304_v28, %v1299_v61 }
 0x2df   :  { %v1317_v54 = vadd.f32 %v2410_v50, %v1308_v34 }
 0x2e8   :  { %v288_v10 = vpop.permute.xlu1 %287 }
 0x2e9   :  { %v293_v12 = vadd.f32 %v288_v10, %v284_v63 }
 0x2eb   :  { %v302_v13 = vadd.f32 %v297_v38, %v293_v12 }
 0x2ec   :  { %v292_v14 = vpop.permute.xlu1 %291 }
 0x2ed   :  { %v305_v16 = vrot.slane %v302_v13, 1  ;;  %v295_v17 = vadd.f32 %v292_v14, %v286_v2  ;;  %v1320_v2 = vrot.slane %v1317_v54, 1 }
 0x2ef   :  { %v312_v18 = vsel %vm310_vm10, %v305_v16, %v306_v15  ;;  %v304_v19 = vadd.f32 %v301_v39, %v295_v17 }
 0x2f0   :  { %v1302_v20 = vpop.permute.xlu1 %1301  ;;  %v314_v22 = vadd.f32 %v312_v18, %v302_v13 }
 0x2f1   :  { %v307_v21 = vrot.slane %v304_v19, 1  ;;  %v1307_v48 = vadd.f32 %v1302_v20, %v1298_v4 }
 0x2f2   :  { %v317_v30 = vrot.slane %v314_v22, 2 }
 0x2f3   :  { %v311_v23 = vsel %vm310_vm10, %v306_v15, %v307_v21  ;;  %v313_v24 = vsel %vm310_vm10, %v307_v21, %v305_v16  ;;  %v1316_v58 = vadd.f32 %v1311_v59, %v1307_v48 }
 0x2f4   :  { %v315_v25 = vadd.f32 %v311_v23, %v303_v11  ;;  %v316_v26 = vadd.f32 %v313_v24, %v304_v19  ;;  %v1306_v27 = vpop.permute.xlu1 %1305  ;;  %v2184_v23 = vmov 64  }
 0x2f5   :  { %v1309_v33 = vadd.f32 %v1306_v27, %v1300_v7  ;;  %v1319_v3 = vrot.slane %v1316_v58, 1  ;;  %v2185_v27 = vmov 79  }
 0x2f6   :  { %v318_v31 = vrot.slane %v315_v25, 2  ;;  %v319_v32 = vrot.slane %v316_v26, 2 }
 0x2f7   :  { %v2438_v53 = vadd.f32 %v1315_v43, %v1309_v33  ;;  %v1323_v8 = vsel %vm310_vm10, %v1319_v3, %v1320_v2 }
 0x2f8   :  { %v321_v38 = vsel %vm320_vm11, %v318_v31, %v319_v32  ;;  %v322_v39 = vsel %vm320_vm11, %v317_v30, %v318_v31  ;;  %v323_v40 = vsel %vm320_vm11, %v319_v32, %v317_v30  ;;  %v2187_v32 = vmov 96  }
 0x2f9   :  { %v324_v41 = vadd.f32 %v322_v39, %v314_v22  ;;  %v325_v44 = vadd.f32 %v321_v38, %v315_v25  ;;  %v326_v46 = vadd.f32 %v323_v40, %v316_v26  ;;  %v1321_v62 = vrot.slane %v2438_v53, 1 }
 0x2fb   :  { %v327_v49 = vrot.slane %v324_v41, 4  ;;  %v328_v37 = vrot.slane %v325_v44, 4  ;;  %v329_v52 = vrot.slane %v326_v46, 4  ;;  %v1322_v50 = vsel %vm310_vm10, %v1320_v2, %v1321_v62 }
 0x2fc   :  { %v1324_v6 = vsel %vm310_vm10, %v1321_v62, %v1319_v3  ;;  %v1326_v9 = vadd.f32 %v1322_v50, %v1317_v54 }
 0x2fd   :  { %v331_v56 = vsel %vm330_vm12, %v328_v37, %v329_v52  ;;  %v332_v57 = vsel %vm330_vm12, %v327_v49, %v328_v37  ;;  %v1327_v10 = vadd.f32 %v1324_v6, %v2438_v53 }
 0x2fe   :  { %v333_v60 = vadd.f32 %v332_v57, %v324_v41  ;;  %v334_v61 = vadd.f32 %v331_v56, %v325_v44  ;;  %v1329_v12 = vrot.slane %v1326_v9, 2 }
 0x2ff   :  { %v1330_v13 = vrot.slane %v1327_v10, 2 }
 0x300   :  { %v335_v63 = vadd.f32 %v333_v60, %v303_v11  ;;  %v336_v1 = vadd.f32 %v334_v61, %v304_v19  ;;  %v1325_v11 = vadd.f32 %v1323_v8, %v1316_v58  ;;  %v2183_v19 = vmov 47  }
 0x301   :  { %v1331_v14 = vsel %vm320_vm11, %v1329_v12, %v1330_v13 }
 0x302   :  { %v343_v4 = vmul.f32 0.012345679, %v335_v63  ;;  %v344_v43 = vmul.f32 0.012345679, %v336_v1  ;;  %v1335_v17 = vadd.f32 %v1331_v14, %v1326_v9 }
 0x304   :  { %v2451_v7 = vsub.f32 %v343_v4, %v2407_v29  ;;  %v2454_v59 = vsub.f32 %v344_v43, %v2402_v35  ;;  %v2182_v35 = vmov 32   ;;  %v1328_v29 = vrot.slane %v1325_v11, 2 }
 0x305   :  { %v1338_v22 = vrot.slane %v1335_v17, 4 }
 0x306   :  { %349 = vperm.xlu1 %2112, %v2451_v7   ;;  %354 = vperm.xlu0 %2110, %v2454_v59   ;;  %v1332_v15 = vsel %vm320_vm11, %v1328_v29, %v1329_v12  ;;  %v1333_v18 = vsel %vm320_vm11, %v1330_v13, %v1328_v29 }
 0x307   :  { %v1334_v16 = vadd.f32 %v1332_v15, %v1325_v11  ;;  %v1336_v20 = vadd.f32 %v1333_v18, %v1327_v10 }
 0x309   :  { %v1337_v21 = vrot.slane %v1334_v16, 4  ;;  %v1339_v24 = vrot.slane %v1336_v20, 4 }
 0x30a   :  { %2113 = vset.pattern.permute.xlu1 %v2171_v0  ;;  %365 = vrot.lane.b32.xlu0 %v2451_v7, %s2181_s20 }
 0x30b   :  { %358 = vperm.xlu1 %2113, %v2451_v7   ;;  %2114 = vset.pattern.permute.xlu0 %v2182_v35  ;;  %v1341_v25 = vsel %vm330_vm12, %v1337_v21, %v1338_v22  ;;  %v1340_v28 = vsel %vm330_vm12, %v1338_v22, %v1339_v24 }
 0x30c   :  { %v1342_v26 = vadd.f32 %v1341_v25, %v1334_v16  ;;  %v1343_v30 = vadd.f32 %v1340_v28, %v1335_v17 }
 0x30e   :  { %392 = vperm.xlu0 %2114, %v2451_v7   ;;  %v1344_v31 = vadd.f32 %v1342_v26, %v1317_v54  ;;  %v1345_v33 = vadd.f32 %v1343_v30, %v2438_v53 }
 0x30f   :  { %362 = vperm.xlu1 %2113, %v2454_v59  }
 0x310   :  { %v1352_v34 = vmul.f32 0.012345679, %v1344_v31  ;;  %v1353_v45 = vmul.f32 0.012345679, %v1345_v33 }
 0x312   :  { %2117 = vset.pattern.permute.xlu0 %v2183_v19  ;;  %v1354_v38 = vsub.f32 %v1352_v34, %v2404_v36  ;;  %v1355_v39 = vsub.f32 %v1353_v45, %v2413_v51  ;;  %v2190_v36 = vmov 111  }
 0x313   :  { %367 = vrot.lane.b32.xlu1 %v2454_v59, %s2181_s20  ;;  %404 = vperm.xlu0 %2117, %v2454_v59  }
 0x314   :  { %2115 = vset.pattern.permute.xlu1 %v2182_v35 }
 0x317   :  { %396 = vperm.xlu1 %2115, %v2454_v59   ;;  %2118 = vset.pattern.permute.xlu0 %v2184_v23 }
 0x318   :  { %448 = vperm.xlu0 %2118, %v2451_v7  }
 0x31b   :  { %2116 = vset.pattern.permute.xlu1 %v2183_v19 }
 0x31c   :  { %400 = vperm.xlu1 %2116, %v2451_v7   ;;  %2121 = vset.pattern.permute.xlu0 %v2185_v27 }
 0x31d   :  { %460 = vperm.xlu0 %2121, %v2454_v59  }
 0x320   :  { %407 = vrot.lane.b32.xlu1 %v2451_v7, %s2186_s21 }
 0x321   :  { %2122 = vset.pattern.permute.xlu0 %v2187_v32  ;;  %2119 = vset.pattern.permute.xlu1 %v2184_v23 }
 0x322   :  { %504 = vperm.xlu0 %2122, %v2451_v7  }
 0x324   :  { %409 = vrot.lane.b32.xlu1 %v2454_v59, %s2186_s21 }
 0x326   :  { %519 = vrot.lane.b32.xlu0 %v2451_v7, %s2188_s22 }
 0x327   :  { %2125 = vset.pattern.permute.xlu0 %v2182_v35 }
 0x328   :  { %452 = vperm.xlu1 %2119, %v2454_v59  }
 0x32a   :  { %1398 = vperm.xlu0 %2125, %v1354_v38  }
 0x32c   :  { %2120 = vset.pattern.permute.xlu1 %v2185_v27 }
 0x32d   :  { %456 = vperm.xlu1 %2120, %v2451_v7  }
 0x32e   :  { %1402 = vperm.xlu0 %2125, %v1355_v39  }
 0x331   :  { %463 = vrot.lane.b32.xlu1 %v2451_v7, %s2189_s23 }
 0x332   :  { %2129 = vset.pattern.permute.xlu0 %v2187_v32  ;;  %2123 = vset.pattern.permute.xlu1 %v2187_v32 }
 0x333   :  { %1506 = vperm.xlu0 %2129, %v1354_v38  }
 0x335   :  { %465 = vrot.lane.b32.xlu1 %v2454_v59, %s2189_s23 }
 0x337   :  { %2132 = vset.pattern.permute.xlu0 %v2190_v36 }
 0x338   :  { %1514 = vperm.xlu0 %2132, %v1354_v38  }
 0x339   :  { %508 = vperm.xlu1 %2123, %v2454_v59  }
 0x33c   :  { %1413 = vrot.lane.b32.xlu0 %v1354_v38, %s2186_s21 }
 0x33d   :  { %2124 = vset.pattern.permute.xlu1 %v2190_v36  ;;  %2137 = vset.pattern.permute.xlu0 %v2171_v0 }
 0x33e   :  { %512 = vperm.xlu1 %2124, %v2451_v7  }
 0x340   :  { %1467 = vrot.lane.b32.xlu0 %v1354_v38, %s2189_s23 }
 0x342   :  { %516 = vperm.xlu1 %2124, %v2454_v59  }
 0x344   :  { %1521 = vrot.lane.b32.xlu0 %v1354_v38, %s2188_s22 }
 0x346   :  { %521 = vrot.lane.b32.xlu1 %v2454_v59, %s2188_s22 }
 0x347   :  { %2126 = vset.pattern.permute.xlu1 %v2183_v19 }
 0x348   :  { %1523 = vrot.lane.b32.xlu0 %v1355_v39, %s2188_s22 }
 0x34a   :  { %1406 = vperm.xlu1 %2126, %v1354_v38  }
 0x34c   :  { %1367 = vperm.xlu0 %2137, %v1354_v38  }
 0x34e   :  { %2127 = vset.pattern.permute.xlu1 %v2184_v23 }
 0x34f   :  { %1452 = vperm.xlu1 %2127, %v1354_v38  }
 0x350   :  { %1374 = vrot.lane.b32.xlu0 %v1354_v38, %s2181_s20 }
 0x351   :  { %2139 = vset.pattern.permute.xlu0 %v2190_v36 }
 0x353   :  { %2128 = vset.pattern.permute.xlu1 %v2185_v27 }
 0x354   :  { %1460 = vperm.xlu1 %2128, %v1354_v38  }
 0x358   :  { %2130 = vset.pattern.permute.xlu1 %v2183_v19 }
 0x359   :  { %1410 = vperm.xlu1 %2130, %v1355_v39  }
 0x35d   :  { %2131 = vset.pattern.permute.xlu1 %v2184_v23 }
 0x35e   :  { %1456 = vperm.xlu1 %2131, %v1355_v39  }
 0x362   :  { %2133 = vset.pattern.permute.xlu1 %v2185_v27 }
 0x363   :  { %1464 = vperm.xlu1 %2133, %v1355_v39  }
 0x367   :  { %2134 = vset.pattern.permute.xlu1 %v2187_v32 }
 0x368   :  { %1510 = vperm.xlu1 %2134, %v1355_v39  }
 0x36c   :  { %2135 = vset.pattern.permute.xlu1 %v2190_v36 }
 0x36d   :  { %1518 = vperm.xlu1 %2135, %v1355_v39  }
 0x371   :  { %1415 = vrot.lane.b32.xlu1 %v1355_v39, %s2186_s21 }
 0x372   :  { %2136 = vset.pattern.permute.xlu1 %v2173_v5 }
 0x375   :  { %1469 = vrot.lane.b32.xlu1 %v1355_v39, %s2189_s23 }
 0x379   :  { %1358 = vperm.xlu1 %2136, %v1354_v38  }
 0x37d   :  { %1363 = vperm.xlu1 %2136, %v1355_v39  }
 0x381   :  { %v355_v51 = vpop.permute.xlu0 %354  ;;  %2138 = vset.pattern.permute.xlu1 %v2171_v0  ;;  %v350_v40 = vpop.permute.xlu1 %349 }
 0x382   :  { %1371 = vperm.xlu1 %2138, %v1355_v39  }
 0x385   :  { %v366_v41 = vpop.permute.xlu0 %365 }
 0x386   :  { %v372_v44 = vsel %vm371_vm13, %v350_v40, %v366_v41  ;;  %1376 = vrot.lane.b32.xlu1 %v1355_v39, %s2181_s20  ;;  %v359_v46 = vpop.permute.xlu1 %358 }
 0x387   :  { %v375_v5 = vsel %vm374_vm14, %v372_v44, %v359_v46 }
 0x388   :  { %378 = vst.msk [vmem:[#allocation3 + $0x3] sm:$0xff] %vm377_vm15, %v375_v5  ;;  %v383_v48 = vrot.slane %v375_v5, %v2267_v47 }
 0x389   :  { %v393_v49 = vpop.permute.xlu0 %392 }
 0x38a   :  { %385 = vst.msk [vmem:[#allocation3] sm:$0x7] %vm384_vm0, %v383_v48  ;;  %v363_v0 = vpop.permute.xlu1 %362 }
 0x38e   :  { %v405_v37 = vpop.permute.xlu0 %404  ;;  %v368_v52 = vpop.permute.xlu1 %367 }
 0x38f   :  { %v373_v53 = vsel %vm371_vm13, %v355_v51, %v368_v52 }
 0x390   :  { %v376_v54 = vsel %vm374_vm14, %v373_v53, %v363_v0 }
 0x391   :  { %379 = vst.msk [vmem:[#allocation3 + $0xb] sm:$0xff] %vm377_vm15, %v376_v54  ;;  %v389_v56 = vrot.slane %v376_v54, %v2280_v55 }
 0x392   :  { %v397_v57 = vpop.permute.xlu1 %396 }
 0x393   :  { %390 = vst.msk [vmem:[#allocation3 + $0x13] sm:$0x7] %vm384_vm0, %v389_v56  ;;  %v449_v58 = vpop.permute.xlu0 %448 }
 0x397   :  { %v401_v60 = vpop.permute.xlu1 %400 }
 0x398   :  { %v461_v61 = vpop.permute.xlu0 %460 }
 0x39b   :  { %v408_v62 = vpop.permute.xlu1 %407 }
 0x39c   :  { %v413_v63 = vsel %vm371_vm13, %v393_v49, %v408_v62 }
 0x39d   :  { %v2532_v1 = vsel %vm374_vm14, %v413_v63, %v401_v60  ;;  %v505_v2 = vpop.permute.xlu0 %504 }
 0x39e   :  { %419 = vrot.lane.b32.xlu0 %v2532_v1, %s2174_s0  ;;  %v431_v62 = vrot.slane %v2532_v1, %v2267_v47 }
 0x39f   :  { %v410_v3 = vpop.permute.xlu1 %409 }
 0x3a0   :  { %v414_v4 = vsel %vm371_vm13, %v397_v57, %v410_v3 }
 0x3a1   :  { %v2538_v43 = vsel %vm374_vm14, %v414_v4, %v405_v37  ;;  %v520_v6 = vpop.permute.xlu0 %519 }
 0x3a2   :  { %421 = vrot.lane.b32.xlu1 %v2538_v43, %s2174_s0  ;;  %v525_v15 = vsel %vm371_vm13, %v505_v2, %v520_v6  ;;  %v441_v63 = vrot.slane %v2538_v43, %v2280_v55 }
 0x3a3   :  { %v453_v50 = vpop.permute.xlu1 %452 }
 0x3a5   :  { %v1399_v59 = vpop.permute.xlu0 %1398 }
 0x3a8   :  { %v457_v7 = vpop.permute.xlu1 %456 }
 0x3a9   :  { %v1403_v11 = vpop.permute.xlu0 %1402 }
 0x3ac   :  { %v464_v8 = vpop.permute.xlu1 %463 }
 0x3ad   :  { %v469_v9 = vsel %vm371_vm13, %v449_v58, %v464_v8 }
 0x3ae   :  { %v2544_v10 = vsel %vm374_vm14, %v469_v9, %v457_v7  ;;  %v1507_v14 = vpop.permute.xlu0 %1506 }
 0x3af   :  { %475 = vrot.lane.b32.xlu0 %v2544_v10, %s2175_s14  ;;  %v487_v2 = vrot.slane %v2544_v10, %v2267_v47 }
 0x3b0   :  { %v466_v12 = vpop.permute.xlu1 %465 }
 0x3b1   :  { %v470_v13 = vsel %vm371_vm13, %v453_v50, %v466_v12 }
 0x3b2   :  { %v472_v35 = vsel %vm374_vm14, %v470_v13, %v461_v61 }
 0x3b3   :  { %477 = vrot.lane.b32.xlu1 %v472_v35, %s2175_s14  ;;  %v1515_v18 = vpop.permute.xlu0 %1514  ;;  %v497_v3 = vrot.slane %v472_v35, %v2280_v55 }
 0x3b4   :  { %v509_v29 = vpop.permute.xlu1 %508 }
 0x3b7   :  { %v1414_v21 = vpop.permute.xlu0 %1413 }
 0x3b8   :  { %v1419_v24 = vsel %vm371_vm13, %v1399_v59, %v1414_v21 }
 0x3b9   :  { %v513_v16 = vpop.permute.xlu1 %512 }
 0x3ba   :  { %v2553_v17 = vsel %vm374_vm14, %v525_v15, %v513_v16 }
 0x3bb   :  { %531 = vrot.lane.b32.xlu0 %v2553_v17, %s2176_s15  ;;  %v1468_v32 = vpop.permute.xlu0 %1467  ;;  %v543_v1 = vrot.slane %v2553_v17, %v2267_v47 }
 0x3bd   :  { %v517_v19 = vpop.permute.xlu1 %516 }
 0x3bf   :  { %v1522_v34 = vpop.permute.xlu0 %1521 }
 0x3c0   :  { %v1527_v0 = vsel %vm371_vm13, %v1507_v14, %v1522_v34 }
 0x3c1   :  { %v522_v20 = vpop.permute.xlu1 %521  ;;  %v1529_v58 = vsel %vm374_vm14, %v1527_v0, %v1515_v18 }
 0x3c2   :  { %v526_v22 = vsel %vm371_vm13, %v509_v29, %v522_v20 }
 0x3c3   :  { %v528_v23 = vsel %vm374_vm14, %v526_v22, %v517_v19  ;;  %v1524_v38 = vpop.permute.xlu0 %1523 }
 0x3c4   :  { %533 = vrot.lane.b32.xlu1 %v528_v23, %s2176_s15  ;;  %v553_v43 = vrot.slane %v528_v23, %v2280_v55 }
 0x3c5   :  { %v1407_v25 = vpop.permute.xlu1 %1406 }
 0x3c6   :  { %v1421_v26 = vsel %vm374_vm14, %v1419_v24, %v1407_v25 }
 0x3c7   :  { %1425 = vrot.lane.b32.xlu0 %v1421_v26, %s2174_s0  ;;  %v1368_v40 = vpop.permute.xlu0 %1367  ;;  %v1436_v8 = vrot.slane %v1421_v26, %v2267_v47 }
 0x3ca   :  { %v1453_v27 = vpop.permute.xlu1 %1452 }
 0x3cb   :  { %v1473_v46 = vsel %vm371_vm13, %v1453_v27, %v1468_v32  ;;  %v1375_v37 = vpop.permute.xlu0 %1374 }
 0x3cf   :  { %v1461_v28 = vpop.permute.xlu1 %1460 }
 0x3d0   :  { %v1475_v48 = vsel %vm374_vm14, %v1473_v46, %v1461_v28 }
 0x3d1   :  { %v1490_v9 = vrot.slane %v1475_v48, %v2267_v47 }
 0x3d4   :  { %v1411_v30 = vpop.permute.xlu1 %1410 }
 0x3d9   :  { %v1457_v31 = vpop.permute.xlu1 %1456 }
 0x3de   :  { %v1465_v33 = vpop.permute.xlu1 %1464 }
 0x3e3   :  { %v1511_v45 = vpop.permute.xlu1 %1510 }
 0x3e4   :  { %v1528_v53 = vsel %vm371_vm13, %v1511_v45, %v1524_v38 }
 0x3e8   :  { %v1519_v39 = vpop.permute.xlu1 %1518 }
 0x3e9   :  { %v1530_v56 = vsel %vm374_vm14, %v1528_v53, %v1519_v39 }
 0x3ea   :  { %v1553_v12 = vrot.slane %v1530_v56, %v2280_v55 }
 0x3ec   :  { %v1416_v36 = vpop.permute.xlu1 %1415 }
 0x3ed   :  { %v1420_v51 = vsel %vm371_vm13, %v1403_v11, %v1416_v36  ;;  %v1544_v11 = vrot.slane %v1529_v58, %v2267_v47 }
 0x3ee   :  { %v1422_v41 = vsel %vm374_vm14, %v1420_v51, %v1411_v30 }
 0x3ef   :  { %1427 = vrot.lane.b32.xlu1 %v1422_v41, %s2174_s0  ;;  %v1445_v10 = vrot.slane %v1422_v41, %v2280_v55 }
 0x3f0   :  { %v1470_v44 = vpop.permute.xlu1 %1469 }
 0x3f1   :  { %v1474_v5 = vsel %vm371_vm13, %v1457_v31, %v1470_v44 }
 0x3f2   :  { %v1476_v49 = vsel %vm374_vm14, %v1474_v5, %v1465_v33 }
 0x3f3   :  { %1479 = vrot.lane.b32.xlu1 %v1475_v48, %s2175_s14  ;;  %1481 = vrot.lane.b32.xlu0 %v1476_v49, %s2175_s14  ;;  %v1499_v13 = vrot.slane %v1476_v49, %v2280_v55 }
 0x3f4   :  { %v1359_v52 = vpop.permute.xlu1 %1358 }
 0x3f5   :  { %v1380_v54 = vsel %vm371_vm13, %v1359_v52, %v1375_v37 }
 0x3f6   :  { %v1382_v57 = vsel %vm374_vm14, %v1380_v54, %v1368_v40 }
 0x3f7   :  { %1385 = vst.msk [vmem:[#allocation3 + $0x1b] sm:$0xff] %vm377_vm15, %v1382_v57  ;;  %v1390_v60 = vrot.slane %v1382_v57, %v2267_v47  ;;  %1535 = vrot.lane.b32.xlu1 %v1530_v56, %s2176_s15  ;;  %1533 = vrot.lane.b32.xlu0 %v1529_v58, %s2176_s15 }
 0x3f8   :  { %v1364_v61 = vpop.permute.xlu1 %1363 }
 0x3f9   :  { %1391 = vst.msk [vmem:[#allocation3 + $0x18] sm:$0x7] %vm384_vm0, %v1390_v60 }
 0x3fb   :  { %443 = vrot.lane.b32.xlu1 %v441_v63, %s2174_s0  ;;  %433 = vrot.lane.b32.xlu0 %v431_v62, %s2174_s0 }
 0x3fd   :  { %v1372_v4 = vpop.permute.xlu1 %1371 }
 0x3ff   :  { %499 = vrot.lane.b32.xlu1 %v497_v3, %s2175_s14  ;;  %489 = vrot.lane.b32.xlu0 %v487_v2, %s2175_s14 }
 0x401   :  { %v1377_v50 = vpop.permute.xlu1 %1376 }
 0x402   :  { %v1381_v6 = vsel %vm371_vm13, %v1364_v61, %v1377_v50 }
 0x403   :  { %v1383_v7 = vsel %vm374_vm14, %v1381_v6, %v1372_v4  ;;  %555 = vrot.lane.b32.xlu1 %v553_v43, %s2176_s15  ;;  %545 = vrot.lane.b32.xlu0 %v543_v1, %s2176_s15 }
 0x404   :  { %1386 = vst.msk [vmem:[#allocation3 + $0x23] sm:$0xff] %vm377_vm15, %v1383_v7  ;;  %v1395_v59 = vrot.slane %v1383_v7, %v2280_v55 }
 0x406   :  { %1396 = vst.msk [vmem:[#allocation3 + $0x2b] sm:$0x7] %vm384_vm0, %v1395_v59 }
 0x407   :  { %1492 = vrot.lane.b32.xlu1 %v1490_v9, %s2175_s14  ;;  %1438 = vrot.lane.b32.xlu0 %v1436_v8, %s2174_s0 }
 0x40b   :  { %1447 = vrot.lane.b32.xlu1 %v1445_v10, %s2174_s0  ;;  %1546 = vrot.lane.b32.xlu0 %v1544_v11, %s2176_s15 }
 0x40f   :  { %1555 = vrot.lane.b32.xlu1 %v1553_v12, %s2176_s15  ;;  %1501 = vrot.lane.b32.xlu0 %v1499_v13, %s2175_s14 }
 0x410   :  { %v420_v35 = vpop.permute.xlu0 %419 }
 0x411   :  { %426 = vst.msk [vmem:[#allocation3 + $0x3] sm:$0xff] %vm425_vm1, %v420_v35 }
 0x414   :  { %v422_v29 = vpop.permute.xlu1 %421 }
 0x415   :  { %427 = vst.msk [vmem:[#allocation3 + $0xb] sm:$0xff] %vm425_vm1, %v422_v29 }
 0x421   :  { %v476_v47 = vpop.permute.xlu0 %475 }
 0x422   :  { %482 = vst.msk [vmem:[#allocation3 + $0x3] sm:$0xff] %vm481_vm2, %v476_v47 }
 0x425   :  { %v478_v14 = vpop.permute.xlu1 %477 }
 0x426   :  { %483 = vst.msk [vmem:[#allocation3 + $0xb] sm:$0xff] %vm481_vm2, %v478_v14 }
 0x42d   :  { %v532_v55 = vpop.permute.xlu0 %531 }
 0x42e   :  { %538 = vst.msk [vmem:[#allocation3 + $0x3] sm:$0xff] %vm537_vm3, %v532_v55 }
 0x435   :  { %v2668_v22 = vld [vmem:[#allocation3 + $0x3] sm:$0xff] }
 0x436   :  { %v534_v15 = vpop.permute.xlu1 %533 }
 0x437   :  { %539 = vst.msk [vmem:[#allocation3 + $0xb] sm:$0xff] %vm537_vm3, %v534_v15 }
 0x439   :  { %v1426_v16 = vpop.permute.xlu0 %1425 }
 0x43a   :  { %1431 = vst.msk [vmem:[#allocation3 + $0x1b] sm:$0xff] %vm425_vm1, %v1426_v16 }
 0x43e   :  { %v2623_v17 = vld [vmem:[#allocation3 + $0x9] sm:$0xff] }
 0x43f   :  { %v2625_v18 = vld [vmem:[#allocation3 + $0x8] sm:$0xff]  ;;  %611 = vrot.lane.b32.xlu0 %v2623_v17, %s2179_s18 }
 0x440   :  { %575 = vrot.lane.b32.xlu1 %v2625_v18, %s2178_s17  ;;  %v2639_v19 = vld [vmem:[#allocation3 + $0xa] sm:$0xff] }
 0x441   :  { %v2666_v21 = vld [vmem:[#allocation3 + $0xb] sm:$0xff] }
 0x442   :  { %v2705_v38 = vld [vmem:[#allocation3 + $0x4] sm:$0xff] }
 0x443   :  { %615 = vrot.lane.b32.xlu0 %v2623_v17, %s2191_s24  ;;  %v2740_v46 = vld [vmem:[#allocation3 + $0x5] sm:$0xff] }
 0x444   :  { %579 = vrot.lane.b32.xlu1 %v2625_v18, %s2180_s19  ;;  %v2768_v48 = vld [vmem:[#allocation3 + $0x6] sm:$0xff] }
 0x447   :  { %619 = vrot.lane.b32.xlu0 %v2623_v17, %s2192_s25 }
 0x448   :  { %583 = vrot.lane.b32.xlu1 %v2625_v18, %s2193_s26 }
 0x44b   :  { %623 = vrot.lane.b32.xlu0 %v2639_v19, %s2178_s17 }
 0x44c   :  { %587 = vrot.lane.b32.xlu1 %v2625_v18, %s2179_s18 }
 0x44f   :  { %627 = vrot.lane.b32.xlu0 %v2639_v19, %s2180_s19 }
 0x450   :  { %591 = vrot.lane.b32.xlu1 %v2625_v18, %s2191_s24 }
 0x453   :  { %631 = vrot.lane.b32.xlu0 %v2639_v19, %s2193_s26 }
 0x454   :  { %595 = vrot.lane.b32.xlu1 %v2625_v18, %s2192_s25 }
 0x457   :  { %635 = vrot.lane.b32.xlu0 %v2639_v19, %s2179_s18 }
 0x458   :  { %599 = vrot.lane.b32.xlu1 %v2623_v17, %s2178_s17 }
 0x45b   :  { %639 = vrot.lane.b32.xlu0 %v2639_v19, %s2191_s24 }
 0x45c   :  { %603 = vrot.lane.b32.xlu1 %v2623_v17, %s2180_s19 }
 0x45f   :  { %643 = vrot.lane.b32.xlu0 %v2639_v19, %s2192_s25 }
 0x460   :  { %607 = vrot.lane.b32.xlu1 %v2623_v17, %s2193_s26 }
 0x461   :  { %v1428_v20 = vpop.permute.xlu1 %1427 }
 0x462   :  { %1432 = vst.msk [vmem:[#allocation3 + $0x23] sm:$0xff] %vm425_vm1, %v1428_v20 }
 0x463   :  { %647 = vrot.lane.b32.xlu0 %v2666_v21, %s2178_s17 }
 0x464   :  { %645 = vrot.lane.b32.xlu1 %v2668_v22, %s2178_s17 }
 0x465   :  { %v1482_v23 = vpop.permute.xlu0 %1481  ;;  %v1480_v24 = vpop.permute.xlu1 %1479 }
 0x466   :  { %1486 = vst.msk [vmem:[#allocation3 + $0x23] sm:$0xff] %vm481_vm2, %v1482_v23  ;;  %1485 = vst.msk [vmem:[#allocation3 + $0x1b] sm:$0xff] %vm481_vm2, %v1480_v24 }
 0x467   :  { %651 = vrot.lane.b32.xlu0 %v2666_v21, %s2180_s19 }
 0x468   :  { %649 = vrot.lane.b32.xlu1 %v2668_v22, %s2180_s19 }
 0x469   :  { %v1534_v25 = vpop.permute.xlu0 %1533  ;;  %v1536_v26 = vpop.permute.xlu1 %1535 }
 0x46a   :  { %1539 = vst.msk [vmem:[#allocation3 + $0x1b] sm:$0xff] %vm537_vm3, %v1534_v25  ;;  %1540 = vst.msk [vmem:[#allocation3 + $0x23] sm:$0xff] %vm537_vm3, %v1536_v26 }
 0x46b   :  { %655 = vrot.lane.b32.xlu0 %v2666_v21, %s2193_s26 }
 0x46c   :  { %653 = vrot.lane.b32.xlu1 %v2668_v22, %s2193_s26 }
 0x46d   :  { %v434_v27 = vpop.permute.xlu0 %433  ;;  %v444_v28 = vpop.permute.xlu1 %443 }
 0x46e   :  { %437 = vst.msk [vmem:[#allocation3] sm:$0x7] %vm436_vm4, %v434_v27  ;;  %446 = vst.msk [vmem:[#allocation3 + $0x13] sm:$0x7] %vm436_vm4, %v444_v28 }
 0x46f   :  { %659 = vrot.lane.b32.xlu0 %v2666_v21, %s2179_s18 }
 0x470   :  { %657 = vrot.lane.b32.xlu1 %v2668_v22, %s2179_s18 }
 0x471   :  { %v490_v30 = vpop.permute.xlu0 %489  ;;  %v500_v31 = vpop.permute.xlu1 %499  ;;  %v2707_v39 = vld [vmem:[#allocation3 + $0x20] sm:$0xff] }
 0x472   :  { %493 = vst.msk [vmem:[#allocation3] sm:$0x7] %vm492_vm5, %v490_v30  ;;  %502 = vst.msk [vmem:[#allocation3 + $0x13] sm:$0x7] %vm492_vm5, %v500_v31  ;;  %v2730_v44 = vld [vmem:[#allocation3 + $0x1b] sm:$0xff]  ;;  %v2828_v4 = vld [vmem:[#allocation3 + $0x23] sm:$0xff] }
 0x473   :  { %663 = vrot.lane.b32.xlu0 %v2666_v21, %s2191_s24  ;;  %v2754_v5 = vld [vmem:[#allocation3 + $0x1c] sm:$0xff] }
 0x474   :  { %661 = vrot.lane.b32.xlu1 %v2668_v22, %s2191_s24  ;;  %v2774_v49 = vld [vmem:[#allocation3 + $0x1d] sm:$0xff] }
 0x475   :  { %v546_v32 = vpop.permute.xlu0 %545  ;;  %v556_v33 = vpop.permute.xlu1 %555  ;;  %v2808_v60 = vld [vmem:[#allocation3 + $0x21] sm:$0xff] }
 0x476   :  { %549 = vst.msk [vmem:[#allocation3] sm:$0x7] %vm548_vm6, %v546_v32  ;;  %558 = vst.msk [vmem:[#allocation3 + $0x13] sm:$0x7] %vm548_vm6, %v556_v33  ;;  %v2818_v63 = vld [vmem:[#allocation3 + $0x22] sm:$0xff] }
 0x477   :  { %667 = vrot.lane.b32.xlu0 %v2666_v21, %s2192_s25 }
 0x478   :  { %665 = vrot.lane.b32.xlu1 %v2668_v22, %s2192_s25 }
 0x479   :  { %v1439_v34 = vpop.permute.xlu0 %1438  ;;  %v1493_v45 = vpop.permute.xlu1 %1492 }
 0x47a   :  { %1441 = vst.msk [vmem:[#allocation3 + $0x18] sm:$0x7] %vm436_vm4, %v1439_v34 }
 0x47b   :  { %1495 = vst.msk [vmem:[#allocation3 + $0x18] sm:$0x7] %vm492_vm5, %v1493_v45  ;;  %1575 = vrot.lane.b32.xlu0 %v2707_v39, %s2178_s17  ;;  %v2948_v45 = vld [vmem:[#allocation3 + $0x1e] sm:$0xff] }
 0x47c   :  { %669 = vrot.lane.b32.xlu1 %v2705_v38, %s2178_s17 }
 0x47d   :  { %v1547_v36 = vpop.permute.xlu0 %1546  ;;  %v1448_v51 = vpop.permute.xlu1 %1447  ;;  %v2854_v8 = vld [vmem:[#allocation3] sm:$0xff]  ;;  %v2938_v32 = vld [vmem:[#allocation3 + $0xc] sm:$0xff] }
 0x47e   :  { %1549 = vst.msk [vmem:[#allocation3 + $0x18] sm:$0x7] %vm548_vm6, %v1547_v36  ;;  %v2904_v20 = vld [vmem:[#allocation3 + $0x1] sm:$0xff] }
 0x47f   :  { %1450 = vst.msk [vmem:[#allocation3 + $0x2b] sm:$0x7] %vm436_vm4, %v1448_v51  ;;  %1579 = vrot.lane.b32.xlu0 %v2707_v39, %s2180_s19 }
 0x480   :  { %673 = vrot.lane.b32.xlu1 %v2705_v38, %s2180_s19 }
 0x481   :  { %v1502_v40 = vpop.permute.xlu0 %1501  ;;  %v1556_v41 = vpop.permute.xlu1 %1555 }
 0x482   :  { %1504 = vst.msk [vmem:[#allocation3 + $0x2b] sm:$0x7] %vm492_vm5, %v1502_v40 }
 0x483   :  { %1558 = vst.msk [vmem:[#allocation3 + $0x2b] sm:$0x7] %vm548_vm6, %v1556_v41  ;;  %1583 = vrot.lane.b32.xlu0 %v2707_v39, %s2193_s26 }
 0x484   :  { %677 = vrot.lane.b32.xlu1 %v2705_v38, %s2193_s26 }
 0x487   :  { %1587 = vrot.lane.b32.xlu0 %v2707_v39, %s2179_s18 }
 0x488   :  { %681 = vrot.lane.b32.xlu1 %v2705_v38, %s2179_s18 }
 0x48b   :  { %1645 = vrot.lane.b32.xlu0 %v2730_v44, %s2178_s17 }
 0x48c   :  { %685 = vrot.lane.b32.xlu1 %v2705_v38, %s2191_s24 }
 0x48f   :  { %1649 = vrot.lane.b32.xlu0 %v2730_v44, %s2180_s19 }
 0x490   :  { %689 = vrot.lane.b32.xlu1 %v2705_v38, %s2192_s25 }
 0x493   :  { %1653 = vrot.lane.b32.xlu0 %v2730_v44, %s2193_s26 }
 0x494   :  { %693 = vrot.lane.b32.xlu1 %v2740_v46, %s2178_s17 }
 0x497   :  { %1657 = vrot.lane.b32.xlu0 %v2730_v44, %s2179_s18 }
 0x498   :  { %697 = vrot.lane.b32.xlu1 %v2740_v46, %s2180_s19 }
 0x49b   :  { %1661 = vrot.lane.b32.xlu0 %v2730_v44, %s2191_s24 }
 0x49c   :  { %701 = vrot.lane.b32.xlu1 %v2740_v46, %s2193_s26 }
 0x49f   :  { %1681 = vrot.lane.b32.xlu0 %v2754_v5, %s2179_s18 }
 0x4a0   :  { %705 = vrot.lane.b32.xlu1 %v2740_v46, %s2179_s18 }
 0x4a3   :  { %1685 = vrot.lane.b32.xlu0 %v2754_v5, %s2191_s24 }
 0x4a4   :  { %709 = vrot.lane.b32.xlu1 %v2740_v46, %s2191_s24 }
 0x4a7   :  { %1665 = vrot.lane.b32.xlu0 %v2730_v44, %s2192_s25 }
 0x4a8   :  { %713 = vrot.lane.b32.xlu1 %v2740_v46, %s2192_s25 }
 0x4ab   :  { %1689 = vrot.lane.b32.xlu0 %v2754_v5, %s2192_s25 }
 0x4ac   :  { %717 = vrot.lane.b32.xlu1 %v2768_v48, %s2178_s17 }
 0x4af   :  { %1709 = vrot.lane.b32.xlu0 %v2774_v49, %s2191_s24 }
 0x4b0   :  { %721 = vrot.lane.b32.xlu1 %v2768_v48, %s2180_s19 }
 0x4b1   :  { %v2780_v0 = vpop.permute.xlu0 %611 }
 0x4b2   :  { %v2782_v37 = vpop.permute.xlu1 %575 }
 0x4b3   :  { %3873 = vst [vmem:[#allocation7_spill] sm:$0xff] %v2782_v37  ;;  %1713 = vrot.lane.b32.xlu0 %v2774_v49, %s2192_s25 }
 0x4b4   :  { %725 = vrot.lane.b32.xlu1 %v2768_v48, %s2193_s26 }
 0x4b5   :  { %v2788_v52 = vpop.permute.xlu0 %615 }
 0x4b6   :  { %v2790_v53 = vpop.permute.xlu1 %579 }
 0x4b7   :  { %3874 = vst [vmem:[#allocation8_spill] sm:$0xff] %v2790_v53  ;;  %1591 = vrot.lane.b32.xlu0 %v2707_v39, %s2191_s24 }
 0x4b8   :  { %729 = vrot.lane.b32.xlu1 %v2768_v48, %s2179_s18 }
 0x4b9   :  { %v2796_v54 = vpop.permute.xlu0 %619 }
 0x4ba   :  { %v2798_v56 = vpop.permute.xlu1 %583 }
 0x4bb   :  { %3875 = vst [vmem:[#allocation9_spill] sm:$0xff] %v2798_v56  ;;  %1595 = vrot.lane.b32.xlu0 %v2707_v39, %s2192_s25  ;;  %v3090_v56 = vld [vmem:[#allocation3 + $0x19] sm:$0xff] }
 0x4bc   :  { %733 = vrot.lane.b32.xlu1 %v2768_v48, %s2191_s24 }
 0x4bd   :  { %v2804_v57 = vpop.permute.xlu0 %623 }
 0x4be   :  { %v2806_v58 = vpop.permute.xlu1 %587 }
 0x4bf   :  { %1615 = vrot.lane.b32.xlu0 %v2808_v60, %s2191_s24 }
 0x4c0   :  { %737 = vrot.lane.b32.xlu1 %v2768_v48, %s2192_s25 }
 0x4c1   :  { %v2814_v61 = vpop.permute.xlu0 %627 }
 0x4c2   :  { %3876 = vst [vmem:[#allocation10_spill] sm:$0xff] %v2814_v61  ;;  %v2816_v62 = vpop.permute.xlu1 %591 }
 0x4c3   :  { %3877 = vst [vmem:[#allocation11_spill] sm:$0xff] %v2816_v62  ;;  %1635 = vrot.lane.b32.xlu0 %v2818_v63, %s2179_s18 }
 0x4c4   :  { %1623 = vrot.lane.b32.xlu1 %v2818_v63, %s2178_s17 }
 0x4c5   :  { %v2824_v2 = vpop.permute.xlu0 %631 }
 0x4c6   :  { %3878 = vst [vmem:[#allocation12_spill] sm:$0xff] %v2824_v2  ;;  %v2826_v3 = vpop.permute.xlu1 %595  ;;  %v1794_v2 = vmul.f32 0.036632847, %v2808_v60 }
 0x4c7   :  { %1619 = vrot.lane.b32.xlu0 %v2808_v60, %s2192_s25 }
 0x4c8   :  { %1647 = vrot.lane.b32.xlu1 %v2828_v4, %s2178_s17 }
 0x4c9   :  { %v2834_v1 = vpop.permute.xlu0 %635 }
 0x4ca   :  { %v2836_v43 = vpop.permute.xlu1 %599 }
 0x4cb   :  { %1639 = vrot.lane.b32.xlu0 %v2818_v63, %s2191_s24 }
 0x4cc   :  { %1651 = vrot.lane.b32.xlu1 %v2828_v4, %s2180_s19 }
 0x4cd   :  { %v2842_v50 = vpop.permute.xlu0 %639 }
 0x4ce   :  { %v2844_v6 = vpop.permute.xlu1 %603 }
 0x4cf   :  { %3879 = vst [vmem:[#allocation13_spill] sm:$0xff] %v2844_v6  ;;  %1643 = vrot.lane.b32.xlu0 %v2818_v63, %s2192_s25 }
 0x4d0   :  { %1599 = vrot.lane.b32.xlu1 %v2808_v60, %s2178_s17 }
 0x4d1   :  { %v2850_v7 = vpop.permute.xlu0 %643 }
 0x4d2   :  { %v2852_v59 = vpop.permute.xlu1 %607 }
 0x4d3   :  { %3880 = vst [vmem:[#allocation14_spill] sm:$0xff] %v2852_v59  ;;  %573 = vrot.lane.b32.xlu0 %v2854_v8, %s2178_s17 }
 0x4d4   :  { %1627 = vrot.lane.b32.xlu1 %v2818_v63, %s2180_s19 }
 0x4d5   :  { %v2860_v9 = vpop.permute.xlu0 %647 }
 0x4d6   :  { %v2862_v10 = vpop.permute.xlu1 %645 }
 0x4d7   :  { %3881 = vst [vmem:[#allocation15_spill] sm:$0xff] %v2862_v10  ;;  %577 = vrot.lane.b32.xlu0 %v2854_v8, %s2180_s19 }
 0x4d8   :  { %1655 = vrot.lane.b32.xlu1 %v2828_v4, %s2193_s26 }
 0x4d9   :  { %v2868_v11 = vpop.permute.xlu0 %651 }
 0x4da   :  { %v2870_v12 = vpop.permute.xlu1 %649 }
 0x4db   :  { %3882 = vst [vmem:[#allocation16_spill] sm:$0xff] %v2870_v12  ;;  %581 = vrot.lane.b32.xlu0 %v2854_v8, %s2193_s26 }
 0x4dc   :  { %1603 = vrot.lane.b32.xlu1 %v2808_v60, %s2180_s19 }
 0x4dd   :  { %v2876_v13 = vpop.permute.xlu0 %655 }
 0x4de   :  { %v2878_v35 = vpop.permute.xlu1 %653 }
 0x4df   :  { %3883 = vst [vmem:[#allocation17_spill] sm:$0xff] %v2878_v35  ;;  %585 = vrot.lane.b32.xlu0 %v2854_v8, %s2179_s18 }
 0x4e0   :  { %1659 = vrot.lane.b32.xlu1 %v2828_v4, %s2179_s18 }
 0x4e1   :  { %v2884_v29 = vpop.permute.xlu0 %659 }
 0x4e2   :  { %v2886_v47 = vpop.permute.xlu1 %657 }
 0x4e3   :  { %3884 = vst [vmem:[#allocation18_spill] sm:$0xff] %v2886_v47  ;;  %589 = vrot.lane.b32.xlu0 %v2854_v8, %s2191_s24 }
 0x4e4   :  { %1663 = vrot.lane.b32.xlu1 %v2828_v4, %s2191_s24 }
 0x4e5   :  { %v2892_v14 = vpop.permute.xlu0 %663 }
 0x4e6   :  { %v2894_v55 = vpop.permute.xlu1 %661 }
 0x4e7   :  { %3885 = vst [vmem:[#allocation19_spill] sm:$0xff] %v2894_v55  ;;  %593 = vrot.lane.b32.xlu0 %v2854_v8, %s2192_s25  ;;  %v1820_v55 = vmul.f32 0.036632847, %v2707_v39 }
 0x4e8   :  { %1607 = vrot.lane.b32.xlu1 %v2808_v60, %s2193_s26 }
 0x4e9   :  { %v2900_v15 = vpop.permute.xlu0 %667 }
 0x4ea   :  { %v2902_v16 = vpop.permute.xlu1 %665 }
 0x4eb   :  { %3886 = vst [vmem:[#allocation20_spill] sm:$0xff] %v2902_v16  ;;  %597 = vrot.lane.b32.xlu0 %v2904_v20, %s2178_s17 }
 0x4ec   :  { %1631 = vrot.lane.b32.xlu1 %v2818_v63, %s2193_s26 }
 0x4ed   :  { %v2910_v23 = vpop.permute.xlu0 %1575 }
 0x4ee   :  { %v2912_v24 = vpop.permute.xlu1 %669 }
 0x4ef   :  { %3887 = vst [vmem:[#allocation21_spill] sm:$0xff] %v2912_v24  ;;  %601 = vrot.lane.b32.xlu0 %v2904_v20, %s2180_s19 }
 0x4f0   :  { %1667 = vrot.lane.b32.xlu1 %v2828_v4, %s2192_s25 }
 0x4f1   :  { %v2918_v25 = vpop.permute.xlu0 %1579 }
 0x4f2   :  { %v2920_v26 = vpop.permute.xlu1 %673 }
 0x4f3   :  { %3888 = vst [vmem:[#allocation22_spill] sm:$0xff] %v2920_v26  ;;  %605 = vrot.lane.b32.xlu0 %v2904_v20, %s2193_s26 }
 0x4f4   :  { %1611 = vrot.lane.b32.xlu1 %v2808_v60, %s2179_s18 }
 0x4f5   :  { %v2926_v27 = vpop.permute.xlu0 %1583 }
 0x4f6   :  { %v2928_v28 = vpop.permute.xlu1 %677 }
 0x4f7   :  { %3889 = vst [vmem:[#allocation23_spill] sm:$0xff] %v2928_v28  ;;  %609 = vrot.lane.b32.xlu0 %v2904_v20, %s2179_s18 }
 0x4f8   :  { %1677 = vrot.lane.b32.xlu1 %v2754_v5, %s2193_s26 }
 0x4f9   :  { %v2934_v30 = vpop.permute.xlu0 %1587 }
 0x4fa   :  { %v2936_v31 = vpop.permute.xlu1 %681 }
 0x4fb   :  { %3890 = vst [vmem:[#allocation24_spill] sm:$0xff] %v2936_v31  ;;  %671 = vrot.lane.b32.xlu0 %v2938_v32, %s2178_s17 }
 0x4fc   :  { %1705 = vrot.lane.b32.xlu1 %v2774_v49, %s2179_s18 }
 0x4fd   :  { %v2944_v33 = vpop.permute.xlu0 %1645 }
 0x4fe   :  { %3891 = vst [vmem:[#allocation25_spill] sm:$0xff] %v2944_v33  ;;  %v2946_v34 = vpop.permute.xlu1 %685  ;;  %v3080_v33 = vld [vmem:[#allocation3 + $0x1a] sm:$0xff] }
 0x4ff   :  { %3892 = vst [vmem:[#allocation26_spill] sm:$0xff] %v2946_v34  ;;  %675 = vrot.lane.b32.xlu0 %v2938_v32, %s2180_s19 }
 0x500   :  { %1737 = vrot.lane.b32.xlu1 %v2948_v45, %s2192_s25 }
 0x501   :  { %v2954_v36 = vpop.permute.xlu0 %1649 }
 0x502   :  { %3893 = vst [vmem:[#allocation27_spill] sm:$0xff] %v2954_v36  ;;  %v2956_v51 = vpop.permute.xlu1 %689 }
 0x503   :  { %3894 = vst [vmem:[#allocation28_spill] sm:$0xff] %v2956_v51  ;;  %679 = vrot.lane.b32.xlu0 %v2938_v32, %s2193_s26 }
 0x504   :  { %1733 = vrot.lane.b32.xlu1 %v2948_v45, %s2191_s24 }
 0x505   :  { %v2962_v40 = vpop.permute.xlu0 %1653 }
 0x506   :  { %3895 = vst [vmem:[#allocation29_spill] sm:$0xff] %v2962_v40  ;;  %v2964_v41 = vpop.permute.xlu1 %693 }
 0x507   :  { %3896 = vst [vmem:[#allocation30_spill] sm:$0xff] %v2964_v41  ;;  %683 = vrot.lane.b32.xlu0 %v2938_v32, %s2179_s18 }
 0x508   :  { %1701 = vrot.lane.b32.xlu1 %v2774_v49, %s2193_s26 }
 0x509   :  { %v2970_v42 = vpop.permute.xlu0 %1657 }
 0x50a   :  { %3897 = vst [vmem:[#allocation31_spill] sm:$0xff] %v2970_v42  ;;  %v2972_v34 = vpop.permute.xlu1 %697 }
 0x50b   :  { %3898 = vst [vmem:[#allocation32_spill] sm:$0xff] %v2972_v34  ;;  %687 = vrot.lane.b32.xlu0 %v2938_v32, %s2191_s24  ;;  %v2990_v34 = vld [vmem:[#allocation3 + $0xd] sm:$0xff] }
 0x50c   :  { %1729 = vrot.lane.b32.xlu1 %v2948_v45, %s2179_s18 }
 0x50d   :  { %v2978_v51 = vpop.permute.xlu0 %1661 }
 0x50e   :  { %3899 = vst [vmem:[#allocation33_spill] sm:$0xff] %v2978_v51  ;;  %v2980_v31 = vpop.permute.xlu1 %701 }
 0x50f   :  { %3900 = vst [vmem:[#allocation34_spill] sm:$0xff] %v2980_v31  ;;  %691 = vrot.lane.b32.xlu0 %v2938_v32, %s2192_s25 }
 0x510   :  { %1673 = vrot.lane.b32.xlu1 %v2754_v5, %s2180_s19 }
 0x511   :  { %v2986_v41 = vpop.permute.xlu0 %1681 }
 0x512   :  { %3901 = vst [vmem:[#allocation35_spill] sm:$0xff] %v2986_v41  ;;  %v2988_v42 = vpop.permute.xlu1 %705 }
 0x513   :  { %3902 = vst [vmem:[#allocation36_spill] sm:$0xff] %v2988_v42  ;;  %695 = vrot.lane.b32.xlu0 %v2990_v34, %s2178_s17 }
 0x514   :  { %1697 = vrot.lane.b32.xlu1 %v2774_v49, %s2180_s19 }
 0x515   :  { %v2996_v51 = vpop.permute.xlu0 %1685 }
 0x516   :  { %3903 = vst [vmem:[#allocation37_spill] sm:$0xff] %v2996_v51  ;;  %v2998_v31 = vpop.permute.xlu1 %709 }
 0x517   :  { %3904 = vst [vmem:[#allocation38_spill] sm:$0xff] %v2998_v31  ;;  %699 = vrot.lane.b32.xlu0 %v2990_v34, %s2180_s19 }
 0x518   :  { %1725 = vrot.lane.b32.xlu1 %v2948_v45, %s2193_s26 }
 0x519   :  { %v3004_v41 = vpop.permute.xlu0 %1665 }
 0x51a   :  { %3905 = vst [vmem:[#allocation39_spill] sm:$0xff] %v3004_v41  ;;  %v3006_v42 = vpop.permute.xlu1 %713 }
 0x51b   :  { %3906 = vst [vmem:[#allocation40_spill] sm:$0xff] %v3006_v42  ;;  %703 = vrot.lane.b32.xlu0 %v2990_v34, %s2193_s26 }
 0x51c   :  { %1721 = vrot.lane.b32.xlu1 %v2948_v45, %s2180_s19 }
 0x51d   :  { %v3012_v28 = vpop.permute.xlu0 %1689 }
 0x51e   :  { %3907 = vst [vmem:[#allocation41_spill] sm:$0xff] %v3012_v28  ;;  %v3014_v51 = vpop.permute.xlu1 %717 }
 0x51f   :  { %3908 = vst [vmem:[#allocation42_spill] sm:$0xff] %v3014_v51  ;;  %707 = vrot.lane.b32.xlu0 %v2990_v34, %s2179_s18 }
 0x520   :  { %1669 = vrot.lane.b32.xlu1 %v2754_v5, %s2178_s17 }
 0x521   :  { %v3020_v31 = vpop.permute.xlu0 %1709 }
 0x522   :  { %3909 = vst [vmem:[#allocation43_spill] sm:$0xff] %v3020_v31  ;;  %v3022_v41 = vpop.permute.xlu1 %721 }
 0x523   :  { %3910 = vst [vmem:[#allocation44_spill] sm:$0xff] %v3022_v41  ;;  %711 = vrot.lane.b32.xlu0 %v2990_v34, %s2191_s24  ;;  %v3040_v41 = vld [vmem:[#allocation3 + $0xe] sm:$0xff] }
 0x524   :  { %1693 = vrot.lane.b32.xlu1 %v2774_v49, %s2178_s17 }
 0x525   :  { %v3028_v42 = vpop.permute.xlu0 %1713 }
 0x526   :  { %3911 = vst [vmem:[#allocation45_spill] sm:$0xff] %v3028_v42  ;;  %v3030_v28 = vpop.permute.xlu1 %725  ;;  %v3050_v42 = vld [vmem:[#allocation3 + $0x2] sm:$0xff] }
 0x527   :  { %3912 = vst [vmem:[#allocation46_spill] sm:$0xff] %v3030_v28  ;;  %715 = vrot.lane.b32.xlu0 %v2990_v34, %s2192_s25 }
 0x528   :  { %613 = vrot.lane.b32.xlu1 %v2904_v20, %s2191_s24 }
 0x529   :  { %v3036_v5 = vpop.permute.xlu0 %1591 }
 0x52a   :  { %v3038_v31 = vpop.permute.xlu1 %729 }
 0x52b   :  { %3913 = vst [vmem:[#allocation47_spill] sm:$0xff] %v3038_v31  ;;  %719 = vrot.lane.b32.xlu0 %v3040_v41, %s2178_s17 }
 0x52c   :  { %617 = vrot.lane.b32.xlu1 %v2904_v20, %s2192_s25 }
 0x52d   :  { %v3046_v49 = vpop.permute.xlu0 %1595 }
 0x52e   :  { %3914 = vst [vmem:[#allocation48_spill] sm:$0xff] %v3046_v49  ;;  %v3048_v28 = vpop.permute.xlu1 %733 }
 0x52f   :  { %3915 = vst [vmem:[#allocation49_spill] sm:$0xff] %v3048_v28  ;;  %723 = vrot.lane.b32.xlu0 %v3040_v41, %s2180_s19 }
 0x530   :  { %621 = vrot.lane.b32.xlu1 %v3050_v42, %s2178_s17 }
 0x531   :  { %v3056_v31 = vpop.permute.xlu0 %1615 }
 0x532   :  { %3916 = vst [vmem:[#allocation50_spill] sm:$0xff] %v3056_v31  ;;  %v3058_v51 = vpop.permute.xlu1 %737 }
 0x533   :  { %3917 = vst [vmem:[#allocation51_spill] sm:$0xff] %v3058_v51  ;;  %727 = vrot.lane.b32.xlu0 %v3040_v41, %s2193_s26 }
 0x534   :  { %625 = vrot.lane.b32.xlu1 %v3050_v42, %s2180_s19 }
 0x535   :  { %v3064_v49 = vpop.permute.xlu0 %1635 }
 0x536   :  { %v1624_v28 = vpop.permute.xlu1 %1623 }
 0x537   :  { %731 = vrot.lane.b32.xlu0 %v3040_v41, %s2179_s18 }
 0x538   :  { %629 = vrot.lane.b32.xlu1 %v3050_v42, %s2193_s26 }
 0x539   :  { %v3070_v26 = vpop.permute.xlu0 %1619 }
 0x53a   :  { %3918 = vst [vmem:[#allocation52_spill] sm:$0xff] %v3070_v26  ;;  %v1648_v31 = vpop.permute.xlu1 %1647  ;;  %v1770_v26 = vmul.f32 0.11128076, %v1624_v28 }
 0x53b   :  { %735 = vrot.lane.b32.xlu0 %v3040_v41, %s2191_s24  ;;  %v1744_v60 = vmul.f32 0.11128076, %v1648_v31 }
 0x53c   :  { %633 = vrot.lane.b32.xlu1 %v3050_v42, %s2179_s18  ;;  %v1796_v28 = vadd.f32 %v1794_v2, %v1770_v26 }
 0x53d   :  { %v1640_v51 = vpop.permute.xlu0 %1639 }
 0x53e   :  { %v1652_v40 = vpop.permute.xlu1 %1651  ;;  %v3098_v59 = vmul.f32 0.11128076, %v1640_v51 }
 0x53f   :  { %739 = vrot.lane.b32.xlu0 %v3040_v41, %s2192_s25  ;;  %v1748_v2 = vmul.f32 0.21674532, %v1652_v40 }
 0x540   :  { %637 = vrot.lane.b32.xlu1 %v3050_v42, %s2191_s24  ;;  %3920 = vst [vmem:[#allocation54_spill] sm:$0xff] %v3098_v59 }
 0x541   :  { %v1644_v24 = vpop.permute.xlu0 %1643 }
 0x542   :  { %v1600_v36 = vpop.permute.xlu1 %1599  ;;  %v2028_v53 = vmul.f32 0.036632847, %v1644_v24  ;;  %v1768_v24 = vmul.f32 0.036632847, %v2818_v63 }
 0x543   :  { %v1822_v16 = vmul.f32 0.11128076, %v1600_v36  ;;  %1621 = vrot.lane.b32.xlu0 %v3080_v33, %s2178_s17  ;;  %v3092_v36 = vld [vmem:[#allocation3 + $0x18] sm:$0xff] }
 0x544   :  { %641 = vrot.lane.b32.xlu1 %v3050_v42, %s2192_s25 }
 0x545   :  { %v3087_v47 = vpop.permute.xlu0 %573  ;;  %v1824_v61 = vadd.f32 %v1822_v16, %v1820_v55  ;;  %v2030_v16 = vadd.f32 %v2028_v53, %v3098_v59  ;;  %v1846_v53 = vmul.f32 0.036632847, %v2910_v23  ;;  %v1772_v59 = vadd.f32 %v1770_v26, %v1768_v24 }
 0x546   :  { %3919 = vst [vmem:[#allocation53_spill] sm:$0xff] %v3087_v47  ;;  %v1628_v35 = vpop.permute.xlu1 %1627 }
 0x547   :  { %v1798_v12 = vmul.f32 0.21674532, %v1628_v35  ;;  %1597 = vrot.lane.b32.xlu0 %v3090_v56, %s2178_s17  ;;  %v2032_v6 = vadd.f32 %v2030_v16, %v1748_v2 }
 0x548   :  { %1573 = vrot.lane.b32.xlu1 %v3092_v36, %s2178_s17 }
 0x549   :  { %v1826_v39 = vadd.f32 %v1824_v61, %v1798_v12  ;;  %v578_v47 = vpop.permute.xlu0 %577  ;;  %v1800_v55 = vadd.f32 %v1798_v12, %v1796_v28  ;;  %v1742_v61 = vmul.f32 0.036632847, %v2828_v4  ;;  %v1774_v4 = vadd.f32 %v1772_v59, %v1748_v2 }
 0x54a   :  { %v1656_v62 = vpop.permute.xlu1 %1655 }
 0x54b   :  { %v3100_v35 = vmul.f32 0.27068216, %v1656_v62  ;;  %1625 = vrot.lane.b32.xlu0 %v3080_v33, %s2180_s19  ;;  %v1746_v37 = vadd.f32 %v1744_v60, %v1742_v61 }
 0x54c   :  { %1577 = vrot.lane.b32.xlu1 %v3092_v36, %s2180_s19 }
 0x54d   :  { %3921 = vst [vmem:[#allocation55_spill] sm:$0xff] %v3100_v35  ;;  %v3110_v51 = vadd.f32 %v1800_v55, %v3100_v35  ;;  %v3112_v31 = vpop.permute.xlu0 %581  ;;  %v3115_v28 = vadd.f32 %v1826_v39, %v3100_v35  ;;  %v1750_v63 = vadd.f32 %v1748_v2, %v1746_v37  ;;  %v2034_v39 = vadd.f32 %v2032_v6, %v3100_v35 }
 0x54e   :  { %v1604_v62 = vpop.permute.xlu1 %1603  ;;  %v1776_v60 = vadd.f32 %v1774_v4, %v3100_v35  ;;  %v1898_v4 = vmul.f32 0.036632847, %v2926_v27 }
 0x54f   :  { %3922 = vst [vmem:[#allocation56_spill] sm:$0xff] %v3110_v51  ;;  %3923 = vst [vmem:[#allocation57_spill] sm:$0xff] %v3115_v28  ;;  %v1848_v10 = vmul.f32 0.11128076, %v1604_v62  ;;  %1601 = vrot.lane.b32.xlu0 %v3090_v56, %s2180_s19  ;;  %v1754_v26 = vadd.f32 %v3100_v35, %v1750_v63  ;;  %v3144_v63 = vld [vmem:[#allocation3 + $0x24] sm:$0xff] }
 0x550   :  { %1581 = vrot.lane.b32.xlu1 %v3092_v36, %s2193_s26 }
 0x551   :  { %v1850_v40 = vadd.f32 %v1848_v10, %v1846_v53  ;;  %v3122_v55 = vpop.permute.xlu0 %585 }
 0x552   :  { %v1660_v28 = vpop.permute.xlu1 %1659 }
 0x553   :  { %v1852_v51 = vadd.f32 %v1850_v40, %v1798_v12  ;;  %v1756_v23 = vmul.f32 0.21674532, %v1660_v28  ;;  %1605 = vrot.lane.b32.xlu0 %v3090_v56, %s2193_s26 }
 0x554   :  { %1585 = vrot.lane.b32.xlu1 %v3092_v36, %s2179_s18 }
 0x555   :  { %v3131_v37 = vadd.f32 %v2034_v39, %v1756_v23  ;;  %v1758_v59 = vadd.f32 %v1756_v23, %v1754_v26  ;;  %v3133_v16 = vadd.f32 %v1776_v60, %v1756_v23  ;;  %v3136_v6 = vadd.f32 %v1852_v51, %v3100_v35  ;;  %v590_v12 = vpop.permute.xlu0 %589 }
 0x556   :  { %v1664_v24 = vpop.permute.xlu1 %1663  ;;  %v1872_v51 = vmul.f32 0.036632847, %v2918_v25 }
 0x557   :  { %3924 = vst [vmem:[#allocation58_spill] sm:$0xff] %v3131_v37  ;;  %3925 = vst [vmem:[#allocation59_spill] sm:$0xff] %v3133_v16  ;;  %v1760_v61 = vmul.f32 0.11128076, %v1664_v24  ;;  %1629 = vrot.lane.b32.xlu0 %v3080_v33, %s2193_s26 }
 0x558   :  { %3926 = vst [vmem:[#allocation60_spill] sm:$0xff] %v3136_v6  ;;  %1589 = vrot.lane.b32.xlu1 %v3092_v36, %s2191_s24  ;;  %v1874_v23 = vadd.f32 %v1872_v51, %v1848_v10  ;;  %v3160_v6 = vld [vmem:[#allocation3 + $0x25] sm:$0xff] }
 0x559   :  { %v1762_v2 = vadd.f32 %v1760_v61, %v1758_v59  ;;  %v3142_v62 = vpop.permute.xlu0 %593  ;;  %v871_v61 = vmul.f32 0.036632847, %v578_v47 }
 0x55a   :  { %v1608_v28 = vpop.permute.xlu1 %1607 }
 0x55b   :  { %v1900_v53 = vmul.f32 0.11128076, %v1608_v28  ;;  %1609 = vrot.lane.b32.xlu0 %v3090_v56, %s2179_s18 }
 0x55c   :  { %1683 = vrot.lane.b32.xlu1 %v3144_v63, %s2179_s18 }
 0x55d   :  { %v3152_v40 = vpop.permute.xlu0 %597  ;;  %v1902_v26 = vadd.f32 %v1900_v53, %v1898_v4  ;;  %v1950_v4 = vmul.f32 0.036632847, %v3036_v5 }
 0x55e   :  { %v1632_v39 = vpop.permute.xlu1 %1631 }
 0x55f   :  { %v1876_v60 = vmul.f32 0.21674532, %v1632_v39  ;;  %1679 = vrot.lane.b32.xlu0 %v3144_v63, %s2193_s26 }
 0x560   :  { %1687 = vrot.lane.b32.xlu1 %v3144_v63, %s2191_s24 }
 0x561   :  { %v1878_v59 = vadd.f32 %v1876_v60, %v1874_v23  ;;  %v1904_v24 = vadd.f32 %v1902_v26, %v1876_v60  ;;  %v602_v28 = vpop.permute.xlu0 %601  ;;  %v3179_v26 = vld [vmem:[#allocation3 + $0x26] sm:$0xff] }
 0x562   :  { %v1668_v37 = vpop.permute.xlu1 %1667  ;;  %v3158_v25 = vmul.f32 0.11128076, %v602_v28 }
 0x563   :  { %v1764_v27 = vmul.f32 0.036632847, %v1668_v37  ;;  %v3163_v10 = vadd.f32 %v1878_v59, %v3100_v35  ;;  %v3166_v53 = vadd.f32 %v1904_v24, %v3100_v35  ;;  %1707 = vrot.lane.b32.xlu0 %v3160_v6, %s2179_s18  ;;  %v1924_v37 = vmul.f32 0.036632847, %v2934_v30 }
 0x564   :  { %1691 = vrot.lane.b32.xlu1 %v3144_v63, %s2192_s25  ;;  %v3173_v47 = vadd.f32 %v871_v61, %v3158_v25  ;;  %v897_v59 = vmul.f32 0.036632847, %v3112_v31  ;;  %v3190_v30 = vmul.f32 0.21674532, %v3064_v49  ;;  %v1002_v31 = vmul.f32 0.036632847, %v2796_v54 }
 0x565   :  { %3927 = vst [vmem:[#allocation61_spill] sm:$0xff] %v3163_v10  ;;  %3928 = vst [vmem:[#allocation62_spill] sm:$0xff] %v3166_v53  ;;  %v3175_v51 = vadd.f32 %v1764_v27, %v1762_v2  ;;  %v606_v39 = vpop.permute.xlu0 %605  ;;  %v3183_v53 = vmul.f32 0.21674532, %v2834_v1  ;;  %v3196_v27 = vmul.f32 0.11128076, %v2842_v50 }
 0x566   :  { %3929 = vst [vmem:[#allocation63_spill] sm:$0xff] %v3173_v47  ;;  %v1612_v23 = vpop.permute.xlu1 %1611  ;;  %v899_v24 = vmul.f32 0.11128076, %v606_v39  ;;  %3931 = vst [vmem:[#allocation65_spill] sm:$0xff] %v3190_v30  ;;  %v923_v1 = vmul.f32 0.036632847, %v3122_v55 }
 0x567   :  { %3930 = vst [vmem:[#allocation64_spill] sm:$0xff] %v3175_v51  ;;  %v1926_v28 = vmul.f32 0.11128076, %v1612_v23  ;;  %1739 = vrot.lane.b32.xlu0 %v3179_v26, %s2192_s25  ;;  %v949_v10 = vmul.f32 0.036632847, %v590_v12  ;;  %v3956_v47 = vld [vmem:[#allocation17_spill] sm:$0xff] }
 0x568   :  { %1711 = vrot.lane.b32.xlu1 %v3160_v6, %s2191_s24  ;;  %v3192_v5 = vadd.f32 %v899_v24, %v897_v59  ;;  %v1004_v59 = vadd.f32 %v1002_v31, %v3183_v53 }
 0x569   :  { %v1928_v2 = vadd.f32 %v1926_v28, %v1924_v37  ;;  %v1952_v61 = vadd.f32 %v1950_v4, %v1926_v28  ;;  %v610_v39 = vpop.permute.xlu0 %609  ;;  %v3204_v37 = vmul.f32 0.27068216, %v2876_v13 }
 0x56a   :  { %3932 = vst [vmem:[#allocation66_spill] sm:$0xff] %v3192_v5  ;;  %v3199_v23 = vpop.permute.xlu1 %1677  ;;  %v925_v49 = vmul.f32 0.11128076, %v610_v39  ;;  %v1008_v13 = vadd.f32 %v3196_v27, %v1004_v59  ;;  %v3247_v39 = vmul.f32 0.11128076, %v2804_v57 }
 0x56b   :  { %v1930_v51 = vadd.f32 %v1928_v2, %v1876_v60  ;;  %v1956_v16 = vadd.f32 %v3190_v30, %v1952_v61  ;;  %1735 = vrot.lane.b32.xlu0 %v3179_v26, %s2191_s24  ;;  %v768_v59 = vmul.f32 0.036632847, %v2639_v19  ;;  %v976_v19 = vmul.f32 0.036632847, %v2826_v3 }
 0x56c   :  { %1715 = vrot.lane.b32.xlu1 %v3160_v6, %s2192_s25  ;;  %v3210_v54 = vadd.f32 %v925_v49, %v923_v1  ;;  %v3212_v50 = vadd.f32 %v949_v10, %v925_v49  ;;  %v1010_v10 = vadd.f32 %v1008_v13, %v3204_v37  ;;  %v744_v49 = vmul.f32 0.11128076, %v2860_v9 }
 0x56d   :  { %v3215_v55 = vadd.f32 %v1930_v51, %v3100_v35  ;;  %v3218_v12 = vadd.f32 %v1956_v16, %v3100_v35  ;;  %v672_v60 = vpop.permute.xlu0 %671  ;;  %v3257_v13 = vmul.f32 0.21674532, %v2868_v11  ;;  %v772_v57 = vadd.f32 %v3247_v39, %v768_v59 }
 0x56e   :  { %3933 = vst [vmem:[#allocation67_spill] sm:$0xff] %v3210_v54  ;;  %3934 = vst [vmem:[#allocation68_spill] sm:$0xff] %v3212_v50  ;;  %v3220_v4 = vpop.permute.xlu1 %1705  ;;  %v3223_v24 = vmul.f32 0.11128076, %v672_v60  ;;  %v742_v60 = vmul.f32 0.036632847, %v2666_v21 }
 0x56f   :  { %3935 = vst [vmem:[#allocation69_spill] sm:$0xff] %v3215_v55  ;;  %3936 = vst [vmem:[#allocation70_spill] sm:$0xff] %v3218_v12  ;;  %1703 = vrot.lane.b32.xlu0 %v3160_v6, %s2193_s26  ;;  %v774_v11 = vadd.f32 %v772_v57, %v3257_v13  ;;  %v978_v12 = vmul.f32 0.11128076, %v2788_v52  ;;  %v794_v3 = vmul.f32 0.036632847, %v2623_v17 }
 0x570   :  { %1593 = vrot.lane.b32.xlu1 %v3092_v36, %s2192_s25  ;;  %v1014_v16 = vadd.f32 %v3223_v24, %v1010_v10  ;;  %v746_v9 = vadd.f32 %v744_v49, %v742_v60  ;;  %v760_v60 = vmul.f32 0.11128076, %v2892_v14  ;;  %v820_v57 = vmul.f32 0.036632847, %v2625_v18  ;;  %v3953_v50 = vld [vmem:[#allocation16_spill] sm:$0xff] }
 0x571   :  { %v676_v51 = vpop.permute.xlu0 %675  ;;  %v776_v30 = vadd.f32 %v774_v11, %v3204_v37  ;;  %v980_v52 = vadd.f32 %v978_v12, %v976_v19  ;;  %v764_v14 = vmul.f32 0.036632847, %v2900_v15  ;;  %v3295_v17 = vmul.f32 0.036632847, %v2740_v46  ;;  %v3955_v54 = vld [vmem:[#allocation12_spill] sm:$0xff] }
 0x572   :  { %v3230_v28 = vpop.permute.xlu1 %1737  ;;  %v3233_v2 = vmul.f32 0.21674532, %v676_v51  ;;  %v750_v21 = vadd.f32 %v3257_v13, %v746_v9  ;;  %v3298_v18 = vmul.f32 0.036632847, %v2705_v38  ;;  %v3312_v46 = vmul.f32 0.036632847, %v2938_v32 }
 0x573   :  { %1731 = vrot.lane.b32.xlu0 %v3179_v26, %s2179_s18  ;;  %3939 = vst [vmem:[#allocation73_spill] sm:$0xff] %v3295_v17  ;;  %v982_v12 = vadd.f32 %v980_v52, %v3183_v53 }
 0x574   :  { %1613 = vrot.lane.b32.xlu1 %v3090_v56, %s2191_s24  ;;  %v3240_v61 = vadd.f32 %v1014_v16, %v3233_v2  ;;  %v3272_v16 = vmul.f32 0.21674532, %v2884_v29  ;;  %v754_v49 = vadd.f32 %v3204_v37, %v750_v21  ;;  %v741_v29 = vmul.f32 0.036632847, %v2668_v22  ;;  %3940 = vst [vmem:[#allocation74_spill] sm:$0xff] %v3298_v18  ;;  %v3951_v18 = vld [vmem:[#allocation8_spill] sm:$0xff] }
 0x575   :  { %v3242_v31 = vpop.permute.xlu0 %679  ;;  %v3301_v22 = vmul.f32 0.036632847, %v2768_v48  ;;  %v3321_v48 = vmul.f32 0.036632847, %v2990_v34  ;;  %v872_v17 = vmul.f32 0.036632847, %v3951_v18 }
 0x576   :  { %v3244_v1 = vpop.permute.xlu1 %1733  ;;  %v758_v9 = vadd.f32 %v3272_v16, %v754_v49 }
 0x577   :  { %1675 = vrot.lane.b32.xlu0 %v3144_v63, %s2180_s19  ;;  %3941 = vst [vmem:[#allocation75_spill] sm:$0xff] %v3301_v22 }
 0x578   :  { %1633 = vrot.lane.b32.xlu1 %v3080_v33, %s2179_s18  ;;  %v762_v19 = vadd.f32 %v760_v60, %v758_v9  ;;  %v3332_v9 = vmul.f32 0.036632847, %v3050_v42 }
 0x579   :  { %v3259_v10 = vpop.permute.xlu0 %683 }
 0x57a   :  { %v3261_v51 = vpop.permute.xlu1 %1701  ;;  %v3318_v38 = vadd.f32 %v764_v14, %v762_v19  ;;  %v1028_v19 = vmul.f32 0.036632847, %v2850_v7 }
 0x57b   :  { %1699 = vrot.lane.b32.xlu0 %v3160_v6, %s2180_s19 }
 0x57c   :  { %1617 = vrot.lane.b32.xlu1 %v3090_v56, %s2192_s25 }
 0x57d   :  { %v688_v35 = vpop.permute.xlu0 %687 }
 0x57e   :  { %v3275_v59 = vpop.permute.xlu1 %1729  ;;  %v3280_v55 = vmul.f32 0.11128076, %v688_v35  ;;  %v778_v35 = vadd.f32 %v776_v30, %v3272_v16  ;;  %v3306_v30 = vmul.f32 0.036632847, %v2730_v44  ;;  %v984_v44 = vadd.f32 %v982_v12, %v3204_v37 }
 0x57f   :  { %3937 = vst [vmem:[#allocation71_spill] sm:$0xff] %v3275_v59  ;;  %1727 = vrot.lane.b32.xlu0 %v3179_v26, %s2193_s26  ;;  %v924_v12 = vmul.f32 0.036632847, %v2806_v58  ;;  %v3946_v58 = vld [vmem:[#allocation15_spill] sm:$0xff] }
 0x580   :  { %1637 = vrot.lane.b32.xlu1 %v3080_v33, %s2191_s24  ;;  %v782_v49 = vadd.f32 %v3280_v55, %v778_v35  ;;  %v3335_v35 = vmul.f32 0.036632847, %v2904_v20  ;;  %v986_v34 = vadd.f32 %v984_v44, %v3233_v2  ;;  %v822_v20 = vmul.f32 0.11128076, %v2836_v43  ;;  %v3948_v44 = vld [vmem:[#allocation11_spill] sm:$0xff] }
 0x581   :  { %v692_v21 = vpop.permute.xlu0 %691 }
 0x582   :  { %v3292_v11 = vpop.permute.xlu1 %1673  ;;  %v784_v15 = vmul.f32 0.036632847, %v692_v21  ;;  %v3341_v21 = vmul.f32 0.036632847, %v3080_v33 }
 0x583   :  { %3938 = vst [vmem:[#allocation72_spill] sm:$0xff] %v3292_v11  ;;  %v3309_v11 = vmul.f32 0.036632847, %v2854_v8  ;;  %1723 = vrot.lane.b32.xlu0 %v3179_v26, %s2180_s19  ;;  %v3327_v8 = vmul.f32 0.036632847, %v3040_v41 }
 0x584   :  { %1641 = vrot.lane.b32.xlu1 %v3080_v33, %s2192_s25  ;;  %v3323_v60 = vadd.f32 %v784_v15, %v782_v49  ;;  %3944 = vst [vmem:[#allocation78_spill] sm:$0xff] %v3341_v21  ;;  %v926_v41 = vmul.f32 0.11128076, %v2780_v0  ;;  %v3945_v0 = vld [vmem:[#allocation13_spill] sm:$0xff]  ;;  %v743_v49 = vmul.f32 0.11128076, %v3946_v58 }
 0x585   :  { %3942 = vst [vmem:[#allocation76_spill] sm:$0xff] %v3327_v8  ;;  %v696_v32 = vpop.permute.xlu0 %695  ;;  %v848_v33 = vmul.f32 0.11128076, %v3945_v0  ;;  %v3947_v15 = vld [vmem:[#allocation7_spill] sm:$0xff]  ;;  %v3952_v21 = vld [vmem:[#allocation9_spill] sm:$0xff]  ;;  %v796_v0 = vadd.f32 %v794_v3, %v3247_v39 }
 0x586   :  { %v3329_v52 = vpop.permute.xlu1 %1697  ;;  %vm788_vm7 = vcmp.gt.f32.partialorder %v3323_v60, %v3318_v38  ;;  %v988_v14 = vmul.f32 0.11128076, %v696_v32  ;;  %v950_v32 = vmul.f32 0.036632847, %v3948_v44  ;;  %v898_v43 = vmul.f32 0.036632847, %v3952_v21 }
 0x587   :  { %3943 = vst [vmem:[#allocation77_spill] sm:$0xff] %v3329_v52  ;;  %1671 = vrot.lane.b32.xlu0 %v3144_v63, %s2178_s17  ;;  %v3355_v42 = vsel %vm788_vm7, %v3323_v60, %v3318_v38  ;;  %v846_v63 = vmul.f32 0.036632847, %v3947_v15  ;;  %v3373_v58 = vmul.f32 0.21674532, %v3953_v50  ;;  %v745_v18 = vadd.f32 %v743_v49, %v741_v29 }
 0x588   :  { %1717 = vrot.lane.b32.xlu1 %v2948_v45, %s2178_s17  ;;  %v3360_v7 = vadd.f32 %v988_v14, %v986_v34  ;;  %v3949_v45 = vld [vmem:[#allocation14_spill] sm:$0xff]  ;;  %v928_v34 = vadd.f32 %v926_v41, %v924_v12  ;;  %v876_v44 = vmul.f32 0.21674532, %v3955_v54  ;;  %v3381_v21 = vmul.f32 0.27068216, %v3956_v47 }
 0x589   :  { %v900_v52 = vmul.f32 0.11128076, %v3949_v45  ;;  %v3365_v59 = vpop.permute.xlu0 %699  ;;  %v3954_v14 = vld [vmem:[#allocation10_spill] sm:$0xff]  ;;  %v1030_v45 = vadd.f32 %v1028_v19, %v3196_v27  ;;  %v850_v5 = vadd.f32 %v848_v33, %v846_v63  ;;  %v952_v39 = vadd.f32 %v950_v32, %v926_v41  ;;  %v3962_v32 = vld [vmem:[#allocation25_spill] sm:$0xff] }
 0x58a   :  { %v3367_v22 = vpop.permute.xlu1 %1725  ;;  %v798_v15 = vmul.f32 0.21674532, %v3954_v14  ;;  %v874_v3 = vadd.f32 %v872_v17, %v848_v33  ;;  %v749_v27 = vadd.f32 %v3373_v58, %v745_v18  ;;  %v3958_v54 = vld [vmem:[#allocation18_spill] sm:$0xff]  ;;  %v3396_v47 = vmul.f32 0.036632847, %v3092_v36  ;;  %v3961_v33 = vld [vmem:[#allocation19_spill] sm:$0xff] }
 0x58b   :  { %3950 = vst [vmem:[#allocation13_spill] sm:$0xff] %v3367_v22  ;;  %1695 = vrot.lane.b32.xlu0 %v3160_v6, %s2178_s17  ;;  %v824_v22 = vadd.f32 %v822_v20, %v820_v57  ;;  %v902_v50 = vadd.f32 %v900_v52, %v898_v43  ;;  %v1032_v12 = vadd.f32 %v1030_v45, %v3257_v13  ;;  %v3390_v19 = vmul.f32 0.21674532, %v3958_v54  ;;  %v3964_v45 = vld [vmem:[#allocation20_spill] sm:$0xff]  ;;  %v3967_v54 = vld [vmem:[#allocation21_spill] sm:$0xff] }
 0x58c   :  { %v3393_v6 = vmul.f32 0.036632847, %v3090_v56  ;;  %3960 = vst [vmem:[#allocation11_spill] sm:$0xff] %v3396_v47  ;;  %v800_v57 = vadd.f32 %v798_v15, %v796_v0  ;;  %v930_v29 = vadd.f32 %v928_v34, %v876_v44  ;;  %v956_v17 = vadd.f32 %v3183_v53, %v952_v39  ;;  %v3989_v47 = vld [vmem:[#allocation36_spill] sm:$0xff] }
 0x58d   :  { %v3384_v8 = vpop.permute.xlu0 %703  ;;  %v1034_v13 = vadd.f32 %v1032_v12, %v3204_v37  ;;  %v826_v52 = vadd.f32 %v824_v22, %v798_v15  ;;  %v852_v41 = vadd.f32 %v850_v5, %v798_v15  ;;  %v753_v20 = vadd.f32 %v3381_v21, %v749_v27  ;;  %v3965_v15 = vld [vmem:[#allocation27_spill] sm:$0xff] }
 0x58e   :  { %v3386_v14 = vpop.permute.xlu1 %1721  ;;  %3959 = vst [vmem:[#allocation7_spill] sm:$0xff] %v3393_v6  ;;  %v759_v49 = vmul.f32 0.11128076, %v3961_v33  ;;  %v878_v56 = vadd.f32 %v876_v44, %v874_v3  ;;  %v904_v63 = vadd.f32 %v902_v50, %v876_v44  ;;  %v1743_v43 = vmul.f32 0.11128076, %v3962_v32 }
 0x58f   :  { %3957 = vst [vmem:[#allocation15_spill] sm:$0xff] %v3386_v14  ;;  %1719 = vrot.lane.b32.xlu0 %v3179_v26, %s2178_s17  ;;  %v1036_v36 = vadd.f32 %v1034_v13, %v3272_v16  ;;  %v757_v34 = vadd.f32 %v3390_v19, %v753_v20  ;;  %v763_v26 = vmul.f32 0.036632847, %v3964_v45  ;;  %v802_v5 = vadd.f32 %v800_v57, %v3204_v37  ;;  %v3979_v45 = vld [vmem:[#allocation28_spill] sm:$0xff] }
 0x590   :  { %v3414_v22 = vadd.f32 %v930_v29, %v3204_v37  ;;  %v3417_v18 = vmul.f32 0.21674532, %v3965_v15  ;;  %v3420_v16 = vadd.f32 %v956_v17, %v3204_v37  ;;  %v3423_v44 = vadd.f32 %v904_v63, %v3204_v37  ;;  %v3969_v17 = vld [vmem:[#allocation29_spill] sm:$0xff]  ;;  %v3975_v63 = vld [vmem:[#allocation24_spill] sm:$0xff]  ;;  %v3980_v15 = vld [vmem:[#allocation30_spill] sm:$0xff] }
 0x591   :  { %v3406_v0 = vpop.permute.xlu0 %707  ;;  %v3426_v39 = vadd.f32 %v852_v41, %v3204_v37  ;;  %v761_v3 = vadd.f32 %v759_v49, %v757_v34  ;;  %v3429_v50 = vmul.f32 0.21674532, %v3259_v10  ;;  %v3432_v12 = vadd.f32 %v878_v56, %v3204_v37  ;;  %v3972_v49 = vld [vmem:[#allocation22_spill] sm:$0xff] }
 0x592   :  { %v3408_v53 = vpop.permute.xlu1 %1669  ;;  %3966 = vst [vmem:[#allocation8_spill] sm:$0xff] %v3417_v18  ;;  %v3435_v27 = vadd.f32 %v826_v52, %v3204_v37  ;;  %v3438_v57 = vmul.f32 0.11128076, %v3967_v54  ;;  %v1745_v29 = vadd.f32 %v1743_v43, %v3306_v30  ;;  %v3442_v13 = vmul.f32 0.27068216, %v3969_v17  ;;  %v3974_v37 = vld [vmem:[#allocation23_spill] sm:$0xff] }
 0x593   :  { %3963 = vst [vmem:[#allocation14_spill] sm:$0xff] %v3408_v53  ;;  %v1040_v41 = vadd.f32 %v3312_v46, %v1036_v36  ;;  %v3449_v33 = vadd.f32 %v763_v26, %v761_v3  ;;  %v3452_v56 = vmul.f32 0.21674532, %v3972_v49  ;;  %v3455_v52 = vmul.f32 0.21674532, %v3974_v37  ;;  %v3976_v30 = vld [vmem:[#allocation26_spill] sm:$0xff] }
 0x594   :  { %3968 = vst [vmem:[#allocation9_spill] sm:$0xff] %v3438_v57  ;;  %3970 = vst [vmem:[#allocation16_spill] sm:$0xff] %v3442_v13  ;;  %v3458_v32 = vmul.f32 0.21674532, %v3975_v63  ;;  %v3461_v43 = vmul.f32 0.11128076, %v3976_v30  ;;  %v1749_v46 = vadd.f32 %v3417_v18, %v1745_v29  ;;  %v806_v49 = vadd.f32 %v3429_v50, %v802_v5 }
 0x595   :  { %v3445_v20 = vpop.permute.xlu0 %711  ;;  %3973 = vst [vmem:[#allocation12_spill] sm:$0xff] %v3452_v56  ;;  %v3977_v36 = vld [vmem:[#allocation31_spill] sm:$0xff]  ;;  %v3468_v26 = vmul.f32 0.036632847, %v3979_v45  ;;  %v3471_v3 = vmul.f32 0.11128076, %v3980_v15 }
 0x596   :  { %v3447_v10 = vpop.permute.xlu1 %1693  ;;  %v3465_v34 = vmul.f32 0.21674532, %v3977_v36  ;;  %v3982_v54 = vld [vmem:[#allocation32_spill] sm:$0xff]  ;;  %v1753_v37 = vadd.f32 %v3442_v13, %v1749_v46  ;;  %v3984_v63 = vld [vmem:[#allocation33_spill] sm:$0xff]  ;;  %v3985_v53 = vld [vmem:[#allocation34_spill] sm:$0xff]  ;;  %v808_v5 = vadd.f32 %v806_v49, %v3280_v55 }
 0x597   :  { %3971 = vst [vmem:[#allocation10_spill] sm:$0xff] %v3447_v10  ;;  %3981 = vst [vmem:[#allocation18_spill] sm:$0xff] %v3471_v3  ;;  %v3474_v17 = vmul.f32 0.11128076, %v3982_v54  ;;  %v1759_v30 = vmul.f32 0.11128076, %v3984_v63 }
 0x598   :  { %3978 = vst [vmem:[#allocation17_spill] sm:$0xff] %v3465_v34  ;;  %v3480_v29 = vmul.f32 0.11128076, %v3985_v53  ;;  %v3987_v36 = vld [vmem:[#allocation35_spill] sm:$0xff]  ;;  %v3486_v15 = vmul.f32 0.11128076, %v3989_v47  ;;  %v1757_v46 = vadd.f32 %v3465_v34, %v1753_v37 }
 0x599   :  { %3983 = vst [vmem:[#allocation19_spill] sm:$0xff] %v3474_v17  ;;  %v3483_v10 = vmul.f32 0.21674532, %v3987_v36  ;;  %v716_v45 = vpop.permute.xlu0 %715  ;;  %v3990_v3 = vld [vmem:[#allocation37_spill] sm:$0xff]  ;;  %v3992_v63 = vld [vmem:[#allocation38_spill] sm:$0xff]  ;;  %v3993_v53 = vld [vmem:[#allocation39_spill] sm:$0xff] }
 0x59a   :  { %3986 = vst [vmem:[#allocation25_spill] sm:$0xff] %v3480_v29  ;;  %v614_v14 = vpop.permute.xlu1 %613  ;;  %v3489_v54 = vmul.f32 0.11128076, %v3990_v3  ;;  %v810_v6 = vmul.f32 0.036632847, %v716_v45  ;;  %v3994_v36 = vld [vmem:[#allocation40_spill] sm:$0xff]  ;;  %v1761_v49 = vadd.f32 %v1759_v30, %v1757_v46 }
 0x59b   :  { %3988 = vst [vmem:[#allocation20_spill] sm:$0xff] %v3483_v10  ;;  %v3494_v13 = vmul.f32 0.11128076, %v3992_v63  ;;  %v1763_v57 = vmul.f32 0.036632847, %v3993_v53  ;;  %v3995_v18 = vld [vmem:[#allocation41_spill] sm:$0xff] }
 0x59c   :  { %3991 = vst [vmem:[#allocation27_spill] sm:$0xff] %v3489_v54  ;;  %v3498_v10 = vmul.f32 0.036632847, %v3994_v36  ;;  %v3501_v56 = vmul.f32 0.036632847, %v3995_v18  ;;  %v3997_v47 = vld [vmem:[#allocation42_spill] sm:$0xff]  ;;  %v812_v55 = vadd.f32 %v810_v6, %v808_v5 }
 0x59d   :  { %v3504_v17 = vmul.f32 0.036632847, %v3997_v47  ;;  %v3999_v3 = vld [vmem:[#allocation43_spill] sm:$0xff]  ;;  %v4001_v37 = vld [vmem:[#allocation44_spill] sm:$0xff]  ;;  %v4002_v63 = vld [vmem:[#allocation45_spill] sm:$0xff]  ;;  %v720_v36 = vpop.permute.xlu0 %719 }
 0x59e   :  { %3996 = vst [vmem:[#allocation21_spill] sm:$0xff] %v3501_v56  ;;  %v3507_v54 = vmul.f32 0.11128076, %v3999_v3  ;;  %v3510_v45 = vmul.f32 0.036632847, %v4001_v37  ;;  %v3516_v29 = vpop.permute.xlu1 %617  ;;  %v4004_v18 = vld [vmem:[#allocation46_spill] sm:$0xff]  ;;  %vm814_vm8 = vcmp.gt.f32.partialorder %v812_v55, %v3355_v42 }
 0x59f   :  { %3998 = vst [vmem:[#allocation29_spill] sm:$0xff] %v3504_v17  ;;  %v3513_v34 = vmul.f32 0.036632847, %v4002_v63  ;;  %v821_v53 = vmul.f32 0.11128076, %v3152_v40  ;;  %v4005_v47 = vld [vmem:[#allocation47_spill] sm:$0xff]  ;;  %v3534_v37 = vsel %vm814_vm8, %v812_v55, %v3355_v42  ;;  %v3536_v63 = vadd.f32 %v1763_v57, %v1761_v49 }
 0x5a0   :  { %4000 = vst [vmem:[#allocation22_spill] sm:$0xff] %v3507_v54  ;;  %v3519_v56 = vmul.f32 0.036632847, %v4004_v18  ;;  %v3522_v17 = vmul.f32 0.036632847, %v4005_v47  ;;  %v3871_v3 = vmov 0.0   ;;  %v3554_v49 = vadd.f32 %v1040_v41, %v3223_v24 }
 0x5a1   :  { %4003 = vst [vmem:[#allocation23_spill] sm:$0xff] %v3513_v34  ;;  %v792_v6 = vsel %vm788_vm7, 1.0, %v3871_v3  ;;  %v4006_v30 = vld [vmem:[#allocation53_spill] sm:$0xff]  ;;  %v882_v40 = vmul.f32 0.21674532, %v3242_v31  ;;  %v4008_v34 = vld [vmem:[#allocation51_spill] sm:$0xff]  ;;  %v823_v60 = vadd.f32 %v821_v53, %v3309_v11  ;;  %v724_v57 = vpop.permute.xlu0 %723 }
 0x5a2   :  { %v845_v5 = vmul.f32 0.036632847, %v4006_v30  ;;  %v3531_v46 = vsel %vm814_vm8, 2.0, %v792_v6  ;;  %v4007_v18 = vld [vmem:[#allocation49_spill] sm:$0xff]  ;;  %v3542_v54 = vmul.f32 0.036632847, %v4008_v34  ;;  %v622_v55 = vpop.permute.xlu1 %621 }
 0x5a3   :  { %v3539_v47 = vmul.f32 0.036632847, %v4007_v18  ;;  %v975_v38 = vmul.f32 0.036632847, %v3142_v62  ;;  %v3548_v31 = vmul.f32 0.21674532, %v3199_v23  ;;  %v962_v62 = vadd.f32 %v3233_v2, %v3420_v16 }
 0x5a4   :  { %v849_v30 = vadd.f32 %v3158_v25, %v845_v5  ;;  %v3551_v42 = vmul.f32 0.11128076, %v3220_v4  ;;  %v3557_v34 = vmul.f32 0.036632847, %v3230_v28  ;;  %v769_v11 = vmul.f32 0.11128076, %v622_v55 }
 0x5a5   :  { %v3563_v25 = vadd.f32 %v3321_v48, %v3240_v61  ;;  %v3566_v23 = vmul.f32 0.036632847, %v3244_v1  ;;  %v934_v4 = vadd.f32 %v3414_v22, %v882_v40  ;;  %v936_v53 = vmul.f32 0.11128076, %v3365_v59  ;;  %v728_v22 = vpop.permute.xlu0 %727 }
 0x5a6   :  { %v908_v24 = vadd.f32 %v3423_v44, %v882_v40  ;;  %v910_v28 = vmul.f32 0.11128076, %v3384_v8  ;;  %v884_v41 = vadd.f32 %v882_v40, %v3432_v12  ;;  %v771_v2 = vadd.f32 %v769_v11, %v3332_v9  ;;  %v626_v59 = vpop.permute.xlu1 %625  ;;  %v4010_v9 = vld [vmem:[#allocation76_spill] sm:$0xff] }
 0x5a7   :  { %4009 = vst [vmem:[#allocation24_spill] sm:$0xff] %v3566_v23  ;;  %v3575_v16 = vmul.f32 0.11128076, %v3261_v51  ;;  %v856_v61 = vadd.f32 %v3426_v39, %v3429_v50  ;;  %v858_v1 = vmul.f32 0.11128076, %v3406_v0  ;;  %v795_v8 = vadd.f32 %v3335_v35, %v769_v11 }
 0x5a8   :  { %v832_v48 = vmul.f32 0.11128076, %v3445_v20  ;;  %v977_v6 = vmul.f32 0.11128076, %v614_v14  ;;  %v773_v44 = vadd.f32 %v771_v2, %v3373_v58  ;;  %v797_v12 = vmul.f32 0.21674532, %v626_v59 }
 0x5a9   :  { %v3585_v5 = vadd.f32 %v4010_v9, %v3360_v7  ;;  %v938_v51 = vadd.f32 %v936_v53, %v934_v4  ;;  %v964_v40 = vadd.f32 %v962_v62, %v936_v53  ;;  %v830_v39 = vadd.f32 %v3435_v27, %v3429_v50  ;;  %v732_v35 = vpop.permute.xlu0 %731 }
 0x5aa   :  { %v912_v0 = vadd.f32 %v910_v28, %v908_v24  ;;  %v775_v20 = vadd.f32 %v773_v44, %v3381_v21  ;;  %v799_v18 = vadd.f32 %v797_v12, %v795_v8  ;;  %v825_v55 = vadd.f32 %v823_v60, %v797_v12  ;;  %v630_v11 = vpop.permute.xlu1 %629  ;;  %v4013_v44 = vld [vmem:[#allocation67_spill] sm:$0xff] }
 0x5ab   :  { %v860_v14 = vadd.f32 %v858_v1, %v856_v61  ;;  %v886_v3 = vadd.f32 %v884_v41, %v858_v1  ;;  %v834_v2 = vadd.f32 %v832_v48, %v830_v39  ;;  %v851_v23 = vadd.f32 %v849_v30, %v797_v12  ;;  %v4011_v61 = vld [vmem:[#allocation63_spill] sm:$0xff]  ;;  %v4012_v48 = vld [vmem:[#allocation66_spill] sm:$0xff] }
 0x5ac   :  { %v979_v59 = vadd.f32 %v977_v6, %v975_v38  ;;  %v777_v7 = vadd.f32 %v775_v20, %v3390_v19  ;;  %v801_v4 = vadd.f32 %v799_v18, %v3381_v21  ;;  %v827_v62 = vadd.f32 %v825_v55, %v3381_v21 }
 0x5ad   :  { %v966_v53 = vmul.f32 0.036632847, %v720_v36  ;;  %v940_v50 = vmul.f32 0.036632847, %v724_v57  ;;  %v853_v27 = vadd.f32 %v851_v23, %v3381_v21  ;;  %v875_v24 = vmul.f32 0.21674532, %v630_v11  ;;  %v736_v36 = vpop.permute.xlu0 %735 }
 0x5ae   :  { %v781_v60 = vadd.f32 %v3461_v43, %v777_v7  ;;  %v914_v28 = vmul.f32 0.036632847, %v728_v22  ;;  %v805_v41 = vadd.f32 %v3458_v32, %v801_v4  ;;  %v829_v30 = vadd.f32 %v827_v62, %v3458_v32  ;;  %v634_v57 = vpop.permute.xlu1 %633 }
 0x5af   :  { %v855_v38 = vadd.f32 %v853_v27, %v3458_v32  ;;  %v877_v1 = vadd.f32 %v875_v24, %v4011_v61  ;;  %v903_v6 = vadd.f32 %v4012_v48, %v875_v24  ;;  %v929_v8 = vadd.f32 %v4013_v44, %v875_v24 }
 0x5b0   :  { %v1001_v23 = vmul.f32 0.036632847, %v3516_v29  ;;  %v785_v12 = vadd.f32 %v3468_v26, %v781_v60  ;;  %v807_v22 = vadd.f32 %v805_v41, %v3461_v43  ;;  %v833_v9 = vadd.f32 %v3494_v13, %v829_v30 }
 0x5b1   :  { %v3605_v39 = vadd.f32 %v966_v53, %v964_v40  ;;  %v3607_v20 = vadd.f32 %v940_v50, %v938_v51  ;;  %v879_v32 = vadd.f32 %v877_v1, %v3381_v21  ;;  %v905_v18 = vadd.f32 %v903_v6, %v3381_v21  ;;  %v740_v51 = vpop.permute.xlu0 %739  ;;  %v4016_v6 = vld [vmem:[#allocation25_spill] sm:$0xff] }
 0x5b2   :  { %vm787_vm9 = vcmp.gt.f32.partialorder %v785_v12, %v3449_v33  ;;  %v811_v55 = vadd.f32 %v3498_v10, %v807_v22  ;;  %v859_v29 = vadd.f32 %v3486_v15, %v855_v38  ;;  %v888_v11 = vmul.f32 0.036632847, %v732_v35  ;;  %v638_v7 = vpop.permute.xlu1 %637 }
 0x5b3   :  { %v3614_v26 = vadd.f32 %v914_v28, %v912_v0  ;;  %v789_v43 = vsel %vm787_vm9, %v785_v12, %v3449_v33  ;;  %v931_v13 = vadd.f32 %v929_v8, %v3381_v21  ;;  %v862_v40 = vmul.f32 0.036632847, %v736_v36  ;;  %v4017_v12 = vld [vmem:[#allocation19_spill] sm:$0xff] }
 0x5b4   :  { %vm813_vm10 = vcmp.gt.f32.partialorder %v811_v55, %v789_v43  ;;  %v3619_v4 = vadd.f32 %v3542_v54, %v833_v9  ;;  %v883_v62 = vadd.f32 %v3455_v52, %v879_v32  ;;  %v953_v53 = vmul.f32 0.21674532, %v634_v57  ;;  %v4015_v54 = vld [vmem:[#allocation68_spill] sm:$0xff] }
 0x5b5   :  { %v4014_v10 = vmov 0.0   ;;  %v3624_v35 = vsel %vm813_vm10, %v811_v55, %v789_v43  ;;  %v907_v0 = vadd.f32 %v905_v18, %v3455_v52  ;;  %v836_v33 = vmul.f32 0.036632847, %v740_v51  ;;  %v1622_v61 = vpop.permute.xlu0 %1621 }
 0x5b6   :  { %v791_v50 = vsel %vm787_vm9, 1.0, %v4014_v10  ;;  %vm839_vm11 = vcmp.gt.f32.partialorder %v3619_v4, %v3624_v35  ;;  %v3630_v27 = vadd.f32 %v3539_v47, %v859_v29  ;;  %v890_v24 = vadd.f32 %v888_v11, %v886_v3  ;;  %v642_v1 = vpop.permute.xlu1 %641 }
 0x5b7   :  { %v955_v60 = vadd.f32 %v953_v53, %v4015_v54  ;;  %v3638_v28 = vsel %vm839_vm11, %v3619_v4, %v3624_v35  ;;  %v933_v41 = vadd.f32 %v931_v13, %v3455_v52  ;;  %v864_v30 = vadd.f32 %v862_v40, %v860_v14  ;;  %v4019_v13 = vld [vmem:[#allocation12_spill] sm:$0xff]  ;;  %v4029_v35 = vld [vmem:[#allocation73_spill] sm:$0xff] }
 0x5b8   :  { %v838_v38 = vadd.f32 %v836_v33, %v834_v2  ;;  %v817_v48 = vsel %vm813_vm10, 2.0, %v791_v50  ;;  %vm865_vm12 = vcmp.gt.f32.partialorder %v3630_v27, %v3638_v28  ;;  %v885_v3 = vadd.f32 %v883_v62, %v3486_v15  ;;  %v4020_v62 = vld [vmem:[#allocation8_spill] sm:$0xff]  ;;  %v4021_v50 = vld [vmem:[#allocation9_spill] sm:$0xff] }
 0x5b9   :  { %v981_v47 = vadd.f32 %v979_v59, %v953_v53  ;;  %v911_v44 = vadd.f32 %v4016_v6, %v907_v0  ;;  %v1003_v8 = vadd.f32 %v1001_v23, %v953_v53  ;;  %v1005_v36 = vmul.f32 0.11128076, %v638_v7  ;;  %v1598_v15 = vpop.permute.xlu0 %1597  ;;  %v4018_v23 = vld [vmem:[#allocation78_spill] sm:$0xff] }
 0x5ba   :  { %vm840_vm13 = vcmp.gt.f32.partialorder %v838_v38, %v3534_v37  ;;  %v957_v52 = vadd.f32 %v955_v60, %v3381_v21  ;;  %v1769_v57 = vmul.f32 0.11128076, %v1622_v61  ;;  %v937_v22 = vadd.f32 %v4017_v12, %v933_v41  ;;  %v1574_v59 = vpop.permute.xlu1 %1573 }
 0x5bb   :  { %v842_v14 = vsel %vm840_vm13, %v838_v38, %v3534_v37  ;;  %v844_v2 = vsel %vm840_vm13, 3.0, %v3531_v46  ;;  %v1007_v9 = vadd.f32 %v1005_v36, %v1003_v8  ;;  %v1027_v32 = vmul.f32 0.036632847, %v642_v1  ;;  %v4022_v38 = vld [vmem:[#allocation16_spill] sm:$0xff] }
 0x5bc   :  { %vm866_vm14 = vcmp.gt.f32.partialorder %v864_v30, %v842_v14  ;;  %v983_v18 = vadd.f32 %v981_v47, %v3381_v21  ;;  %v1771_v11 = vadd.f32 %v1769_v57, %v4018_v23  ;;  %v3654_v43 = vadd.f32 %v3522_v17, %v885_v3  ;;  %v4024_v47 = vld [vmem:[#allocation11_spill] sm:$0xff] }
 0x5bd   :  { %v868_v55 = vsel %vm866_vm14, %v864_v30, %v842_v14  ;;  %v870_v29 = vsel %vm866_vm14, 4.0, %v844_v2  ;;  %v3657_v37 = vadd.f32 %v3519_v56, %v911_v44  ;;  %v1009_v46 = vadd.f32 %v1007_v9, %v3381_v21  ;;  %v1626_v17 = vpop.permute.xlu0 %1625 }
 0x5be   :  { %vm892_vm15 = vcmp.gt.f32.partialorder %v890_v24, %v868_v55  ;;  %v961_v40 = vadd.f32 %v4019_v13, %v957_v52  ;;  %v1773_v53 = vadd.f32 %v1771_v11, %v4020_v62  ;;  %v1029_v33 = vadd.f32 %v1027_v32, %v1005_v36  ;;  %v1578_v60 = vpop.permute.xlu1 %1577  ;;  %v4025_v36 = vld [vmem:[#allocation17_spill] sm:$0xff] }
 0x5bf   :  { %v894_v51 = vsel %vm892_vm15, %v890_v24, %v868_v55  ;;  %v896_v7 = vsel %vm892_vm15, 5.0, %v870_v29  ;;  %v1013_v0 = vadd.f32 %v4021_v50, %v1009_v46  ;;  %v1821_v54 = vmul.f32 0.11128076, %v1598_v15  ;;  %v4023_v24 = vld [vmem:[#allocation7_spill] sm:$0xff] }
 0x5c0   :  { %vm918_vm0 = vcmp.gt.f32.partialorder %v3614_v26, %v894_v51  ;;  %v985_v56 = vadd.f32 %v983_v18, %v4019_v13  ;;  %v1775_v61 = vadd.f32 %v1773_v53, %v4022_v38  ;;  %v1795_v1 = vadd.f32 %v4023_v24, %v1769_v57  ;;  %v4026_v15 = vld [vmem:[#allocation27_spill] sm:$0xff] }
 0x5c1   :  { %v920_v41 = vsel %vm918_vm0, %v3614_v26, %v894_v51  ;;  %v922_v30 = vsel %vm918_vm0, 6.0, %v896_v7  ;;  %v1031_v3 = vadd.f32 %v1029_v33, %v3373_v58  ;;  %v1823_v6 = vadd.f32 %v1821_v54, %v4024_v47  ;;  %v1602_v32 = vpop.permute.xlu0 %1601  ;;  %v4027_v51 = vld [vmem:[#allocation29_spill] sm:$0xff] }
 0x5c2   :  { %vm944_vm1 = vcmp.gt.f32.partialorder %v3607_v20, %v920_v41  ;;  %v1777_v52 = vadd.f32 %v1775_v61, %v4025_v36  ;;  %v1797_v14 = vmul.f32 0.21674532, %v1626_v17  ;;  %v963_v2 = vadd.f32 %v961_v40, %v4017_v12  ;;  %v1582_v57 = vpop.permute.xlu1 %1581 }
 0x5c3   :  { %v946_v44 = vsel %vm944_vm1, %v3607_v20, %v920_v41  ;;  %v948_v8 = vsel %vm944_vm1, 7.0, %v922_v30  ;;  %v1015_v26 = vadd.f32 %v1013_v0, %v4019_v13  ;;  %v1033_v9 = vadd.f32 %v1031_v3, %v3381_v21  ;;  %v4031_v41 = vld [vmem:[#allocation74_spill] sm:$0xff] }
 0x5c4   :  { %vm970_vm2 = vcmp.gt.f32.partialorder %v3605_v39, %v946_v44  ;;  %v1781_v18 = vadd.f32 %v4026_v15, %v1777_v52  ;;  %v1799_v20 = vadd.f32 %v1797_v14, %v1795_v1  ;;  %v1825_v55 = vadd.f32 %v1823_v6, %v1797_v14 }
 0x5c5   :  { %v974_v58 = vsel %vm970_vm2, 8.0, %v948_v8  ;;  %v1035_v29 = vadd.f32 %v1033_v9, %v3390_v19  ;;  %v1845_v23 = vmul.f32 0.036632847, %v1574_v59  ;;  %v1847_v11 = vmul.f32 0.11128076, %v1602_v32  ;;  %v4028_v59 = vld [vmem:[#allocation18_spill] sm:$0xff]  ;;  %v1606_v0 = vpop.permute.xlu0 %1605 }
 0x5c6   :  { %v843_v12 = vsel %vm839_vm11, 3.0, %v817_v48  ;;  %v941_v46 = vadd.f32 %v3510_v45, %v937_v22  ;;  %v1801_v21 = vadd.f32 %v1799_v20, %v4022_v38  ;;  %v1827_v13 = vadd.f32 %v1825_v55, %v4022_v38  ;;  %v1586_v4 = vpop.permute.xlu1 %1585  ;;  %v4030_v22 = vld [vmem:[#allocation21_spill] sm:$0xff]  ;;  %v4033_v9 = vld [vmem:[#allocation75_spill] sm:$0xff] }
 0x5c7   :  { %v867_v40 = vsel %vm865_vm12, %v3630_v27, %v3638_v28  ;;  %v967_v19 = vadd.f32 %v4027_v51, %v963_v2  ;;  %v989_v7 = vadd.f32 %v4028_v59, %v985_v56  ;;  %v1849_v53 = vadd.f32 %v1847_v11, %v1845_v23  ;;  %v4032_v56 = vld [vmem:[#allocation20_spill] sm:$0xff] }
 0x5c8   :  { %v869_v45 = vsel %vm865_vm12, 4.0, %v843_v12  ;;  %v1019_v48 = vadd.f32 %v4029_v35, %v1015_v26  ;;  %v3699_v33 = vadd.f32 %v4030_v22, %v1781_v18  ;;  %v1871_v54 = vmul.f32 0.036632847, %v1578_v60 }
 0x5c9   :  { %v1897_v17 = vmul.f32 0.036632847, %v1582_v57  ;;  %v1039_v30 = vadd.f32 %v4031_v41, %v1035_v29  ;;  %v1851_v61 = vadd.f32 %v1849_v53, %v1797_v14  ;;  %v1899_v24 = vmul.f32 0.11128076, %v1606_v0  ;;  %v1630_v60 = vpop.permute.xlu0 %1629 }
 0x5ca   :  { %vm891_vm3 = vcmp.gt.f32.partialorder %v3654_v43, %v867_v40  ;;  %v1805_v1 = vadd.f32 %v4032_v56, %v1801_v21  ;;  %v1829_v3 = vadd.f32 %v1827_v13, %v4032_v56  ;;  %v1873_v47 = vadd.f32 %v1871_v54, %v1847_v11  ;;  %v3708_v8 = vpop.permute.xlu1 %1589 }
 0x5cb   :  { %v893_v27 = vsel %vm891_vm3, %v3654_v43, %v867_v40  ;;  %v1853_v28 = vadd.f32 %v1851_v61, %v4022_v38  ;;  %v895_v6 = vsel %vm891_vm3, 5.0, %v869_v45  ;;  %v972_v52 = vsel %vm970_vm2, %v3605_v39, %v946_v44 }
 0x5cc   :  { %vm917_vm4 = vcmp.gt.f32.partialorder %v3657_v37, %v893_v27  ;;  %v1923_v14 = vmul.f32 0.036632847, %v1586_v4  ;;  %v993_v32 = vadd.f32 %v4033_v9, %v989_v7  ;;  %v1901_v57 = vadd.f32 %v1899_v24, %v1897_v17  ;;  %v4034_v17 = vld [vmem:[#allocation71_spill] sm:$0xff] }
 0x5cd   :  { %v919_v2 = vsel %vm917_vm4, %v3657_v37, %v893_v27  ;;  %v921_v26 = vsel %vm917_vm4, 6.0, %v895_v6  ;;  %v3716_v43 = vadd.f32 %v1039_v30, %v4021_v50  ;;  %v1875_v18 = vmul.f32 0.21674532, %v1630_v60  ;;  %v1610_v23 = vpop.permute.xlu0 %1609  ;;  %v4035_v30 = vld [vmem:[#allocation22_spill] sm:$0xff] }
 0x5ce   :  { %vm943_vm5 = vcmp.gt.f32.partialorder %v941_v46, %v919_v2  ;;  %v1807_v20 = vadd.f32 %v1805_v1, %v4026_v15  ;;  %vm996_vm6 = vcmp.gt.f32.partialorder %v3585_v5, %v972_v52  ;;  %v1855_v39 = vadd.f32 %v1853_v28, %v4032_v56  ;;  %v1684_v11 = vpop.permute.xlu1 %1683 }
 0x5cf   :  { %v945_v55 = vsel %vm943_vm5, %v941_v46, %v919_v2  ;;  %v947_v29 = vsel %vm943_vm5, 7.0, %v921_v26  ;;  %v1877_v44 = vadd.f32 %v1875_v18, %v1873_v47  ;;  %v1903_v37 = vadd.f32 %v1901_v57, %v1875_v18  ;;  %v4040_v57 = vld [vmem:[#allocation59_spill] sm:$0xff] }
 0x5d0   :  { %vm969_vm7 = vcmp.gt.f32.partialorder %v967_v19, %v945_v55  ;;  %v998_v13 = vsel %vm996_vm6, %v3585_v5, %v972_v52  ;;  %v1000_v50 = vsel %vm996_vm6, 9.0, %v974_v58  ;;  %v3735_v35 = vmul.f32 0.11128076, %v1610_v23  ;;  %v4038_v52 = vld [vmem:[#allocation23_spill] sm:$0xff] }
 0x5d1   :  { %v971_v12 = vsel %vm969_vm7, %v967_v19, %v945_v55  ;;  %v973_v21 = vsel %vm969_vm7, 8.0, %v947_v29  ;;  %v1879_v40 = vadd.f32 %v1877_v44, %v4022_v38  ;;  %v1905_v15 = vadd.f32 %v1903_v37, %v4022_v38  ;;  %v1680_v5 = vpop.permute.xlu0 %1679 }
 0x5d2   :  { %vm995_vm8 = vcmp.gt.f32.partialorder %v993_v32, %v971_v12  ;;  %vm1022_vm9 = vcmp.gt.f32.partialorder %v3563_v25, %v998_v13  ;;  %v1688_v58 = vpop.permute.xlu1 %1687  ;;  %v1887_v41 = vmul.f32 0.036632847, %v4034_v17  ;;  %v1833_v61 = vadd.f32 %v4035_v30, %v1829_v3  ;;  %v4037_v3 = vld [vmem:[#allocation13_spill] sm:$0xff] }
 0x5d3   :  { %v997_v46 = vsel %vm995_vm8, %v993_v32, %v971_v12  ;;  %v999_v51 = vsel %vm995_vm8, 9.0, %v973_v21  ;;  %v3726_v59 = vsel %vm1022_vm9, %v3563_v25, %v998_v13  ;;  %v1026_v7 = vsel %vm1022_vm9, 10.0, %v1000_v50 }
 0x5d4   :  { %vm1021_vm10 = vcmp.gt.f32.partialorder %v1019_v48, %v997_v46  ;;  %v1883_v19 = vadd.f32 %v3548_v31, %v1879_v40  ;;  %v1907_v53 = vadd.f32 %v1905_v15, %v3548_v31  ;;  %vm1044_vm11 = vcmp.gt.f32.partialorder %v3554_v49, %v3726_v59  ;;  %v4043_v40 = vld [vmem:[#allocation57_spill] sm:$0xff] }
 0x5d5   :  { %v1023_v0 = vsel %vm1021_vm10, %v1019_v48, %v997_v46  ;;  %v1025_v4 = vsel %vm1021_vm10, 10.0, %v999_v51  ;;  %v1048_v45 = vsel %vm1044_vm11, 11.0, %v1026_v7  ;;  %v1927_v24 = vadd.f32 %v3735_v35, %v1923_v14  ;;  %v1708_v27 = vpop.permute.xlu0 %1707  ;;  %v4039_v14 = vld [vmem:[#allocation15_spill] sm:$0xff]  ;;  %v4044_v51 = vld [vmem:[#allocation64_spill] sm:$0xff] }
 0x5d6   :  { %vm1043_vm12 = vcmp.gt.f32.partialorder %v3716_v43, %v1023_v0  ;;  %v1885_v25 = vadd.f32 %v1883_v19, %v3551_v42  ;;  %v1911_v22 = vadd.f32 %v3575_v16, %v1907_v53  ;;  %v1050_v54 = vmul.f32 0.041666668, %v1048_v45  ;;  %v1692_v28 = vpop.permute.xlu1 %1691  ;;  %v4036_v16 = vld [vmem:[#allocation77_spill] sm:$0xff]  ;;  %v4045_v53 = vld [vmem:[#allocation24_spill] sm:$0xff] }
 0x5d7   :  { %v1047_v48 = vsel %vm1043_vm12, 11.0, %v1025_v4  ;;  %v1804_v1 = vmul.f32 0.21674532, %v1684_v11  ;;  %v1780_v47 = vmul.f32 0.11128076, %v1688_v58  ;;  %vm1787_vm13 = vcmp.gt.f32.partialorder %v3699_v33, %v3536_v63 }
 0x5d8   :  { %v1049_v56 = vmul.f32 0.041666668, %v1047_v48  ;;  %1053 = vrot.lane.b32.xlu0 %v1050_v54, %s2195_s27  ;;  %v3749_v6 = vmul.f32 0.11128076, %v4036_v16  ;;  %v1913_v60 = vmul.f32 0.036632847, %v4037_v3  ;;  %v1811_v2 = vadd.f32 %v4038_v52, %v1807_v20 }
 0x5d9   :  { %v1929_v26 = vadd.f32 %v1927_v24, %v1875_v18  ;;  %v1939_v9 = vmul.f32 0.036632847, %v4039_v14  ;;  %v1859_v32 = vadd.f32 %v3551_v42, %v1855_v39  ;;  %v1782_v55 = vadd.f32 %v1780_v47, %v4040_v57  ;;  %v4041_v20 = vld [vmem:[#allocation56_spill] sm:$0xff]  ;;  %v1740_v13 = vpop.permute.xlu0 %1739 }
 0x5da   :  { %1051 = vrot.lane.b32.xlu1 %v1049_v56, %s2195_s27  ;;  %v1784_v29 = vmul.f32 0.036632847, %v1692_v28  ;;  %v1837_v44 = vadd.f32 %v3557_v34, %v1833_v61  ;;  %v3759_v23 = vmul.f32 0.21674532, %v1680_v5  ;;  %v1789_v18 = vsel %vm1787_vm13, %v3699_v33, %v3536_v63  ;;  %v4042_v42 = vld [vmem:[#allocation60_spill] sm:$0xff]  ;;  %v1712_v50 = vpop.permute.xlu1 %1711 }
 0x5db   :  { %v1931_v37 = vadd.f32 %v1929_v26, %v4022_v38  ;;  %v1806_v11 = vadd.f32 %v1804_v1, %v4041_v20  ;;  %v1856_v39 = vadd.f32 %v4042_v42, %v1804_v1  ;;  %v1858_v12 = vmul.f32 0.11128076, %v1708_v27 }
 0x5dc   :  { %v1786_v21 = vadd.f32 %v1784_v29, %v1782_v55  ;;  %v1830_v15 = vadd.f32 %v4043_v40, %v1804_v1  ;;  %v1832_v46 = vmul.f32 0.11128076, %v1712_v50  ;;  %vm1813_vm14 = vcmp.gt.f32.partialorder %v1811_v2, %v1789_v18 }
 0x5dd   :  { %v1933_v34 = vadd.f32 %v1931_v37, %v3548_v31  ;;  %v1791_v7 = vsel %vm1787_vm13, 1.0, %v4014_v10  ;;  %v1815_v19 = vsel %vm1813_vm14, %v1811_v2, %v1789_v18  ;;  %v1863_v5 = vadd.f32 %v4045_v53, %v1859_v32  ;;  %v1736_v54 = vpop.permute.xlu0 %1735 }
 0x5de   :  { %vm1788_vm15 = vcmp.gt.f32.partialorder %v1786_v21, %v4044_v51  ;;  %v1808_v4 = vadd.f32 %v1806_v11, %v1780_v47  ;;  %v1817_v45 = vsel %vm1813_vm14, 2.0, %v1791_v7  ;;  %v1716_v17 = vpop.permute.xlu1 %1715  ;;  %vm1839_vm0 = vcmp.gt.f32.partialorder %v1837_v44, %v1815_v19 }
 0x5df   :  { %v1937_v58 = vadd.f32 %v3749_v6, %v1933_v34  ;;  %v1790_v31 = vsel %vm1788_vm15, %v1786_v21, %v4044_v51  ;;  %v1889_v30 = vadd.f32 %v1887_v41, %v1885_v25  ;;  %v1915_v61 = vadd.f32 %v1913_v60, %v1911_v22 }
 0x5e0   :  { %v3783_v63 = vsel %vm1043_vm12, %v3716_v43, %v1023_v0  ;;  %v1836_v33 = vmul.f32 0.036632847, %v1740_v13  ;;  %v1834_v48 = vadd.f32 %v1832_v46, %v1830_v15  ;;  %v1810_v24 = vmul.f32 0.036632847, %v1716_v17  ;;  %v4046_v0 = vld [vmem:[#allocation61_spill] sm:$0xff] }
 0x5e1   :  { %v1841_v56 = vsel %vm1839_vm0, %v1837_v44, %v1815_v19  ;;  %v1843_v1 = vsel %vm1839_vm0, 3.0, %v1817_v45  ;;  %v1941_v47 = vadd.f32 %v1939_v9, %v1937_v58  ;;  %v3790_v27 = vsel %vm1044_vm11, %v3554_v49, %v3726_v59  ;;  %v1704_v3 = vpop.permute.xlu0 %1703  ;;  %v4047_v45 = vld [vmem:[#allocation72_spill] sm:$0xff] }
 0x5e2   :  { %vm1865_vm1 = vcmp.gt.f32.partialorder %v1863_v5, %v1841_v56  ;;  %v1862_v25 = vmul.f32 0.036632847, %v1736_v54  ;;  %v1812_v22 = vadd.f32 %v1810_v24, %v1808_v4  ;;  %v1860_v43 = vadd.f32 %v1858_v12, %v1856_v39  ;;  %v1594_v60 = vpop.permute.xlu1 %1593 }
 0x5e3   :  { %v1867_v41 = vsel %vm1865_vm1, %v1863_v5, %v1841_v56  ;;  %v1869_v28 = vsel %vm1865_vm1, 4.0, %v1843_v1  ;;  %v1884_v16 = vadd.f32 %v3759_v23, %v4046_v0  ;;  %v1792_v52 = vsel %vm1788_vm15, 1.0, %v4014_v10 }
 0x5e4   :  { %vm1891_vm2 = vcmp.gt.f32.partialorder %v1889_v30, %v1867_v41  ;;  %v1838_v2 = vadd.f32 %v1836_v33, %v1834_v48  ;;  %vm1814_vm3 = vcmp.gt.f32.partialorder %v1812_v22, %v1790_v31  ;;  %v1864_v9 = vadd.f32 %v1862_v25, %v1860_v43  ;;  %v4049_v33 = vld [vmem:[#allocation10_spill] sm:$0xff] }
 0x5e5   :  { %v1893_v26 = vsel %vm1891_vm2, %v1889_v30, %v1867_v41  ;;  %v1816_v49 = vsel %vm1814_vm3, %v1812_v22, %v1790_v31  ;;  %v1818_v59 = vsel %vm1814_vm3, 2.0, %v1792_v52  ;;  %v1895_v14 = vsel %vm1891_vm2, 5.0, %v1869_v28  ;;  %v1732_v44 = vpop.permute.xlu0 %1731 }
 0x5e6   :  { %vm1917_vm4 = vcmp.gt.f32.partialorder %v1915_v61, %v1893_v26  ;;  %vm1840_vm5 = vcmp.gt.f32.partialorder %v1838_v2, %v1816_v49  ;;  %v1886_v55 = vadd.f32 %v1884_v16, %v1858_v12  ;;  %v1614_v18 = vpop.permute.xlu1 %1613  ;;  %v1888_v20 = vmul.f32 0.036632847, %v1732_v44  ;;  %v4050_v16 = vld [vmem:[#allocation50_spill] sm:$0xff] }
 0x5e7   :  { %v1919_v32 = vsel %vm1917_vm4, %v1915_v61, %v1893_v26  ;;  %v1921_v57 = vsel %vm1917_vm4, 6.0, %v1895_v14  ;;  %v1844_v29 = vsel %vm1840_vm5, 3.0, %v1818_v59  ;;  %v1842_v37 = vsel %vm1840_vm5, %v1838_v2, %v1816_v49  ;;  %v4048_v61 = vld [vmem:[#allocation62_spill] sm:$0xff]  ;;  %v4052_v59 = vld [vmem:[#allocation48_spill] sm:$0xff] }
 0x5e8   :  { %vm1943_vm6 = vcmp.gt.f32.partialorder %v1941_v47, %v1919_v32  ;;  %vm1866_vm7 = vcmp.gt.f32.partialorder %v1864_v9, %v1842_v37  ;;  %v1977_v10 = vmul.f32 0.11128076, %v1614_v18  ;;  %v1949_v13 = vmul.f32 0.036632847, %v3708_v8 }
 0x5e9   :  { %v3797_v11 = vsel %vm1943_vm6, %v1941_v47, %v1919_v32  ;;  %v1868_v42 = vsel %vm1866_vm7, %v1864_v9, %v1842_v37  ;;  %v1870_v39 = vsel %vm1866_vm7, 4.0, %v1844_v29  ;;  %v3799_v21 = vsel %vm1943_vm6, 7.0, %v1921_v57  ;;  %v1676_v40 = vpop.permute.xlu0 %1675  ;;  %v4053_v9 = vld [vmem:[#allocation52_spill] sm:$0xff]  ;;  %v4054_v57 = vld [vmem:[#allocation14_spill] sm:$0xff] }
 0x5ea   :  { %v1975_v50 = vmul.f32 0.036632847, %v1594_v60  ;;  %v1890_v34 = vadd.f32 %v1888_v20, %v1886_v55  ;;  %v1634_v12 = vpop.permute.xlu1 %1633  ;;  %v1951_v15 = vadd.f32 %v1949_v13, %v3735_v35  ;;  %v1910_v58 = vmul.f32 0.11128076, %v1704_v3  ;;  %v4051_v60 = vld [vmem:[#allocation69_spill] sm:$0xff] }
 0x5eb   :  { %v1953_v51 = vmul.f32 0.21674532, %v1634_v12  ;;  %v1959_v54 = vmul.f32 0.21674532, %v4047_v45  ;;  %v1908_v35 = vadd.f32 %v4048_v61, %v3759_v23  ;;  %v1987_v48 = vmul.f32 0.11128076, %v4049_v33 }
 0x5ec   :  { %vm1892_vm8 = vcmp.gt.f32.partialorder %v1890_v34, %v1868_v42  ;;  %v1979_v46 = vadd.f32 %v1977_v10, %v1975_v50  ;;  %v1978_v3 = vmul.f32 0.11128076, %v4050_v16  ;;  %v1934_v52 = vadd.f32 %v4051_v60, %v3759_v23 }
 0x5ed   :  { %v1896_v7 = vsel %vm1892_vm8, 5.0, %v1870_v39  ;;  %v1894_v19 = vsel %vm1892_vm8, %v1890_v34, %v1868_v42  ;;  %v1955_v53 = vadd.f32 %v1953_v51, %v1951_v15  ;;  %v1700_v4 = vpop.permute.xlu0 %1699  ;;  %v1912_v56 = vadd.f32 %v1910_v58, %v1908_v35  ;;  %v4055_v34 = vld [vmem:[#allocation65_spill] sm:$0xff] }
 0x5ee   :  { %v1981_v5 = vadd.f32 %v1979_v46, %v1953_v51  ;;  %v1618_v31 = vpop.permute.xlu1 %1617  ;;  %v3809_v1 = vmul.f32 0.11128076, %v1700_v4  ;;  %v1976_v14 = vmul.f32 0.036632847, %v4052_v59  ;;  %v2002_v32 = vmul.f32 0.036632847, %v4053_v9 }
 0x5ef   :  { %v1957_v8 = vadd.f32 %v1955_v53, %v4022_v38  ;;  %v2001_v30 = vmul.f32 0.036632847, %v1618_v31  ;;  %v2011_v55 = vmul.f32 0.11128076, %v4054_v57  ;;  %v1960_v58 = vmul.f32 0.21674532, %v1676_v40 }
 0x5f0   :  { %v1983_v17 = vadd.f32 %v1981_v5, %v4022_v38  ;;  %v1938_v29 = vadd.f32 %v3809_v1, %v1934_v52  ;;  %v1980_v23 = vadd.f32 %v1978_v3, %v1976_v14  ;;  %v2141_v35 = vld [vmem:[#allocation3 + $0x1e] sm:$0xff] }
 0x5f1   :  { %v1728_v47 = vpop.permute.xlu0 %1727  ;;  %v1961_v22 = vadd.f32 %v1959_v54, %v1957_v8  ;;  %v2003_v28 = vadd.f32 %v2001_v30, %v1953_v51  ;;  %v2004_v51 = vadd.f32 %v2002_v32, %v4055_v34  ;;  %v4056_v8 = vld [vmem:[#allocation54_spill] sm:$0xff]  ;;  %v2140_v30 = vld [vmem:[#allocation3 + $0x1c] sm:$0xff]  ;;  %v1991_v33 = vmul.f32 0.036632847, %v2141_v35 }
 0x5f2   :  { %v1985_v24 = vadd.f32 %v1983_v17, %v1959_v54  ;;  %v1638_v25 = vpop.permute.xlu1 %1637  ;;  %v1914_v43 = vmul.f32 0.036632847, %v1728_v47  ;;  %v1982_v12 = vadd.f32 %v1980_v23, %v4055_v34  ;;  %v2037_v61 = vmul.f32 0.036632847, %v2140_v30  ;;  %v2142_v40 = vld [vmem:[#allocation3 + $0x1d] sm:$0xff] }
 0x5f3   :  { %v2005_v0 = vmul.f32 0.11128076, %v1638_v25  ;;  %v1963_v2 = vadd.f32 %v1961_v22, %v3749_v6  ;;  %v2017_v25 = vmul.f32 0.036632847, %v2142_v40 }
 0x5f4   :  { %v1989_v41 = vadd.f32 %v1987_v48, %v1985_v24  ;;  %v1916_v26 = vadd.f32 %v1914_v43, %v1912_v56  ;;  %v4057_v56 = vld [vmem:[#allocation55_spill] sm:$0xff] }
 0x5f5   :  { %v2007_v49 = vadd.f32 %v2005_v0, %v2003_v28  ;;  %v1724_v44 = vpop.permute.xlu0 %1723  ;;  %v4058_v28 = vld [vmem:[#allocation70_spill] sm:$0xff] }
 0x5f6   :  { %v1642_v37 = vpop.permute.xlu1 %1641  ;;  %vm1918_vm9 = vcmp.gt.f32.partialorder %v1916_v26, %v1894_v19  ;;  %v1940_v20 = vmul.f32 0.036632847, %v1724_v44  ;;  %v1962_v43 = vadd.f32 %v1960_v58, %v4058_v28 }
 0x5f7   :  { %v2009_v18 = vadd.f32 %v2007_v49, %v4022_v38  ;;  %v2027_v10 = vmul.f32 0.036632847, %v1642_v37  ;;  %v1922_v42 = vsel %vm1918_vm9, 6.0, %v1896_v7  ;;  %v1920_v6 = vsel %vm1918_vm9, %v1916_v26, %v1894_v19 }
 0x5f8   :  { %v1942_v13 = vadd.f32 %v1940_v20, %v1938_v29  ;;  %v2008_v7 = vadd.f32 %v4056_v8, %v2004_v51 }
 0x5f9   :  { %v2013_v39 = vadd.f32 %v2011_v55, %v2009_v18  ;;  %v2029_v50 = vadd.f32 %v2027_v10, %v2005_v0  ;;  %v1672_v15 = vpop.permute.xlu0 %1671  ;;  %v1993_v0 = vadd.f32 %v1991_v33, %v1989_v41  ;;  %v2143_v41 = vld [vmem:[#allocation3 + $0x26] sm:$0xff] }
 0x5fa   :  { %v1718_v46 = vpop.permute.xlu1 %1717  ;;  %vm1944_vm10 = vcmp.gt.f32.partialorder %v1942_v13, %v1920_v6  ;;  %v2012_v17 = vmul.f32 0.11128076, %v1672_v15  ;;  %v1992_v57 = vmul.f32 0.036632847, %v2143_v41 }
 0x5fb   :  { %v2015_v53 = vadd.f32 %v2013_v39, %v1959_v54  ;;  %v2031_v5 = vadd.f32 %v2029_v50, %v4020_v62  ;;  %v1948_v4 = vsel %vm1944_vm10, 7.0, %v1922_v42  ;;  %v1965_v31 = vmul.f32 0.036632847, %v1718_v46  ;;  %v4059_v50 = vld [vmem:[#allocation58_spill] sm:$0xff] }
 0x5fc   :  { %v1946_v45 = vsel %vm1944_vm10, %v1942_v13, %v1920_v6  ;;  %v1984_v54 = vadd.f32 %v1982_v12, %v4057_v56  ;;  %v2010_v62 = vadd.f32 %v2008_v7, %v4057_v56 }
 0x5fd   :  { %v2033_v19 = vadd.f32 %v2031_v5, %v4022_v38  ;;  %v1967_v48 = vadd.f32 %v1965_v31, %v1963_v2  ;;  %v1696_v24 = vpop.permute.xlu0 %1695  ;;  %v1964_v2 = vadd.f32 %v1962_v43, %v3809_v1 }
 0x5fe   :  { %v1988_v22 = vmul.f32 0.11128076, %v1696_v24  ;;  %v1986_v38 = vadd.f32 %v1984_v54, %v1960_v58  ;;  %v2014_v3 = vadd.f32 %v2012_v17, %v2010_v62 }
 0x5ff   :  { %v2035_v47 = vadd.f32 %v2033_v19, %v4025_v36  ;;  %vm1969_vm11 = vcmp.gt.f32.partialorder %v1967_v48, %v3797_v11  ;;  %v2019_v36 = vadd.f32 %v2017_v25, %v2015_v53 }
 0x600   :  { %v1971_v60 = vsel %vm1969_vm11, %v1967_v48, %v3797_v11  ;;  %v1973_v52 = vsel %vm1969_vm11, 8.0, %v3799_v21  ;;  %v1990_v26 = vadd.f32 %v1988_v22, %v1986_v38  ;;  %v2016_v29 = vadd.f32 %v2014_v3, %v1960_v58  ;;  %v2144_v11 = vld [vmem:[#allocation3 + $0x25] sm:$0xff] }
 0x601   :  { %v2039_v16 = vadd.f32 %v2037_v61, %v2035_v47  ;;  %vm1995_vm12 = vcmp.gt.f32.partialorder %v1993_v0, %v1971_v60  ;;  %v1720_v49 = vpop.permute.xlu0 %1719  ;;  %v2018_v20 = vmul.f32 0.036632847, %v2144_v11  ;;  %v2145_v21 = vld [vmem:[#allocation3 + $0x24] sm:$0xff] }
 0x602   :  { %v1997_v59 = vsel %vm1995_vm12, %v1993_v0, %v1971_v60  ;;  %v1999_v14 = vsel %vm1995_vm12, 9.0, %v1973_v52  ;;  %v1966_v9 = vmul.f32 0.036632847, %v1720_v49  ;;  %v2038_v10 = vmul.f32 0.036632847, %v2145_v21 }
 0x603   :  { %v2041_v32 = vadd.f32 %v2039_v16, %v2011_v55  ;;  %vm2021_vm13 = vcmp.gt.f32.partialorder %v2019_v36, %v1997_v59  ;;  %v1994_v1 = vadd.f32 %v1992_v57, %v1990_v26  ;;  %v2020_v55 = vadd.f32 %v2018_v20, %v2016_v29 }
 0x604   :  { %v2025_v44 = vsel %vm2021_vm13, 10.0, %v1999_v14  ;;  %v1968_v37 = vadd.f32 %v1966_v9, %v1964_v2  ;;  %v2023_v18 = vsel %vm2021_vm13, %v2019_v36, %v1997_v59  ;;  %v2040_v34 = vadd.f32 %v2038_v10, %v4059_v50 }
 0x605   :  { %vm2043_vm14 = vcmp.gt.f32.partialorder %v2041_v32, %v2023_v18 }
 0x606   :  { %vm1970_vm15 = vcmp.gt.f32.partialorder %v1968_v37, %v1946_v45  ;;  %v2047_v23 = vsel %vm2043_vm14, 11.0, %v2025_v44  ;;  %v2045_v42 = vsel %vm2043_vm14, %v2041_v32, %v2023_v18  ;;  %v2042_v46 = vadd.f32 %v2040_v34, %v2012_v17 }
 0x607   :  { %v1972_v6 = vsel %vm1970_vm15, %v1968_v37, %v1946_v45  ;;  %v1974_v39 = vsel %vm1970_vm15, 8.0, %v1948_v4  ;;  %v2049_v13 = vmul.f32 0.041666668, %v2047_v23  ;;  %v4060_v4 = vlaneseq }
 0x608   :  { %vm1996_vm0 = vcmp.gt.f32.partialorder %v1994_v1, %v1972_v6 }
 0x609   :  { %v1998_v12 = vsel %vm1996_vm0, %v1994_v1, %v1972_v6  ;;  %v2000_v15 = vsel %vm1996_vm0, 9.0, %v1974_v39  ;;  %2051 = vrot.lane.b32.xlu1 %v2049_v13, %s2195_s27  ;;  %v23_v45 = vand.u32 127, %v4060_v4 }
 0x60a   :  { %vm2022_vm1 = vcmp.gt.f32.partialorder %v2020_v55, %v1998_v12 }
 0x60b   :  { %v2026_v51 = vsel %vm2022_vm1, 10.0, %v2000_v15  ;;  %v2024_v53 = vsel %vm2022_vm1, %v2020_v55, %v1998_v12  ;;  %v28_v8 = vand.u32 31, %v23_v45 }
 0x60c   :  { %vm2044_vm2 = vcmp.gt.f32.partialorder %v2042_v46, %v2024_v53 }
 0x60d   :  { %v2048_v5 = vsel %vm2044_vm2, 11.0, %v2026_v51  ;;  %v2046_v58 = vsel %vm2044_vm2, %v2042_v46, %v2024_v53  ;;  %vm36_vm3 = vcmp.lt.s32.totalorder %v28_v8, 16 }
 0x60e   :  { %v2050_v31 = vmul.f32 0.041666668, %v2048_v5 }
 0x610   :  { %2053 = vrot.lane.b32.xlu0 %v2050_v31, %s2195_s27 }
 0x64a   :  { %v1054_v7 = vpop.permute.xlu0 %1053 }
 0x64b   :  { %v1056_v19 = vsel %vm36_vm3, %v3790_v27, %v1054_v7 }
 0x64c   :  { %v1052_v30 = vpop.permute.xlu1 %1051  ;;  %1058 = vst [vmem:[%s3852_s1 + $0x8] sm:$0xff] %v1056_v19 }
 0x64d   :  { %v1055_v17 = vsel %vm36_vm3, %v3783_v63, %v1052_v30 }
 0x64e   :  { %1057 = vst [vmem:[%s3852_s1] sm:$0xff] %v1055_v17 }
 0x67b   :  { %v2052_v61 = vpop.permute.xlu1 %2051 }
 0x67c   :  { %v2055_v35 = vsel %vm36_vm3, %v2045_v42, %v2052_v61 }
 0x67d   :  { %2065 = vst [vmem:[%s3852_s1 + $0x10] sm:$0xff] %v2055_v35 }
 0x682   :  { %v2054_v33 = vpop.permute.xlu0 %2053 }
 0x683   :  { %v2056_v48 = vsel %vm36_vm3, %v2046_v58, %v2054_v33 }
 0x684   :  { %2066 = vst [vmem:[%s3852_s1 + $0x18] sm:$0xff] %v2056_v48 }
 0x685   :  { %2064 = vsyncpa [#allocation5], 1 }

</bundles_post_ra>
